<compile_context>
chip_gen: v7x
topology: tpu7x:2x2x1
jax: 0.10.0
libtpu: 0.0.40
codegen_flags: <defaults>
</compile_context>

<pallas_src>
from math import ceil

import numpy as np
import jax
import jax.numpy as jnp
from jax.experimental import pallas as pl
from jax.experimental.pallas import tpu as pltpu


# ----------------------------------------------------------------------------
# Host-side construction of the cubic B-spline resize operator (setup glue).
# ----------------------------------------------------------------------------
def _cubic_bspline(t):
    at = np.abs(np.asarray(t, dtype=np.float64))
    return np.where(
        at < 1.0, 2.0 / 3.0 - at**2 + at**3 / 2.0,
        np.where(at < 2.0, (2.0 - at) ** 3 / 6.0, 0.0),
    )


def _mirror_index(i, n):
    if n == 1:
        return 0
    p = 2 * (n - 1)
    i = abs(i) % p
    return p - i if i >= n else i


def make_resize_matrix(n_in, factor, order=3, n_out=None):
    """R (n_out, n_in): y = R @ x resamples one axis with spacing ratio `factor`
    using cubic B-spline interpolation (prefilter + mirror boundaries)."""
    # TODO(synk): the exact coordinate/boundary convention of the external
    # `resize` package used by eclare is not reproduced bit-exactly here.
    if n_out is None:
        n_out = int(round(n_in / factor))
    A = np.zeros((n_in, n_in), dtype=np.float64)
    for j in range(n_in):
        for k in range(j - 2, j + 3):
            w = float(_cubic_bspline(j - k))
            if w > 0.0:
                A[j, _mirror_index(k, n_in)] += w
    S = np.zeros((n_out, n_in), dtype=np.float64)
    for i in range(n_out):
        t = (i + 0.5) * factor - 0.5
        k0 = int(np.floor(t)) - 1
        for k in range(k0, k0 + 4):
            w = float(_cubic_bspline(t - k))
            if w > 0.0:
                S[i, _mirror_index(k, n_in)] += w
    return S @ np.linalg.inv(A)


def build_resize_operators(H, W, scale, cs, order):
    """Lane-dense flat resize operators, with the H-pixel-shuffle folded in.

      skip branch : (1, H*W)  @ M1     -> (1, Hs*W)
      tail branch : (1, H*W)  @ M2[c]  -> (1, Hs*W)   summed over c in [0, cs)
    """
    Hs = int(round(H * scale))
    R1 = make_resize_matrix(H, 1.0 / scale, order, n_out=Hs)          # (Hs, H)
    R2 = make_resize_matrix(H * cs, cs / scale, order, n_out=Hs)      # (Hs, H*cs)
    eye_w = np.eye(W, dtype=np.float64)
    # M1[h*W+w, i*W+w'] = R1[i,h] * d(w,w')
    M1 = np.kron(R1.T, eye_w)                                         # (H*W, Hs*W)
    # pixel_shuffle row h*cs+c holds tail-channel c, row h  ->  fold into R2:
    # M2[c][h*W+w, i*W+w'] = R2[i, h*cs+c] * d(w,w')
    M2 = np.stack([np.kron(R2[:, c::cs].T, eye_w) for c in range(cs)])
    return Hs, jnp.asarray(M1, jnp.float32), jnp.asarray(M2, jnp.float32)


def build_tap_masks(H, W):
    """(9, H*W) f32 validity masks for the 9 conv taps (dy,dx) in row-major
    tap order; masks zero out contributions that would cross the image border
    (and hence the wrap-around of the flattened roll)."""
    masks = np.zeros((9, H * W), dtype=np.float32)
    t = 0
    for dy in (-1, 0, 1):
        for dx in (-1, 0, 1):
            m = np.zeros((H, W), dtype=np.float32)
            m[max(0, -dy):H - max(0, dy), max(0, -dx):W - max(0, dx)] = 1.0
            masks[t] = m.reshape(-1)
            t += 1
    return jnp.asarray(masks)


# ----------------------------------------------------------------------------
# Fused head -> residual blocks -> tail -> pixel-shuffle/resizes/skip/clip.
# ----------------------------------------------------------------------------
def _make_wdsr_kernel(H, W, n_blocks, n_tail):
    HW = H * W

    def kernel(x_ref, mask_ref, hw_ref, hb_ref, w1_ref, b1_ref, w2_ref, b2_ref,
               w3_ref, b3_ref, tw_ref, tb_ref, m1_ref, m2_ref, o_ref):
        masks = mask_ref[...]                                 # (9, HW)

        def conv3x3(act, w_cm, b_col):
            # act: (Cin, HW) channels-major; w_cm: (Cout, 9*Cin); b_col: (Cout, 1).
            # Taps are built with pltpu.roll on the flattened activation and the
            # wrapped border masked off; stacked along the sublane axis.
            taps = []
            t = 0
            for dy in (-1, 0, 1):
                for dx in (-1, 0, 1):
                    d = dy * W + dx
                    v = act if d == 0 else pltpu.roll(act, shift=(-d) % HW, axis=1)
                    if dy == 0 and dx == 0:
                        taps.append(v)                        # center tap: no mask
                    else:
                        taps.append(v * masks[t:t + 1, :])
                    t += 1
            patches = jnp.concatenate(taps, axis=0)           # (9*Cin, HW)
            return jnp.dot(w_cm, patches,
                           preferred_element_type=jnp.float32) + b_col

        x_row = x_ref[0]                                      # (1, HW), lane-dense

        # --- head: 3x3 conv, Cin = 1 ------------------------------------------
        feat = conv3x3(x_row, hw_ref[...], hb_ref[...])       # (C, HW)

        # --- body: residual blocks (expand -> ReLU -> linear -> conv3x3) -------
        # TODO(synk): switch to lax.fori_loop over the stacked (B, ...) weights
        # once n_resblocks grows beyond a handful (vreg pressure / compile time).
        for i in range(n_blocks):
            h = jnp.dot(w1_ref[i], feat,
                        preferred_element_type=jnp.float32) + b1_ref[i]
            h = jnp.maximum(h, 0.0)                           # (E, HW)
            h = jnp.dot(w2_ref[i], h,
                        preferred_element_type=jnp.float32) + b2_ref[i]   # (Lp, HW)
            feat = feat + conv3x3(h, w3_ref[i], b3_ref[i])    # res_scale = 1

        # --- tail: 3x3 conv to ceil(scale) channels ----------------------------
        t_cm = conv3x3(feat, tw_ref[...], tb_ref[...])        # (S, HW)

        # --- pixel shuffle (folded into M2) + both resizes + skip + clip -------
        acc = jnp.dot(x_row, m1_ref[...],
                      preferred_element_type=jnp.float32)     # (1, Hs*W) skip
        for c in range(n_tail):
            acc = acc + jnp.dot(t_cm[c:c + 1, :], m2_ref[c],
                                preferred_element_type=jnp.float32)
        o_ref[0] = jnp.clip(acc, 0.0, 1.0)                    # lane-dense store

    return kernel


def wdsr_fused_call(x_flat, tap_masks, packed, M1, M2, *, H, W, n_blocks):
    N = x_flat.shape[0]
    HW = H * W
    C = packed["head_w"].shape[0]
    E = packed["w1"].shape[1]
    Lp = packed["w2"].shape[1]
    S = packed["tail_w"].shape[0]
    B = n_blocks
    HsW = M1.shape[1]

    def full(shape):
        nd = len(shape)
        return pl.BlockSpec(shape, lambda n, _nd=nd: (0,) * _nd)

    kernel = _make_wdsr_kernel(H, W, B, S)
    return pl.pallas_call(
        kernel,
        out_shape=jax.ShapeDtypeStruct((N, 1, HsW), jnp.float32),
        grid=(N,),
        in_specs=[
            pl.BlockSpec((1, 1, HW), lambda n: (n, 0, 0)),    # input image (flat)
            full((9, HW)),                                    # tap border masks
            full((C, 9)), full((C, 1)),                       # head conv (cm)
            full((B, E, C)), full((B, E, 1)),                 # 1x1 expand
            full((B, Lp, E)), full((B, Lp, 1)),               # 1x1 linear (padded)
            full((B, C, 9 * Lp)), full((B, C, 1)),            # 3x3 conv (cm)
            full((S, 9 * C)), full((S, 1)),                   # tail conv (cm)
            full((HW, HsW)),                                  # skip resize op
            full((S, HW, HsW)),                               # shuffle+tail resize op
        ],
        out_specs=pl.BlockSpec((1, 1, HsW), lambda n: (n, 0, 0)),
        compiler_params=pltpu.CompilerParams(
            dimension_semantics=("parallel",),
            vmem_limit_bytes=32 * 1024 * 1024),
    )(x_flat, tap_masks, packed["head_w"], packed["head_b"],
      packed["w1"], packed["b1"], packed["w2"], packed["b2"],
      packed["w3"], packed["b3"], packed["tail_w"], packed["tail_b"],
      M1, M2)


# ----------------------------------------------------------------------------
# Parameter init / packing (host-side glue).
# ----------------------------------------------------------------------------
def init_params(key, num_channels, n_resblocks, scale):
    C = num_channels
    E = 4 * C                 # expand = 4
    L = int(C * 0.8)          # linear = 0.8
    S = int(ceil(scale))
    ks = iter(jax.random.split(key, 4 + 6 * n_resblocks))

    def w(shape, k, scl=0.1):
        return jax.random.normal(k, shape, jnp.float32) * scl

    params = {
        "head_w": w((3, 3, 1, C), next(ks)),
        "head_b": w((1, C), next(ks), 0.01),
        "blocks": [],
        "tail_w": w((3, 3, C, S), next(ks)),
        "tail_b": w((1, S), next(ks), 0.01),
    }
    for _ in range(n_resblocks):
        params["blocks"].append({
            "w1": w((C, E), next(ks)), "b1": w((1, E), next(ks), 0.01),
            "w2": w((E, L), next(ks)), "b2": w((1, L), next(ks), 0.01),
            "w3": w((3, 3, L, C), next(ks)), "b3": w((1, C), next(ks), 0.01),
        })
    return params


def pack_params(params):
    """Pack weights into channels-major form: conv weights (Cout, 9*Cin) with
    taps in (ky, kx) row-major order, 1x1 weights as (Cout, Cin), biases as
    (Cout, 1).  The narrow 'linear' dim is zero-padded to a sublane multiple."""
    C = params["head_w"].shape[-1]
    blocks = params["blocks"]
    assert len(blocks) >= 1
    E = blocks[0]["w1"].shape[1]
    L = blocks[0]["w2"].shape[1]
    Lp = max(8, ((L + 7) // 8) * 8)
    dL = Lp - L
    S = params["tail_w"].shape[-1]

    def cm_conv(w):  # (3, 3, Cin, Cout) -> (Cout, 9*Cin), column = tap*Cin + cin
        k1, k2, cin, cout = w.shape
        return jnp.transpose(w.reshape(k1 * k2 * cin, cout))

    return {
        "head_w": cm_conv(params["head_w"]),                              # (C, 9)
        "head_b": params["head_b"].reshape(C, 1),
        "tail_w": cm_conv(params["tail_w"]),                              # (S, 9*C)
        "tail_b": params["tail_b"].reshape(S, 1),
        "w1": jnp.stack([jnp.transpose(b["w1"]) for b in blocks]),        # (B, E, C)
        "b1": jnp.stack([b["b1"].reshape(E, 1) for b in blocks]),         # (B, E, 1)
        "w2": jnp.stack([jnp.pad(jnp.transpose(b["w2"]), ((0, dL), (0, 0)))
                         for b in blocks]),                               # (B, Lp, E)
        "b2": jnp.stack([jnp.pad(b["b2"].reshape(L, 1), ((0, dL), (0, 0)))
                         for b in blocks]),                               # (B, Lp, 1)
        "w3": jnp.stack([cm_conv(jnp.pad(b["w3"],
                                         ((0, 0), (0, 0), (0, dL), (0, 0))))
                         for b in blocks]),                               # (B, C, 9*Lp)
        "b3": jnp.stack([b["b3"].reshape(C, 1) for b in blocks]),         # (B, C, 1)
    }


# ----------------------------------------------------------------------------
# WDSR forward (wrapper glue).
# ----------------------------------------------------------------------------
def wdsr_forward(x_nchw, params, scale, order=3):
    """Input / output are NCHW (PyTorch convention)."""
    N, Cin, H, W = x_nchw.shape
    assert Cin == 1
    cs = int(ceil(scale))

    packed = pack_params(params)
    n_blocks = packed["w1"].shape[0]
    assert packed["tail_w"].shape[0] == cs

    Hs, M1, M2 = build_resize_operators(H, W, scale, cs, order)
    tap_masks = build_tap_masks(H, W)

    # Lane-dense flattened input; one fused pallas_call does everything.
    x_flat = x_nchw.reshape(N, 1, H * W)
    out_flat = wdsr_fused_call(x_flat, tap_masks, packed, M1, M2,
                               H=H, W=W, n_blocks=n_blocks)   # (N, 1, Hs*W)
    return out_flat.reshape(N, 1, Hs, W)


if __name__ == "__main__":
    key = jax.random.PRNGKey(0)
    pkey, xkey = jax.random.split(key)

    n_resblocks, num_channels, scale = 2, 8, 2
    N, H, W = 2, 16, 16

    params = init_params(pkey, num_channels, n_resblocks, scale)
    x = jax.random.uniform(xkey, (N, 1, H, W), jnp.float32)   # intensities in [0, 1]

    out = wdsr_forward(x, params, scale, order=3)
    out = jax.block_until_ready(out)

    assert out.shape == (N, 1, H * scale, W), out.shape
    assert out.dtype == jnp.float32
    assert bool(jnp.all(jnp.isfinite(out)))
    assert bool(jnp.all(out >= 0.0)) and bool(jnp.all(out <= 1.0))
    print("KERNEL_OK")
</pallas_src>

<mosaic_0001>
module attributes {stable_mosaic.version = 11 : i64} {
  func.func @kernel(%arg0: i32, %arg1: memref<1x1x256xf32, #tpu.memory_space<vmem>>, %arg2: memref<9x256xf32, #tpu.memory_space<vmem>>, %arg3: memref<8x9xf32, #tpu.memory_space<vmem>>, %arg4: memref<8x1xf32, #tpu.memory_space<vmem>>, %arg5: memref<2x32x8xf32, #tpu.memory_space<vmem>>, %arg6: memref<2x32x1xf32, #tpu.memory_space<vmem>>, %arg7: memref<2x8x32xf32, #tpu.memory_space<vmem>>, %arg8: memref<2x8x1xf32, #tpu.memory_space<vmem>>, %arg9: memref<2x8x72xf32, #tpu.memory_space<vmem>>, %arg10: memref<2x8x1xf32, #tpu.memory_space<vmem>>, %arg11: memref<2x72xf32, #tpu.memory_space<vmem>>, %arg12: memref<2x1xf32, #tpu.memory_space<vmem>>, %arg13: memref<256x512xf32, #tpu.memory_space<vmem>>, %arg14: memref<2x256x512xf32, #tpu.memory_space<vmem>>, %arg15: memref<1x1x512xf32, #tpu.memory_space<vmem>>) attributes {dimension_semantics = [#tpu.dimension_semantics<parallel>], iteration_bounds = array<i64: 2>, scalar_prefetch = 0 : i64, scratch_operands = 0 : i64, tpu.core_type = #tpu.core_type<tc>, window_params = [{transform_indices = @transform_0, window_bounds = array<i64: 1, 1, 256>}, {pipeline_mode = #tpu.pipeline_mode<synchronous>, transform_indices = @transform_1, window_bounds = array<i64: 9, 256>}, {pipeline_mode = #tpu.pipeline_mode<synchronous>, transform_indices = @transform_2, window_bounds = array<i64: 8, 9>}, {pipeline_mode = #tpu.pipeline_mode<synchronous>, transform_indices = @transform_3, window_bounds = array<i64: 8, 1>}, {pipeline_mode = #tpu.pipeline_mode<synchronous>, transform_indices = @transform_4, window_bounds = array<i64: 2, 32, 8>}, {pipeline_mode = #tpu.pipeline_mode<synchronous>, transform_indices = @transform_5, window_bounds = array<i64: 2, 32, 1>}, {pipeline_mode = #tpu.pipeline_mode<synchronous>, transform_indices = @transform_6, window_bounds = array<i64: 2, 8, 32>}, {pipeline_mode = #tpu.pipeline_mode<synchronous>, transform_indices = @transform_7, window_bounds = array<i64: 2, 8, 1>}, {pipeline_mode = #tpu.pipeline_mode<synchronous>, transform_indices = @transform_8, window_bounds = array<i64: 2, 8, 72>}, {pipeline_mode = #tpu.pipeline_mode<synchronous>, transform_indices = @transform_9, window_bounds = array<i64: 2, 8, 1>}, {pipeline_mode = #tpu.pipeline_mode<synchronous>, transform_indices = @transform_10, window_bounds = array<i64: 2, 72>}, {pipeline_mode = #tpu.pipeline_mode<synchronous>, transform_indices = @transform_11, window_bounds = array<i64: 2, 1>}, {pipeline_mode = #tpu.pipeline_mode<synchronous>, transform_indices = @transform_12, window_bounds = array<i64: 256, 512>}, {pipeline_mode = #tpu.pipeline_mode<synchronous>, transform_indices = @transform_13, window_bounds = array<i64: 2, 256, 512>}, {transform_indices = @transform_14, window_bounds = array<i64: 1, 1, 512>}]} {
    %c0 = arith.constant 0 : index
    %c0_0 = arith.constant 0 : index
    %0 = vector.load %arg2[%c0, %c0_0] : memref<9x256xf32, #tpu.memory_space<vmem>>, vector<9x256xf32>
    %c0_1 = arith.constant 0 : index
    %c0_2 = arith.constant 0 : index
    %c0_3 = arith.constant 0 : index
    %1 = vector.load %arg1[%c0_1, %c0_2, %c0_3] : memref<1x1x256xf32, #tpu.memory_space<vmem>>, vector<1x1x256xf32>
    %2 = vector.shape_cast %1 : vector<1x1x256xf32> to vector<1x256xf32>
    %c0_4 = arith.constant 0 : index
    %c0_5 = arith.constant 0 : index
    %3 = vector.load %arg3[%c0_4, %c0_5] : memref<8x9xf32, #tpu.memory_space<vmem>>, vector<8x9xf32>
    %c0_6 = arith.constant 0 : index
    %c0_7 = arith.constant 0 : index
    %4 = vector.load %arg4[%c0_6, %c0_7] : memref<8x1xf32, #tpu.memory_space<vmem>>, vector<8x1xf32>
    %c17_i32 = arith.constant 17 : i32
    %5 = tpu.dynamic_rotate %2 by %c17_i32 dim 1 : vector<1x256xf32>, i32 -> vector<1x256xf32>
    %6 = vector.extract_strided_slice %0 {offsets = [0, 0], sizes = [1, 256], strides = [1, 1]} : vector<9x256xf32> to vector<1x256xf32>
    %7 = arith.mulf %5, %6 : vector<1x256xf32>
    %c16_i32 = arith.constant 16 : i32
    %8 = tpu.dynamic_rotate %2 by %c16_i32 dim 1 : vector<1x256xf32>, i32 -> vector<1x256xf32>
    %9 = vector.extract_strided_slice %0 {offsets = [1, 0], sizes = [1, 256], strides = [1, 1]} : vector<9x256xf32> to vector<1x256xf32>
    %10 = arith.mulf %8, %9 : vector<1x256xf32>
    %c15_i32 = arith.constant 15 : i32
    %11 = tpu.dynamic_rotate %2 by %c15_i32 dim 1 : vector<1x256xf32>, i32 -> vector<1x256xf32>
    %12 = vector.extract_strided_slice %0 {offsets = [2, 0], sizes = [1, 256], strides = [1, 1]} : vector<9x256xf32> to vector<1x256xf32>
    %13 = arith.mulf %11, %12 : vector<1x256xf32>
    %c1_i32 = arith.constant 1 : i32
    %14 = tpu.dynamic_rotate %2 by %c1_i32 dim 1 : vector<1x256xf32>, i32 -> vector<1x256xf32>
    %15 = vector.extract_strided_slice %0 {offsets = [3, 0], sizes = [1, 256], strides = [1, 1]} : vector<9x256xf32> to vector<1x256xf32>
    %16 = arith.mulf %14, %15 : vector<1x256xf32>
    %c255_i32 = arith.constant 255 : i32
    %17 = tpu.dynamic_rotate %2 by %c255_i32 dim 1 : vector<1x256xf32>, i32 -> vector<1x256xf32>
    %18 = vector.extract_strided_slice %0 {offsets = [5, 0], sizes = [1, 256], strides = [1, 1]} : vector<9x256xf32> to vector<1x256xf32>
    %19 = arith.mulf %17, %18 : vector<1x256xf32>
    %c241_i32 = arith.constant 241 : i32
    %20 = tpu.dynamic_rotate %2 by %c241_i32 dim 1 : vector<1x256xf32>, i32 -> vector<1x256xf32>
    %21 = vector.extract_strided_slice %0 {offsets = [6, 0], sizes = [1, 256], strides = [1, 1]} : vector<9x256xf32> to vector<1x256xf32>
    %22 = arith.mulf %20, %21 : vector<1x256xf32>
    %c240_i32 = arith.constant 240 : i32
    %23 = tpu.dynamic_rotate %2 by %c240_i32 dim 1 : vector<1x256xf32>, i32 -> vector<1x256xf32>
    %24 = vector.extract_strided_slice %0 {offsets = [7, 0], sizes = [1, 256], strides = [1, 1]} : vector<9x256xf32> to vector<1x256xf32>
    %25 = arith.mulf %23, %24 : vector<1x256xf32>
    %c239_i32 = arith.constant 239 : i32
    %26 = tpu.dynamic_rotate %2 by %c239_i32 dim 1 : vector<1x256xf32>, i32 -> vector<1x256xf32>
    %27 = vector.extract_strided_slice %0 {offsets = [8, 0], sizes = [1, 256], strides = [1, 1]} : vector<9x256xf32> to vector<1x256xf32>
    %28 = arith.mulf %26, %27 : vector<1x256xf32>
    %29 = tpu.concatenate %7, %10, %13, %16, %2, %19, %22, %25, %28 in 0 : vector<1x256xf32>, vector<1x256xf32>, vector<1x256xf32>, vector<1x256xf32>, vector<1x256xf32>, vector<1x256xf32>, vector<1x256xf32>, vector<1x256xf32>, vector<1x256xf32> -> vector<9x256xf32>
    %cst = arith.constant dense<0.000000e+00> : vector<8x256xf32>
    %30 = tpu.matmul %3, %29, %cst {dimension_numbers = #tpu.dot_dimension_numbers<[1], [0], [0], [1], [0, 0, 1, 1], [], []>} : vector<8x9xf32>, vector<9x256xf32>, vector<8x256xf32> -> vector<8x256xf32>
    %31 = vector.broadcast %4 : vector<8x1xf32> to vector<8x256xf32>
    %32 = arith.addf %30, %31 : vector<8x256xf32>
    %c0_8 = arith.constant 0 : index
    %c0_9 = arith.constant 0 : index
    %c0_10 = arith.constant 0 : index
    %33 = vector.load %arg5[%c0_8, %c0_9, %c0_10] : memref<2x32x8xf32, #tpu.memory_space<vmem>>, vector<1x32x8xf32>
    %34 = vector.shape_cast %33 : vector<1x32x8xf32> to vector<32x8xf32>
    %cst_11 = arith.constant dense<0.000000e+00> : vector<32x256xf32>
    %35 = tpu.matmul %34, %32, %cst_11 {dimension_numbers = #tpu.dot_dimension_numbers<[1], [0], [0], [1], [0, 0, 1, 1], [], []>} : vector<32x8xf32>, vector<8x256xf32>, vector<32x256xf32> -> vector<32x256xf32>
    %c0_12 = arith.constant 0 : index
    %c0_13 = arith.constant 0 : index
    %c0_14 = arith.constant 0 : index
    %36 = vector.load %arg6[%c0_12, %c0_13, %c0_14] : memref<2x32x1xf32, #tpu.memory_space<vmem>>, vector<1x32x1xf32>
    %37 = vector.shape_cast %36 : vector<1x32x1xf32> to vector<32x1xf32>
    %38 = vector.broadcast %37 : vector<32x1xf32> to vector<32x256xf32>
    %39 = arith.addf %35, %38 : vector<32x256xf32>
    %cst_15 = arith.constant 0.000000e+00 : f32
    %40 = vector.broadcast %cst_15 : f32 to vector<32x256xf32>
    %41 = arith.maximumf %39, %40 : vector<32x256xf32>
    %c0_16 = arith.constant 0 : index
    %c0_17 = arith.constant 0 : index
    %c0_18 = arith.constant 0 : index
    %42 = vector.load %arg7[%c0_16, %c0_17, %c0_18] : memref<2x8x32xf32, #tpu.memory_space<vmem>>, vector<1x8x32xf32>
    %43 = vector.shape_cast %42 : vector<1x8x32xf32> to vector<8x32xf32>
    %cst_19 = arith.constant dense<0.000000e+00> : vector<8x256xf32>
    %44 = tpu.matmul %43, %41, %cst_19 {dimension_numbers = #tpu.dot_dimension_numbers<[1], [0], [0], [1], [0, 0, 1, 1], [], []>} : vector<8x32xf32>, vector<32x256xf32>, vector<8x256xf32> -> vector<8x256xf32>
    %c0_20 = arith.constant 0 : index
    %c0_21 = arith.constant 0 : index
    %c0_22 = arith.constant 0 : index
    %45 = vector.load %arg8[%c0_20, %c0_21, %c0_22] : memref<2x8x1xf32, #tpu.memory_space<vmem>>, vector<1x8x1xf32>
    %46 = vector.shape_cast %45 : vector<1x8x1xf32> to vector<8x1xf32>
    %47 = vector.broadcast %46 : vector<8x1xf32> to vector<8x256xf32>
    %48 = arith.addf %44, %47 : vector<8x256xf32>
    %c0_23 = arith.constant 0 : index
    %c0_24 = arith.constant 0 : index
    %c0_25 = arith.constant 0 : index
    %49 = vector.load %arg9[%c0_23, %c0_24, %c0_25] : memref<2x8x72xf32, #tpu.memory_space<vmem>>, vector<1x8x72xf32>
    %50 = vector.shape_cast %49 : vector<1x8x72xf32> to vector<8x72xf32>
    %c0_26 = arith.constant 0 : index
    %c0_27 = arith.constant 0 : index
    %c0_28 = arith.constant 0 : index
    %51 = vector.load %arg10[%c0_26, %c0_27, %c0_28] : memref<2x8x1xf32, #tpu.memory_space<vmem>>, vector<1x8x1xf32>
    %52 = vector.shape_cast %51 : vector<1x8x1xf32> to vector<8x1xf32>
    %c17_i32_29 = arith.constant 17 : i32
    %53 = tpu.dynamic_rotate %48 by %c17_i32_29 dim 1 : vector<8x256xf32>, i32 -> vector<8x256xf32>
    %54 = vector.extract_strided_slice %0 {offsets = [0, 0], sizes = [1, 256], strides = [1, 1]} : vector<9x256xf32> to vector<1x256xf32>
    %55 = vector.broadcast %54 : vector<1x256xf32> to vector<8x256xf32>
    %56 = arith.mulf %53, %55 : vector<8x256xf32>
    %c16_i32_30 = arith.constant 16 : i32
    %57 = tpu.dynamic_rotate %48 by %c16_i32_30 dim 1 : vector<8x256xf32>, i32 -> vector<8x256xf32>
    %58 = vector.extract_strided_slice %0 {offsets = [1, 0], sizes = [1, 256], strides = [1, 1]} : vector<9x256xf32> to vector<1x256xf32>
    %59 = vector.broadcast %58 : vector<1x256xf32> to vector<8x256xf32>
    %60 = arith.mulf %57, %59 : vector<8x256xf32>
    %c15_i32_31 = arith.constant 15 : i32
    %61 = tpu.dynamic_rotate %48 by %c15_i32_31 dim 1 : vector<8x256xf32>, i32 -> vector<8x256xf32>
    %62 = vector.extract_strided_slice %0 {offsets = [2, 0], sizes = [1, 256], strides = [1, 1]} : vector<9x256xf32> to vector<1x256xf32>
    %63 = vector.broadcast %62 : vector<1x256xf32> to vector<8x256xf32>
    %64 = arith.mulf %61, %63 : vector<8x256xf32>
    %c1_i32_32 = arith.constant 1 : i32
    %65 = tpu.dynamic_rotate %48 by %c1_i32_32 dim 1 : vector<8x256xf32>, i32 -> vector<8x256xf32>
    %66 = vector.extract_strided_slice %0 {offsets = [3, 0], sizes = [1, 256], strides = [1, 1]} : vector<9x256xf32> to vector<1x256xf32>
    %67 = vector.broadcast %66 : vector<1x256xf32> to vector<8x256xf32>
    %68 = arith.mulf %65, %67 : vector<8x256xf32>
    %c255_i32_33 = arith.constant 255 : i32
    %69 = tpu.dynamic_rotate %48 by %c255_i32_33 dim 1 : vector<8x256xf32>, i32 -> vector<8x256xf32>
    %70 = vector.extract_strided_slice %0 {offsets = [5, 0], sizes = [1, 256], strides = [1, 1]} : vector<9x256xf32> to vector<1x256xf32>
    %71 = vector.broadcast %70 : vector<1x256xf32> to vector<8x256xf32>
    %72 = arith.mulf %69, %71 : vector<8x256xf32>
    %c241_i32_34 = arith.constant 241 : i32
    %73 = tpu.dynamic_rotate %48 by %c241_i32_34 dim 1 : vector<8x256xf32>, i32 -> vector<8x256xf32>
    %74 = vector.extract_strided_slice %0 {offsets = [6, 0], sizes = [1, 256], strides = [1, 1]} : vector<9x256xf32> to vector<1x256xf32>
    %75 = vector.broadcast %74 : vector<1x256xf32> to vector<8x256xf32>
    %76 = arith.mulf %73, %75 : vector<8x256xf32>
    %c240_i32_35 = arith.constant 240 : i32
    %77 = tpu.dynamic_rotate %48 by %c240_i32_35 dim 1 : vector<8x256xf32>, i32 -> vector<8x256xf32>
    %78 = vector.extract_strided_slice %0 {offsets = [7, 0], sizes = [1, 256], strides = [1, 1]} : vector<9x256xf32> to vector<1x256xf32>
    %79 = vector.broadcast %78 : vector<1x256xf32> to vector<8x256xf32>
    %80 = arith.mulf %77, %79 : vector<8x256xf32>
    %c239_i32_36 = arith.constant 239 : i32
    %81 = tpu.dynamic_rotate %48 by %c239_i32_36 dim 1 : vector<8x256xf32>, i32 -> vector<8x256xf32>
    %82 = vector.extract_strided_slice %0 {offsets = [8, 0], sizes = [1, 256], strides = [1, 1]} : vector<9x256xf32> to vector<1x256xf32>
    %83 = vector.broadcast %82 : vector<1x256xf32> to vector<8x256xf32>
    %84 = arith.mulf %81, %83 : vector<8x256xf32>
    %85 = tpu.concatenate %56, %60, %64, %68, %48, %72, %76, %80, %84 in 0 : vector<8x256xf32>, vector<8x256xf32>, vector<8x256xf32>, vector<8x256xf32>, vector<8x256xf32>, vector<8x256xf32>, vector<8x256xf32>, vector<8x256xf32>, vector<8x256xf32> -> vector<72x256xf32>
    %cst_37 = arith.constant dense<0.000000e+00> : vector<8x256xf32>
    %86 = tpu.matmul %50, %85, %cst_37 {dimension_numbers = #tpu.dot_dimension_numbers<[1], [0], [0], [1], [0, 0, 1, 1], [], []>} : vector<8x72xf32>, vector<72x256xf32>, vector<8x256xf32> -> vector<8x256xf32>
    %87 = vector.broadcast %52 : vector<8x1xf32> to vector<8x256xf32>
    %88 = arith.addf %86, %87 : vector<8x256xf32>
    %89 = arith.addf %32, %88 : vector<8x256xf32>
    %c1 = arith.constant 1 : index
    %c0_38 = arith.constant 0 : index
    %c0_39 = arith.constant 0 : index
    %90 = vector.load %arg5[%c1, %c0_38, %c0_39] : memref<2x32x8xf32, #tpu.memory_space<vmem>>, vector<1x32x8xf32>
    %91 = vector.shape_cast %90 : vector<1x32x8xf32> to vector<32x8xf32>
    %cst_40 = arith.constant dense<0.000000e+00> : vector<32x256xf32>
    %92 = tpu.matmul %91, %89, %cst_40 {dimension_numbers = #tpu.dot_dimension_numbers<[1], [0], [0], [1], [0, 0, 1, 1], [], []>} : vector<32x8xf32>, vector<8x256xf32>, vector<32x256xf32> -> vector<32x256xf32>
    %c1_41 = arith.constant 1 : index
    %c0_42 = arith.constant 0 : index
    %c0_43 = arith.constant 0 : index
    %93 = vector.load %arg6[%c1_41, %c0_42, %c0_43] : memref<2x32x1xf32, #tpu.memory_space<vmem>>, vector<1x32x1xf32>
    %94 = vector.shape_cast %93 : vector<1x32x1xf32> to vector<32x1xf32>
    %95 = vector.broadcast %94 : vector<32x1xf32> to vector<32x256xf32>
    %96 = arith.addf %92, %95 : vector<32x256xf32>
    %cst_44 = arith.constant 0.000000e+00 : f32
    %97 = vector.broadcast %cst_44 : f32 to vector<32x256xf32>
    %98 = arith.maximumf %96, %97 : vector<32x256xf32>
    %c1_45 = arith.constant 1 : index
    %c0_46 = arith.constant 0 : index
    %c0_47 = arith.constant 0 : index
    %99 = vector.load %arg7[%c1_45, %c0_46, %c0_47] : memref<2x8x32xf32, #tpu.memory_space<vmem>>, vector<1x8x32xf32>
    %100 = vector.shape_cast %99 : vector<1x8x32xf32> to vector<8x32xf32>
    %cst_48 = arith.constant dense<0.000000e+00> : vector<8x256xf32>
    %101 = tpu.matmul %100, %98, %cst_48 {dimension_numbers = #tpu.dot_dimension_numbers<[1], [0], [0], [1], [0, 0, 1, 1], [], []>} : vector<8x32xf32>, vector<32x256xf32>, vector<8x256xf32> -> vector<8x256xf32>
    %c1_49 = arith.constant 1 : index
    %c0_50 = arith.constant 0 : index
    %c0_51 = arith.constant 0 : index
    %102 = vector.load %arg8[%c1_49, %c0_50, %c0_51] : memref<2x8x1xf32, #tpu.memory_space<vmem>>, vector<1x8x1xf32>
    %103 = vector.shape_cast %102 : vector<1x8x1xf32> to vector<8x1xf32>
    %104 = vector.broadcast %103 : vector<8x1xf32> to vector<8x256xf32>
    %105 = arith.addf %101, %104 : vector<8x256xf32>
    %c1_52 = arith.constant 1 : index
    %c0_53 = arith.constant 0 : index
    %c0_54 = arith.constant 0 : index
    %106 = vector.load %arg9[%c1_52, %c0_53, %c0_54] : memref<2x8x72xf32, #tpu.memory_space<vmem>>, vector<1x8x72xf32>
    %107 = vector.shape_cast %106 : vector<1x8x72xf32> to vector<8x72xf32>
    %c1_55 = arith.constant 1 : index
    %c0_56 = arith.constant 0 : index
    %c0_57 = arith.constant 0 : index
    %108 = vector.load %arg10[%c1_55, %c0_56, %c0_57] : memref<2x8x1xf32, #tpu.memory_space<vmem>>, vector<1x8x1xf32>
    %109 = vector.shape_cast %108 : vector<1x8x1xf32> to vector<8x1xf32>
    %c17_i32_58 = arith.constant 17 : i32
    %110 = tpu.dynamic_rotate %105 by %c17_i32_58 dim 1 : vector<8x256xf32>, i32 -> vector<8x256xf32>
    %111 = vector.extract_strided_slice %0 {offsets = [0, 0], sizes = [1, 256], strides = [1, 1]} : vector<9x256xf32> to vector<1x256xf32>
    %112 = vector.broadcast %111 : vector<1x256xf32> to vector<8x256xf32>
    %113 = arith.mulf %110, %112 : vector<8x256xf32>
    %c16_i32_59 = arith.constant 16 : i32
    %114 = tpu.dynamic_rotate %105 by %c16_i32_59 dim 1 : vector<8x256xf32>, i32 -> vector<8x256xf32>
    %115 = vector.extract_strided_slice %0 {offsets = [1, 0], sizes = [1, 256], strides = [1, 1]} : vector<9x256xf32> to vector<1x256xf32>
    %116 = vector.broadcast %115 : vector<1x256xf32> to vector<8x256xf32>
    %117 = arith.mulf %114, %116 : vector<8x256xf32>
    %c15_i32_60 = arith.constant 15 : i32
    %118 = tpu.dynamic_rotate %105 by %c15_i32_60 dim 1 : vector<8x256xf32>, i32 -> vector<8x256xf32>
    %119 = vector.extract_strided_slice %0 {offsets = [2, 0], sizes = [1, 256], strides = [1, 1]} : vector<9x256xf32> to vector<1x256xf32>
    %120 = vector.broadcast %119 : vector<1x256xf32> to vector<8x256xf32>
    %121 = arith.mulf %118, %120 : vector<8x256xf32>
    %c1_i32_61 = arith.constant 1 : i32
    %122 = tpu.dynamic_rotate %105 by %c1_i32_61 dim 1 : vector<8x256xf32>, i32 -> vector<8x256xf32>
    %123 = vector.extract_strided_slice %0 {offsets = [3, 0], sizes = [1, 256], strides = [1, 1]} : vector<9x256xf32> to vector<1x256xf32>
    %124 = vector.broadcast %123 : vector<1x256xf32> to vector<8x256xf32>
    %125 = arith.mulf %122, %124 : vector<8x256xf32>
    %c255_i32_62 = arith.constant 255 : i32
    %126 = tpu.dynamic_rotate %105 by %c255_i32_62 dim 1 : vector<8x256xf32>, i32 -> vector<8x256xf32>
    %127 = vector.extract_strided_slice %0 {offsets = [5, 0], sizes = [1, 256], strides = [1, 1]} : vector<9x256xf32> to vector<1x256xf32>
    %128 = vector.broadcast %127 : vector<1x256xf32> to vector<8x256xf32>
    %129 = arith.mulf %126, %128 : vector<8x256xf32>
    %c241_i32_63 = arith.constant 241 : i32
    %130 = tpu.dynamic_rotate %105 by %c241_i32_63 dim 1 : vector<8x256xf32>, i32 -> vector<8x256xf32>
    %131 = vector.extract_strided_slice %0 {offsets = [6, 0], sizes = [1, 256], strides = [1, 1]} : vector<9x256xf32> to vector<1x256xf32>
    %132 = vector.broadcast %131 : vector<1x256xf32> to vector<8x256xf32>
    %133 = arith.mulf %130, %132 : vector<8x256xf32>
    %c240_i32_64 = arith.constant 240 : i32
    %134 = tpu.dynamic_rotate %105 by %c240_i32_64 dim 1 : vector<8x256xf32>, i32 -> vector<8x256xf32>
    %135 = vector.extract_strided_slice %0 {offsets = [7, 0], sizes = [1, 256], strides = [1, 1]} : vector<9x256xf32> to vector<1x256xf32>
    %136 = vector.broadcast %135 : vector<1x256xf32> to vector<8x256xf32>
    %137 = arith.mulf %134, %136 : vector<8x256xf32>
    %c239_i32_65 = arith.constant 239 : i32
    %138 = tpu.dynamic_rotate %105 by %c239_i32_65 dim 1 : vector<8x256xf32>, i32 -> vector<8x256xf32>
    %139 = vector.extract_strided_slice %0 {offsets = [8, 0], sizes = [1, 256], strides = [1, 1]} : vector<9x256xf32> to vector<1x256xf32>
    %140 = vector.broadcast %139 : vector<1x256xf32> to vector<8x256xf32>
    %141 = arith.mulf %138, %140 : vector<8x256xf32>
    %142 = tpu.concatenate %113, %117, %121, %125, %105, %129, %133, %137, %141 in 0 : vector<8x256xf32>, vector<8x256xf32>, vector<8x256xf32>, vector<8x256xf32>, vector<8x256xf32>, vector<8x256xf32>, vector<8x256xf32>, vector<8x256xf32>, vector<8x256xf32> -> vector<72x256xf32>
    %cst_66 = arith.constant dense<0.000000e+00> : vector<8x256xf32>
    %143 = tpu.matmul %107, %142, %cst_66 {dimension_numbers = #tpu.dot_dimension_numbers<[1], [0], [0], [1], [0, 0, 1, 1], [], []>} : vector<8x72xf32>, vector<72x256xf32>, vector<8x256xf32> -> vector<8x256xf32>
    %144 = vector.broadcast %109 : vector<8x1xf32> to vector<8x256xf32>
    %145 = arith.addf %143, %144 : vector<8x256xf32>
    %146 = arith.addf %89, %145 : vector<8x256xf32>
    %c0_67 = arith.constant 0 : index
    %c0_68 = arith.constant 0 : index
    %147 = vector.load %arg11[%c0_67, %c0_68] : memref<2x72xf32, #tpu.memory_space<vmem>>, vector<2x72xf32>
    %c0_69 = arith.constant 0 : index
    %c0_70 = arith.constant 0 : index
    %148 = vector.load %arg12[%c0_69, %c0_70] : memref<2x1xf32, #tpu.memory_space<vmem>>, vector<2x1xf32>
    %c17_i32_71 = arith.constant 17 : i32
    %149 = tpu.dynamic_rotate %146 by %c17_i32_71 dim 1 : vector<8x256xf32>, i32 -> vector<8x256xf32>
    %150 = vector.extract_strided_slice %0 {offsets = [0, 0], sizes = [1, 256], strides = [1, 1]} : vector<9x256xf32> to vector<1x256xf32>
    %151 = vector.broadcast %150 : vector<1x256xf32> to vector<8x256xf32>
    %152 = arith.mulf %149, %151 : vector<8x256xf32>
    %c16_i32_72 = arith.constant 16 : i32
    %153 = tpu.dynamic_rotate %146 by %c16_i32_72 dim 1 : vector<8x256xf32>, i32 -> vector<8x256xf32>
    %154 = vector.extract_strided_slice %0 {offsets = [1, 0], sizes = [1, 256], strides = [1, 1]} : vector<9x256xf32> to vector<1x256xf32>
    %155 = vector.broadcast %154 : vector<1x256xf32> to vector<8x256xf32>
    %156 = arith.mulf %153, %155 : vector<8x256xf32>
    %c15_i32_73 = arith.constant 15 : i32
    %157 = tpu.dynamic_rotate %146 by %c15_i32_73 dim 1 : vector<8x256xf32>, i32 -> vector<8x256xf32>
    %158 = vector.extract_strided_slice %0 {offsets = [2, 0], sizes = [1, 256], strides = [1, 1]} : vector<9x256xf32> to vector<1x256xf32>
    %159 = vector.broadcast %158 : vector<1x256xf32> to vector<8x256xf32>
    %160 = arith.mulf %157, %159 : vector<8x256xf32>
    %c1_i32_74 = arith.constant 1 : i32
    %161 = tpu.dynamic_rotate %146 by %c1_i32_74 dim 1 : vector<8x256xf32>, i32 -> vector<8x256xf32>
    %162 = vector.extract_strided_slice %0 {offsets = [3, 0], sizes = [1, 256], strides = [1, 1]} : vector<9x256xf32> to vector<1x256xf32>
    %163 = vector.broadcast %162 : vector<1x256xf32> to vector<8x256xf32>
    %164 = arith.mulf %161, %163 : vector<8x256xf32>
    %c255_i32_75 = arith.constant 255 : i32
    %165 = tpu.dynamic_rotate %146 by %c255_i32_75 dim 1 : vector<8x256xf32>, i32 -> vector<8x256xf32>
    %166 = vector.extract_strided_slice %0 {offsets = [5, 0], sizes = [1, 256], strides = [1, 1]} : vector<9x256xf32> to vector<1x256xf32>
    %167 = vector.broadcast %166 : vector<1x256xf32> to vector<8x256xf32>
    %168 = arith.mulf %165, %167 : vector<8x256xf32>
    %c241_i32_76 = arith.constant 241 : i32
    %169 = tpu.dynamic_rotate %146 by %c241_i32_76 dim 1 : vector<8x256xf32>, i32 -> vector<8x256xf32>
    %170 = vector.extract_strided_slice %0 {offsets = [6, 0], sizes = [1, 256], strides = [1, 1]} : vector<9x256xf32> to vector<1x256xf32>
    %171 = vector.broadcast %170 : vector<1x256xf32> to vector<8x256xf32>
    %172 = arith.mulf %169, %171 : vector<8x256xf32>
    %c240_i32_77 = arith.constant 240 : i32
    %173 = tpu.dynamic_rotate %146 by %c240_i32_77 dim 1 : vector<8x256xf32>, i32 -> vector<8x256xf32>
    %174 = vector.extract_strided_slice %0 {offsets = [7, 0], sizes = [1, 256], strides = [1, 1]} : vector<9x256xf32> to vector<1x256xf32>
    %175 = vector.broadcast %174 : vector<1x256xf32> to vector<8x256xf32>
    %176 = arith.mulf %173, %175 : vector<8x256xf32>
    %c239_i32_78 = arith.constant 239 : i32
    %177 = tpu.dynamic_rotate %146 by %c239_i32_78 dim 1 : vector<8x256xf32>, i32 -> vector<8x256xf32>
    %178 = vector.extract_strided_slice %0 {offsets = [8, 0], sizes = [1, 256], strides = [1, 1]} : vector<9x256xf32> to vector<1x256xf32>
    %179 = vector.broadcast %178 : vector<1x256xf32> to vector<8x256xf32>
    %180 = arith.mulf %177, %179 : vector<8x256xf32>
    %181 = tpu.concatenate %152, %156, %160, %164, %146, %168, %172, %176, %180 in 0 : vector<8x256xf32>, vector<8x256xf32>, vector<8x256xf32>, vector<8x256xf32>, vector<8x256xf32>, vector<8x256xf32>, vector<8x256xf32>, vector<8x256xf32>, vector<8x256xf32> -> vector<72x256xf32>
    %cst_79 = arith.constant dense<0.000000e+00> : vector<2x256xf32>
    %182 = tpu.matmul %147, %181, %cst_79 {dimension_numbers = #tpu.dot_dimension_numbers<[1], [0], [0], [1], [0, 0, 1, 1], [], []>} : vector<2x72xf32>, vector<72x256xf32>, vector<2x256xf32> -> vector<2x256xf32>
    %183 = vector.broadcast %148 : vector<2x1xf32> to vector<2x256xf32>
    %184 = arith.addf %182, %183 : vector<2x256xf32>
    %c0_80 = arith.constant 0 : index
    %c0_81 = arith.constant 0 : index
    %185 = vector.load %arg13[%c0_80, %c0_81] : memref<256x512xf32, #tpu.memory_space<vmem>>, vector<256x512xf32>
    %cst_82 = arith.constant dense<0.000000e+00> : vector<1x512xf32>
    %186 = tpu.matmul %2, %185, %cst_82 {dimension_numbers = #tpu.dot_dimension_numbers<[1], [0], [0], [1], [0, 0, 1, 1], [], []>} : vector<1x256xf32>, vector<256x512xf32>, vector<1x512xf32> -> vector<1x512xf32>
    %187 = vector.extract_strided_slice %184 {offsets = [0, 0], sizes = [1, 256], strides = [1, 1]} : vector<2x256xf32> to vector<1x256xf32>
    %c0_83 = arith.constant 0 : index
    %c0_84 = arith.constant 0 : index
    %c0_85 = arith.constant 0 : index
    %188 = vector.load %arg14[%c0_83, %c0_84, %c0_85] : memref<2x256x512xf32, #tpu.memory_space<vmem>>, vector<1x256x512xf32>
    %189 = vector.shape_cast %188 : vector<1x256x512xf32> to vector<256x512xf32>
    %cst_86 = arith.constant dense<0.000000e+00> : vector<1x512xf32>
    %190 = tpu.matmul %187, %189, %cst_86 {dimension_numbers = #tpu.dot_dimension_numbers<[1], [0], [0], [1], [0, 0, 1, 1], [], []>} : vector<1x256xf32>, vector<256x512xf32>, vector<1x512xf32> -> vector<1x512xf32>
    %191 = arith.addf %186, %190 : vector<1x512xf32>
    %192 = vector.extract_strided_slice %184 {offsets = [1, 0], sizes = [1, 256], strides = [1, 1]} : vector<2x256xf32> to vector<1x256xf32>
    %c1_87 = arith.constant 1 : index
    %c0_88 = arith.constant 0 : index
    %c0_89 = arith.constant 0 : index
    %193 = vector.load %arg14[%c1_87, %c0_88, %c0_89] : memref<2x256x512xf32, #tpu.memory_space<vmem>>, vector<1x256x512xf32>
    %194 = vector.shape_cast %193 : vector<1x256x512xf32> to vector<256x512xf32>
    %cst_90 = arith.constant dense<0.000000e+00> : vector<1x512xf32>
    %195 = tpu.matmul %192, %194, %cst_90 {dimension_numbers = #tpu.dot_dimension_numbers<[1], [0], [0], [1], [0, 0, 1, 1], [], []>} : vector<1x256xf32>, vector<256x512xf32>, vector<1x512xf32> -> vector<1x512xf32>
    %196 = arith.addf %191, %195 : vector<1x512xf32>
    %cst_91 = arith.constant 0.000000e+00 : f32
    %cst_92 = arith.constant 1.000000e+00 : f32
    %197 = vector.broadcast %cst_91 : f32 to vector<1x512xf32>
    %198 = arith.maximumf %197, %196 : vector<1x512xf32>
    %199 = vector.broadcast %cst_92 : f32 to vector<1x512xf32>
    %200 = arith.minimumf %199, %198 : vector<1x512xf32>
    %c0_93 = arith.constant 0 : index
    %c0_94 = arith.constant 0 : index
    %c0_95 = arith.constant 0 : index
    %201 = vector.load %arg15[%c0_93, %c0_94, %c0_95] : memref<1x1x512xf32, #tpu.memory_space<vmem>>, vector<1x1x512xf32>
    %202 = vector.shape_cast %201 : vector<1x1x512xf32> to vector<1x512xf32>
    %203 = vector.shape_cast %200 : vector<1x512xf32> to vector<1x1x512xf32>
    tpu.vector_store %arg15[%c0_93, %c0_94, %c0_95], %203 {strides = array<i32>} : memref<1x1x512xf32, #tpu.memory_space<vmem>>, vector<1x1x512xf32>,
    return
  }
  func.func @transform_0(%arg0: i32) -> (i32, i32, i32) {
    %c0_i32 = arith.constant 0 : i32
    %c0_i32_0 = arith.constant 0 : i32
    %c0_i32_1 = arith.constant 0 : i32
    return %arg0, %c0_i32, %c0_i32_0 : i32, i32, i32
  }
  func.func @transform_1(%arg0: i32) -> (i32, i32) {
    %c0_i32 = arith.constant 0 : i32
    %c0_i32_0 = arith.constant 0 : i32
    %c0_i32_1 = arith.constant 0 : i32
    return %c0_i32, %c0_i32_0 : i32, i32
  }
  func.func @transform_2(%arg0: i32) -> (i32, i32) {
    %c0_i32 = arith.constant 0 : i32
    %c0_i32_0 = arith.constant 0 : i32
    %c0_i32_1 = arith.constant 0 : i32
    return %c0_i32, %c0_i32_0 : i32, i32
  }
  func.func @transform_3(%arg0: i32) -> (i32, i32) {
    %c0_i32 = arith.constant 0 : i32
    %c0_i32_0 = arith.constant 0 : i32
    %c0_i32_1 = arith.constant 0 : i32
    return %c0_i32, %c0_i32_0 : i32, i32
  }
  func.func @transform_4(%arg0: i32) -> (i32, i32, i32) {
    %c0_i32 = arith.constant 0 : i32
    %c0_i32_0 = arith.constant 0 : i32
    %c0_i32_1 = arith.constant 0 : i32
    %c0_i32_2 = arith.constant 0 : i32
    return %c0_i32, %c0_i32_0, %c0_i32_1 : i32, i32, i32
  }
  func.func @transform_5(%arg0: i32) -> (i32, i32, i32) {
    %c0_i32 = arith.constant 0 : i32
    %c0_i32_0 = arith.constant 0 : i32
    %c0_i32_1 = arith.constant 0 : i32
    %c0_i32_2 = arith.constant 0 : i32
    return %c0_i32, %c0_i32_0, %c0_i32_1 : i32, i32, i32
  }
  func.func @transform_6(%arg0: i32) -> (i32, i32, i32) {
    %c0_i32 = arith.constant 0 : i32
    %c0_i32_0 = arith.constant 0 : i32
    %c0_i32_1 = arith.constant 0 : i32
    %c0_i32_2 = arith.constant 0 : i32
    return %c0_i32, %c0_i32_0, %c0_i32_1 : i32, i32, i32
  }
  func.func @transform_7(%arg0: i32) -> (i32, i32, i32) {
    %c0_i32 = arith.constant 0 : i32
    %c0_i32_0 = arith.constant 0 : i32
    %c0_i32_1 = arith.constant 0 : i32
    %c0_i32_2 = arith.constant 0 : i32
    return %c0_i32, %c0_i32_0, %c0_i32_1 : i32, i32, i32
  }
  func.func @transform_8(%arg0: i32) -> (i32, i32, i32) {
    %c0_i32 = arith.constant 0 : i32
    %c0_i32_0 = arith.constant 0 : i32
    %c0_i32_1 = arith.constant 0 : i32
    %c0_i32_2 = arith.constant 0 : i32
    return %c0_i32, %c0_i32_0, %c0_i32_1 : i32, i32, i32
  }
  func.func @transform_9(%arg0: i32) -> (i32, i32, i32) {
    %c0_i32 = arith.constant 0 : i32
    %c0_i32_0 = arith.constant 0 : i32
    %c0_i32_1 = arith.constant 0 : i32
    %c0_i32_2 = arith.constant 0 : i32
    return %c0_i32, %c0_i32_0, %c0_i32_1 : i32, i32, i32
  }
  func.func @transform_10(%arg0: i32) -> (i32, i32) {
    %c0_i32 = arith.constant 0 : i32
    %c0_i32_0 = arith.constant 0 : i32
    %c0_i32_1 = arith.constant 0 : i32
    return %c0_i32, %c0_i32_0 : i32, i32
  }
  func.func @transform_11(%arg0: i32) -> (i32, i32) {
    %c0_i32 = arith.constant 0 : i32
    %c0_i32_0 = arith.constant 0 : i32
    %c0_i32_1 = arith.constant 0 : i32
    return %c0_i32, %c0_i32_0 : i32, i32
  }
  func.func @transform_12(%arg0: i32) -> (i32, i32) {
    %c0_i32 = arith.constant 0 : i32
    %c0_i32_0 = arith.constant 0 : i32
    %c0_i32_1 = arith.constant 0 : i32
    return %c0_i32, %c0_i32_0 : i32, i32
  }
  func.func @transform_13(%arg0: i32) -> (i32, i32, i32) {
    %c0_i32 = arith.constant 0 : i32
    %c0_i32_0 = arith.constant 0 : i32
    %c0_i32_1 = arith.constant 0 : i32
    %c0_i32_2 = arith.constant 0 : i32
    return %c0_i32, %c0_i32_0, %c0_i32_1 : i32, i32, i32
  }
  func.func @transform_14(%arg0: i32) -> (i32, i32, i32) {
    %c0_i32 = arith.constant 0 : i32
    %c0_i32_0 = arith.constant 0 : i32
    %c0_i32_1 = arith.constant 0 : i32
    return %arg0, %c0_i32, %c0_i32_0 : i32, i32, i32
  }
}

</mosaic_0001>

<bundles_post_ra>
// kernel: tpu_custom_call.1
= control target key start
LH: loop header
LB: loop body
LE: loop exit
PB: predicated region body
PF: predicated region fallthrough
CT: control target
= control target key end

     0   :  { %s4223_s0 = inlined_call_operand.vmem [shape: f32[2,1,256], index: 0, kind: input, shape index: {}]   ;;  %s4224_s1 = inlined_call_operand.vmem [shape: f32[9,256], index: 1, kind: input, shape index: {}]   ;;  %s4225_s2 = inlined_call_operand.vmem [shape: f32[8,9], index: 2, kind: input, shape index: {}]   ;;  %s4226_s3 = inlined_call_operand.vmem [shape: f32[8,1], index: 3, kind: input, shape index: {}]   ;;  %s4227_s4 = inlined_call_operand.vmem [shape: f32[2,32,8], index: 4, kind: input, shape index: {}]   ;;  %s4228_s5 = inlined_call_operand.vmem [shape: f32[2,32,1], index: 5, kind: input, shape index: {}]   ;;  %s4229_s6 = inlined_call_operand.vmem [shape: f32[2,8,32], index: 6, kind: input, shape index: {}]   ;;  %s4230_s7 = inlined_call_operand.vmem [shape: f32[2,8,1], index: 7, kind: input, shape index: {}]   ;;  %s4231_s8 = inlined_call_operand.vmem [shape: f32[2,8,72], index: 8, kind: input, shape index: {}]   ;;  %s4232_s9 = inlined_call_operand.vmem [shape: f32[2,8,1], index: 9, kind: input, shape index: {}]   ;;  %s4233_s10 = inlined_call_operand.vmem [shape: f32[2,72], index: 10, kind: input, shape index: {}]   ;;  %s4234_s11 = inlined_call_operand.vmem [shape: f32[2,1], index: 11, kind: input, shape index: {}]   ;;  %s4235_s12 = inlined_call_operand.hbm [shape: f32[256,512], index: 12, kind: input, shape index: {}]   ;;  %s4236_s13 = inlined_call_operand.hbm [shape: f32[2,256,512], index: 13, kind: input, shape index: {}]   ;;  %s4237_s14 = inlined_call_operand.hbm [shape: f32[2,1,512], index: 14, kind: output, shape index: {}]  }
   0x1   :  { %4258 = sst [smem:[#allocation18_spill]] %s4237_s14 }
   0x2   :  { %19 = vsyncpa [#allocation3], 0 }
   0x3   :  { %20 = vsyncpa [#allocation6], 0 }
   0x4   :  { %21 = vsyncpa [#allocation4], 0 }
   0x5   :  { %23 = vsyncpa [#allocation4 + $0x1], 0  ;;  %s3463_s29 = smov 0   ;;  %s3465_s30 = smov 0  }
   0x6   :  { %s3467_s15 = smov 0   ;;  %s3469_s16 = smov 0  }
   0x7 LB: > { %4259 = sst [smem:[#allocation11_spill]] %s3357_s29  ;;  %s3484_s17 = sadd.s32 4294967295, %s3369_s16   ;;  %s3369_s16 = sphi %s3469_s16, %s4286_s16   ;;  %s3365_s15 = sphi %s3467_s15, %s4288_s15   ;;  %s3361_s30 = sphi %s3465_s30, %s4290_s30   ;;  %s3357_s29 = sphi %s3463_s29, %s4289_s29  }
   0x8   : > { %4260 = sst [smem:[#allocation12_spill]] %s3365_s15  ;;  %s2661_s18 = sadd.s32 4294967294, %s3369_s16  }
   0x9   : > { %4261 = sst [smem:[#allocation13_spill]] %s3369_s16  ;;  %s3488_s19 = sadd.s32 1, %s3369_s16  }
   0xa   : > { %4262 = sst [smem:[#allocation14_spill]] %s3488_s19  ;;  %s335_s20 = sadd.s32 1, %s3365_s15 }
   0xb   : > { %s332_s21 = ssub.s32 %s3369_s16, %s3488_s19  ;;  %p345_p0 = scmp.ne.s32.totalorder %s3365_s15, %s3361_s30 }
   0xc   : > { %p333_p1 = scmp.eq.s32.totalorder %s332_s21, 0  ;;  %p346_p2 = scmp.eq.s32.totalorder %s3484_s17, 1 }
   0xd   : > { %p351_p3 = scmp.ne.s32.totalorder %s3361_s30, %s3357_s29  ;;  %p352_p4 = scmp.eq.s32.totalorder %s2661_s18, 1 }
   0xe   : > { %s3499_s22 = scalar_select %p333_p1, %s3365_s15, %s335_s20  }
   0xf   : > { %p3501_p5 = por %p346_p2, %p345_p0  ;;  %p3505_p6 = por %p352_p4, %p351_p3 }
  0x10   : > { %4263 = sst [smem:[#allocation15_spill]] %s3499_s22  ;;  %p2662_p7 = scmp.ge.s32.totalorder %s3369_s16, 1 }
  0x11   : > { %s4264_s23 = scalar_select %p3501_p5, 1, 0 }
  0x12   : > { %s4266_s24 = scalar_select %p3505_p6, 1, 0 }
  0x13   : > { %4265 = sst [smem:[#allocation16_spill]] %s4264_s23  ;;  %p359_p8 = scmp.lt.s32.totalorder %s3369_s16, 3 }
  0x14   : > { %4267 = sst [smem:[#allocation17_spill]] %s4266_s24  ;;  %p4243_p9 = scmp.eq.s32.totalorder %s3484_s17, 0 }
  0x15   : > { %p3512_p10 = pnand %p2662_p7, %p359_p8  ;;  %s3371_s26 = smov [#allocation2]  }
  0x16   : > { %s404_s27 = sshll.u32 %s3371_s26, 4  ;;  %s3372_s18 = smov [#allocation5]   ;;  %s405_s27 = int_to_ptr.vmem [resolvable:$true] %s404_s27 }
  0x17   : > { %s4268_s25 = scalar_select %p3512_p10, 1, 0 }
  0x18   : > { %p3177_p11 = pneg %p3512_p10  ;;  %s417_s20 = sshll.u32 %s3372_s18, 4  ;;  %s3524_s20 = int_to_ptr.vmem [resolvable:$true] %s417_s20 }
  0x19   : > { %s3243_s15 = scalar_lea.hbm %s4235_s12, 16384 }
  0x1a   : > { %p3520_p12 = pnand %p4243_p9, %p3177_p11  ;;  %p3244_p13 = scmp.ne.s32.totalorder %s4235_s12, %s3243_s15 }
  0x1b   : > { %p3250_p3 = scmp.lt.u32.totalorder %s3243_s15, %s4235_s12 }
  0x1c   : > { %p3245_p0 = pneg %p3520_p12 }
  0x1e   : > { %p3246_p1 = pnand %p3245_p0, %p3244_p13 }
  0x20   : > { %p3247_p2 = pneg %p3246_p1 }
  0x22   : > { %p3252_p4 = pnand %p3250_p3, %p3247_p2 }
  0x24   : > { %3255 = shalt.err (!%p3252_p4)
}
  0x25   : > { %s3256_s18 = scalar_lea.vmem %s405_s27, 16384  ;;  %p3264_p9 = scmp.lt.s32.totalorder %s405_s27, %s405_s27 }
  0x26   : > { %p3257_p7 = scmp.ne.s32.totalorder %s405_s27, %s3256_s18  ;;  %p3265_p6 = scmp.lt.s32.totalorder %s3256_s18, %s3256_s18 }
  0x28   : > { %p3259_p8 = pnand %p3257_p7, %p3245_p0  ;;  %p3266_p5 = por %p3265_p6, %p3264_p9 }
  0x2a   : > { %p3260_p11 = pneg %p3259_p8 }
  0x2c   : > { %p3267_p10 = pnand %p3266_p5, %p3260_p11 }
  0x2e   : > { %3270 = shalt.err (!%p3267_p10)
}
  0x2f   : > { %s3373_s19 = smov 512   ;;  %s3374_s22 = smov 32  }
  0x30   : > { %3180 = dma.hbm_to_vmem [thread:$0]  (!%p3520_p12), %s4235_s12, 16384, %s405_s27, [#allocation3], %s3373_s19, %s3373_s19, %s3374_s22  }
  0x31   : > { %s3271_s26 = scalar_lea.hbm %s4236_s13, 32768 }
  0x32   : > { %p3272_p13 = scmp.ne.s32.totalorder %s4236_s13, %s3271_s26  ;;  %p3278_p9 = scmp.lt.u32.totalorder %s3271_s26, %s4236_s13 }
  0x34   : > { %p3274_p5 = pnand %p3272_p13, %p3245_p0 }
  0x36   : > { %p3275_p6 = pneg %p3274_p5 }
  0x38   : > { %p3280_p10 = pnand %p3278_p9, %p3275_p6 }
  0x3a   : > { %3283 = shalt.err (!%p3280_p10)
}
  0x3b   : > { %s3284_s27 = scalar_lea.vmem %s3524_s20, 32768  ;;  %p3292_p4 = scmp.lt.s32.totalorder %s3524_s20, %s3524_s20 }
  0x3c   : > { %p3285_p1 = scmp.ne.s32.totalorder %s3524_s20, %s3284_s27  ;;  %p3293_p7 = scmp.lt.s32.totalorder %s3284_s27, %s3284_s27 }
  0x3e   : > { %p3287_p2 = pnand %p3285_p1, %p3245_p0  ;;  %p3294_p8 = por %p3293_p7, %p3292_p4 }
  0x40   : > { %p3288_p3 = pneg %p3287_p2 }
  0x42   : > { %p3295_p11 = pnand %p3294_p8, %p3288_p3 }
  0x44   : > { %3298 = shalt.err (!%p3295_p11)
}
  0x45   : > { %3183 = dma.hbm_to_vmem [thread:$0]  (!%p3520_p12), %s4236_s13, 32768, %s3524_s20, [#allocation6], %s3373_s19, %s3373_s19, %s3374_s22  }
  0x46   : > { %p4270_p13 = scmp.ne.s32.totalorder %s4268_s25, 0 }
  0x47   : > { %p4271_p5 = scmp.eq.s32.totalorder (!%p4270_p13), %s3484_s17, 0 }
  0x48   : > { %440 = sbr.rel (%p4270_p13) target bundleno = 2832 (0xb10), region = 76 }
  0x4f   : > { %3344 = dma.done.wait (%p4271_p5), [#allocation3], 16384   ;;  %p4272_p0 = pmov %p4271_p5 }
  0x51   : > { %3346 = vsyncadd (%p4272_p0), [#allocation3], 4294950912  ;;  %p4273_p6 = pmov %p4272_p0 }
  0x52   : > { %p4274_p9 = pmov %p4272_p0 }
  0x53   : > { %3348 = dma.done.wait (%p4273_p6), [#allocation6], 32768  }
  0x54   : > { %3350 = vsyncadd (%p4274_p9), [#allocation6], 4294934528  ;;  %p489_p10 = scmp.lt.s32.totalorder %s3484_s17, 1  ;;  %v501_v0 = vlaneseq  ;;  %s3375_s22 = smov 15   ;;  %v3381_v7 = vmov 0.0   ;;  %v3383_v8 = vmov 0  }
  0x55   : > { %s3376_s29 = smov 16   ;;  %s3377_s15 = smov 17   ;;  %747 = vmatprep.mubr.f32.mxu0 %v3381_v7  ;;  %859 = vmatprep.mubr.f32.mxu1 %v3381_v7  ;;  %v499_v9 = vld [vmem:[%s4226_s3] sm:$0xff]  ;;  %v760_v10 = vld [vmem:[%s4228_s5 + $0x10] sm:$0xff]  ;;  %v3657_v18 = vld [vmem:[%s4224_s1 + $0x8] sm:$0xff]  ;;  %vm647_vm5 = vcmask 1040384  }
  0x56   : > { %s490_s23 = scalar_select %p489_p10, %s3484_s17, 1  ;;  %v3586_v1 = vshrl.u32 %v501_v0, 7  ;;  %3241 = vset.pattern.permute.xlu0 %v3383_v8  ;;  %3242 = vset.pattern.permute.xlu1 %v3383_v8  ;;  %v893_v11 = vld [vmem:[%s4230_s7] sm:$0xff]  ;;  %v3647_v14 = vand.u32 127, %v501_v0  ;;  %v532_v22 = vrot.slane %v3657_v18, 1  ;;  %v545_v26 = vrot.slane %v3657_v18, 2 }
  0x57   : > { %s3378_s24 = smov 1   ;;  %s4256_s21 = smov 127   ;;  %v3652_v17 = vld [vmem:[%s4224_s1] sm:$0xff]  ;;  %v558_v28 = vrot.slane %v3657_v18, 3  ;;  %v571_v42 = vrot.slane %v3657_v18, 5  ;;  %v584_v54 = vrot.slane %v3657_v18, 6 }
  0x58   : > { %s2670_s25 = sshll.u32 %s490_s23, 1  ;;  %v3589_v2 = vsub.s32 0, %v3586_v1  ;;  %v3595_v3 = vsub.s32 1, %v3586_v1  ;;  %s4254_s26 = smov 113   ;;  %vm526_vm0 = vcmp.lt.s32.totalorder %v3647_v14, 16  ;;  %vm541_vm1 = vcmp.lt.s32.totalorder %v3647_v14, 15 }
  0x59   : > { %s492_s19 = scalar_lea.vmem %s4223_s0, %s2670_s25  ;;  %s4252_s18 = smov 112   ;;  %v531_v21 = vrot.slane %v3652_v17, 1  ;;  %vm517_vm2 = vcmp.lt.s32.totalorder %v3647_v14, 17  ;;  %vm554_vm3 = vcmp.lt.s32.totalorder %v3647_v14, 1  ;;  %v544_v25 = vrot.slane %v3652_v17, 2 }
  0x5a   : > { %v497_v4 = vld [vmem:[%s492_s19] sm:$0x3]  ;;  %s4250_s27 = smov 111   ;;  %v557_v27 = vrot.slane %v3652_v17, 3  ;;  %vm567_vm4 = vcmp.lt.s32.totalorder %v3647_v14, 127  ;;  %v570_v41 = vrot.slane %v3652_v17, 5 }
  0x5b   : > { %v3598_v5 = vrot.slane %v497_v4, %v3589_v2  ;;  %v3605_v6 = vrot.slane %v497_v4, %v3595_v3  ;;  %vm580_vm6 = vcmp.lt.s32.totalorder %v3647_v14, 113  ;;  %v583_v53 = vrot.slane %v3652_v17, 6  ;;  %s4277_s28 = smov 113   ;;  %s4278_s20 = smov 112  }
  0x5c   : > { %vm650_vm7 = vcmask 1041408   ;;  %vm593_vm8 = vcmp.lt.s32.totalorder %v3647_v14, 112  ;;  %vm653_vm9 = vcmask 1042432   ;;  %vm656_vm10 = vcmask 1043456   ;;  %s4280_s14 = sld [smem:[#allocation18_spill]] }
  0x5d   : > { %537 = vrot.lane.b32.xlu1 %v3598_v5, %s3375_s22  ;;  %522 = vrot.lane.b32.xlu0 %v3598_v5, %s3376_s29  ;;  %vm659_vm11 = vcmask 1044480   ;;  %vm606_vm12 = vcmp.lt.s32.totalorder %v3647_v14, 111  ;;  %vm662_vm13 = vcmask 1045504   ;;  %vm665_vm14 = vcmask 1046528   ;;  %v1840_v14 = vld [vmem:[#allocation5 + $0x50] sm:$0xff] }
  0x5e   : > { %vm3385_vm15 = vmmov 1  }
  0x61   : > { %539 = vrot.lane.b32.xlu1 %v3605_v6, %s3375_s22  ;;  %524 = vrot.lane.b32.xlu0 %v3605_v6, %s3376_s29 }
  0x65   : > { %513 = vrot.lane.b32.xlu1 %v3605_v6, %s3377_s15  ;;  %511 = vrot.lane.b32.xlu0 %v3598_v5, %s3377_s15 }
  0x69   : > { %552 = vrot.lane.b32.xlu1 %v3605_v6, %s3378_s24  ;;  %550 = vrot.lane.b32.xlu0 %v3598_v5, %s3378_s24 }
  0x6d   : > { %565 = vrot.lane.b32.xlu1 %v3605_v6, %s4256_s21  ;;  %563 = vrot.lane.b32.xlu0 %v3598_v5, %s4256_s21 }
  0x71   : > { %578 = vrot.lane.b32.xlu1 %v3605_v6, %s4254_s26  ;;  %576 = vrot.lane.b32.xlu0 %v3598_v5, %s4254_s26 }
  0x75   : > { %591 = vrot.lane.b32.xlu1 %v3605_v6, %s4252_s18  ;;  %589 = vrot.lane.b32.xlu0 %v3598_v5, %s4252_s18 }
  0x79   : > { %604 = vrot.lane.b32.xlu1 %v3605_v6, %s4250_s27  ;;  %602 = vrot.lane.b32.xlu0 %v3598_v5, %s4250_s27  ;;  %s4275_s27 = smov 111  }
  0x7d   : > { %670 = vperm.xlu0 %3241, %v499_v9  }
  0x81   : > { %774 = vperm.xlu0 %3241, %v760_v10  }
  0x85   : > { %896 = vperm.xlu0 %3241, %v893_v11  }
  0xcf   : > { %v538_v12 = vpop.permute.xlu1 %537  ;;  %v523_v13 = vpop.permute.xlu0 %522 }
  0xd3   : > { %v540_v15 = vpop.permute.xlu1 %539  ;;  %v525_v16 = vpop.permute.xlu0 %524 }
  0xd4   : > { %v527_v23 = vsel %vm526_vm0, %v523_v13, %v525_v16  ;;  %v528_v24 = vsel %vm526_vm0, %v525_v16, %v523_v13  ;;  %v542_v29 = vsel %vm541_vm1, %v538_v12, %v540_v15  ;;  %v543_v30 = vsel %vm541_vm1, %v540_v15, %v538_v12 }
  0xd5   : > { %v535_v35 = vmul.f32 %v531_v21, %v528_v24  ;;  %v536_v36 = vmul.f32 %v532_v22, %v527_v23  ;;  %v548_v43 = vmul.f32 %v544_v25, %v543_v30  ;;  %v549_v44 = vmul.f32 %v545_v26, %v542_v29 }
  0xd6   : > { %v596_v12 = vrot.slane %v3652_v17, 7  ;;  %v597_v13 = vrot.slane %v3657_v18, 7 }
  0xd7   : > { %v514_v19 = vpop.permute.xlu1 %513  ;;  %v512_v20 = vpop.permute.xlu0 %511  ;;  %v613_v49 = vrot.slane %v535_v35, 7  ;;  %v614_v50 = vrot.slane %v536_v36, 7  ;;  %v619_v63 = vrot.slane %v548_v43, 6  ;;  %v620_v4 = vrot.slane %v549_v44, 6 }
  0xd8   : > { %v518_v31 = vsel %vm517_vm2, %v512_v20, %v514_v19  ;;  %v519_v32 = vsel %vm517_vm2, %v514_v19, %v512_v20 }
  0xd9   : > { %v520_v39 = vmul.f32 %v519_v32, %v3652_v17  ;;  %v521_v40 = vmul.f32 %v518_v31, %v3657_v18  ;;  %v3718_v31 = vld [vmem:[%s4224_s1 + $0x10] sm:$0x1]  ;;  %v3723_v32 = vld [vmem:[%s4224_s1 + $0x18] sm:$0x1] }
  0xdb   : > { %v553_v33 = vpop.permute.xlu1 %552  ;;  %v551_v34 = vpop.permute.xlu0 %550  ;;  %v648_v55 = vsel %vm647_vm5, %v520_v39, %v613_v49  ;;  %v649_v56 = vsel %vm647_vm5, %v521_v40, %v614_v50 }
  0xdc   : > { %v555_v37 = vsel %vm554_vm3, %v551_v34, %v553_v33  ;;  %v556_v38 = vsel %vm554_vm3, %v553_v33, %v551_v34  ;;  %v651_v15 = vsel %vm650_vm7, %v648_v55, %v619_v63  ;;  %v652_v16 = vsel %vm650_vm7, %v649_v56, %v620_v4  ;;  %vm2706_vm7 = vmpackc.low %vm647_vm5, %vm3385_vm15  ;;  %v757_v63 = vld [vmem:[%s4227_s4 + $0x18] sm:$0xff] }
  0xdd   : > { %v561_v45 = vmul.f32 %v557_v27, %v556_v38  ;;  %v562_v46 = vmul.f32 %v558_v28, %v555_v37  ;;  %vm782_vm5 = vcmask 64512  }
  0xdf   : > { %v566_v47 = vpop.permute.xlu1 %565  ;;  %v564_v48 = vpop.permute.xlu0 %563  ;;  %v625_v57 = vrot.slane %v561_v45, 5  ;;  %v626_v58 = vrot.slane %v562_v46, 5 }
  0xe0   : > { %v568_v51 = vsel %vm567_vm4, %v564_v48, %v566_v47  ;;  %v569_v52 = vsel %vm567_vm4, %v566_v47, %v564_v48 }
  0xe1   : > { %v574_v59 = vmul.f32 %v570_v41, %v568_v51  ;;  %v575_v60 = vmul.f32 %v571_v42, %v569_v52  ;;  %v654_v23 = vsel %vm653_vm9, %v651_v15, %v625_v57  ;;  %v655_v24 = vsel %vm653_vm9, %v652_v16, %v626_v58  ;;  %v498_v51 = vld [vmem:[%s4225_s2] sm:$0xff] }
  0xe2   : > { %v658_v33 = vsel %vm656_vm10, %v655_v24, %v3605_v6  ;;  %v657_v34 = vsel %vm656_vm10, %v654_v23, %v3598_v5  ;;  %vm673_vm9 = vcmask 72704   ;;  %v758_v52 = vld [vmem:[%s4228_s5] sm:$0xff]  ;;  %vm899_vm10 = vcmask 261120  }
  0xe3   : > { %v579_v61 = vpop.permute.xlu1 %578  ;;  %v577_v62 = vpop.permute.xlu0 %576  ;;  %v631_v19 = vrot.slane %v574_v59, 3  ;;  %v632_v20 = vrot.slane %v575_v60, 3  ;;  %764 = vperm.xlu1 %3242, %v758_v52   ;;  %v754_v60 = vld [vmem:[%s4227_s4] sm:$0xff]  ;;  %v2685_v52 = vld [vmem:[%s4228_s5 + $0x28] sm:$0xff] }
  0xe4   : > { %v581_v8 = vsel %vm580_vm6, %v577_v62, %v579_v61  ;;  %v582_v9 = vsel %vm580_vm6, %v579_v61, %v577_v62  ;;  %v755_v61 = vld [vmem:[%s4227_s4 + $0x8] sm:$0xff]  ;;  %v756_v62 = vld [vmem:[%s4227_s4 + $0x10] sm:$0xff] }
  0xe5   : > { %v587_v10 = vmul.f32 %v583_v53, %v581_v8  ;;  %v588_v11 = vmul.f32 %v584_v54, %v582_v9  ;;  %v661_v39 = vsel %vm659_vm11, %v658_v33, %v632_v20  ;;  %v660_v40 = vsel %vm659_vm11, %v657_v34, %v631_v19  ;;  %v759_v53 = vld [vmem:[%s4228_s5 + $0x8] sm:$0xff]  ;;  %v761_v54 = vld [vmem:[%s4228_s5 + $0x18] sm:$0xff] }
  0xe6   : > { %vm1109_vm11 = vcmask 588800  }
  0xe7   : > { %v592_v21 = vpop.permute.xlu1 %591  ;;  %v590_v22 = vpop.permute.xlu0 %589  ;;  %v637_v25 = vrot.slane %v587_v10, 2  ;;  %v638_v26 = vrot.slane %v588_v11, 2  ;;  %769 = vperm.xlu1 %3242, %v759_v53   ;;  %v2686_v53 = vld [vmem:[%s4228_s5 + $0x30] sm:$0xff] }
  0xe8   : > { %v594_v27 = vsel %vm593_vm8, %v590_v22, %v592_v21  ;;  %v595_v28 = vsel %vm593_vm8, %v592_v21, %v590_v22 }
  0xe9   : > { %v600_v29 = vmul.f32 %v596_v12, %v594_v27  ;;  %v601_v30 = vmul.f32 %v597_v13, %v595_v28  ;;  %v664_v43 = vsel %vm662_vm13, %v661_v39, %v638_v26  ;;  %v663_v44 = vsel %vm662_vm13, %v660_v40, %v637_v25 }
  0xeb   : > { %v643_v35 = vrot.slane %v600_v29, 1  ;;  %v644_v36 = vrot.slane %v601_v30, 1  ;;  %v605_v37 = vpop.permute.xlu1 %604  ;;  %v603_v38 = vpop.permute.xlu0 %602  ;;  %779 = vperm.xlu1 %3242, %v761_v54   ;;  %v2687_v54 = vld [vmem:[%s4228_s5 + $0x38] sm:$0xff] }
  0xec   : > { %v607_v41 = vsel %vm606_vm12, %v603_v38, %v605_v37  ;;  %v608_v42 = vsel %vm606_vm12, %v605_v37, %v603_v38 }
  0xed   : > { %v609_v45 = vmul.f32 %v607_v41, %v3718_v31  ;;  %v610_v46 = vmul.f32 %v608_v42, %v3723_v32  ;;  %v667_v47 = vsel %vm665_vm14, %v664_v43, %v644_v36  ;;  %v666_v48 = vsel %vm665_vm14, %v663_v44, %v643_v35  ;;  %v892_v44 = vld [vmem:[%s4229_s6] sm:$0xff] }
  0xef   : > { %v2705_v49 = vpack.c.bf16 %v610_v46, %v667_v47  ;;  %v2708_v50 = vpack.c.bf16 %v609_v45, %v666_v48 }
  0xf1   : > { %2707 = vmatprep.subr.msk.bf16.mxu0 %vm2706_vm7, %v2705_v49 }
  0xf2   : > { %2710 = vmatpush1.bf16.msk.msra.mxu0 %vm2706_vm7, %v2708_v50  ;;  %v975_v50 = vld [vmem:[%s4232_s9] sm:$0xff] }
  0xf5   : > { %2673 = vmatmul.mubr.msk.f32.vlgmr.msra.gmra.mrb[0].mxu0 %vm673_vm9, %v498_v51  ;;  %v2684_v51 = vld [vmem:[%s4228_s5 + $0x20] sm:$0xff] }
  0xf6   : > { %967 = vmatprep.mubr.f32.mxu0 %v3381_v7 }
  0xfc   : > { %v671_v56 = vpop.permute.xlu0 %670 }
 0x100   : > { %v775_v27 = vpop.permute.xlu0 %774 }
 0x104   : > { %v897_v45 = vpop.permute.xlu0 %896 }
 0x162   : > { %v765_v4 = vpop.permute.xlu1 %764 }
 0x166   : > { %v770_v11 = vpop.permute.xlu1 %769 }
 0x16a   : > { %v780_v30 = vpop.permute.xlu1 %779 }
 0x1c8   : > { %v749_v55 = vpop.f32.mrb[0].mxu0 }
 0x1c9   : > { %v751_v57 = vpop.f32.mrb[1].mxu0  ;;  %v3753_v59 = vadd.f32 %v749_v55, %v671_v56  ;;  %v2693_v55 = vld [vmem:[%s4230_s7 + $0x8] sm:$0xff] }
 0x1ca   : > { %v3751_v58 = vadd.f32 %v751_v57, %v671_v56 }
 0x1cc   : > { %795 = vmatprep.subr.mxu1 %v3751_v58 }
 0x1cd   : > { %796 = vmatpush1.msra.mxu1 %v3753_v59 }
 0x1ce   : > { %2674 = vmatmul.mubr.msk.f32.vlgmr.msra.gmra.mrb[0].mxu1 %vm782_vm5, %v754_v60  ;;  %v3838_v60 = vrot.slane %v3652_v17, %v3589_v2 }
 0x1cf   : > { %865 = vmatprep.mubr.f32.mxu1 %v3381_v7 }
 0x1d2   : > { %2675 = vmatmul.mubr.msk.f32.gmra.mrb[2].mxu1 %vm782_vm5, %v755_v61  ;;  %v3842_v61 = vrot.slane %v3657_v18, %v3589_v2 }
 0x1d3   : > { %871 = vmatprep.mubr.f32.mxu1 %v3381_v7 }
 0x1d6   : > { %2676 = vmatmul.mubr.msk.f32.gmra.mrb[4].mxu1 %vm782_vm5, %v756_v62  ;;  %v3846_v62 = vrot.slane %v3652_v17, %v3595_v3 }
 0x1d7   : > { %877 = vmatprep.mubr.f32.mxu1 %v3381_v7 }
 0x1da   : > { %2677 = vmatmul.mubr.msk.f32.gmra.mrb[6].mxu1 %vm782_vm5, %v757_v63  ;;  %v3850_v63 = vrot.slane %v3657_v18, %v3595_v3 }
 0x1db   : > { %1177 = vmatprep.mubr.f32.mxu1 %v3381_v7 }
 0x2a1   : > { %v861_v8 = vpop.f32.mrb[0].mxu1 }
 0x2a2   : > { %v863_v9 = vpop.f32.mrb[1].mxu1  ;;  %v862_v10 = vadd.f32 %v861_v8, %v765_v4 }
 0x2a3   : > { %v864_v12 = vadd.f32 %v863_v9, %v765_v4 }
 0x2a4   : > { %v884_v20 = vmax.f32 %v862_v10, 0.0 }
 0x2a5   : > { %v867_v13 = vpop.f32.mrb[2].mxu1  ;;  %v885_v22 = vmax.f32 %v864_v12, 0.0 }
 0x2a6   : > { %v868_v15 = vadd.f32 %v867_v13, %v770_v11  ;;  %v869_v16 = vpop.f32.mrb[3].mxu1  ;;  %v1016_v13 = vsub.s32 2, %v3586_v1 }
 0x2a7   : > { %v870_v19 = vadd.f32 %v869_v16, %v770_v11 }
 0x2a8   : > { %v886_v21 = vmax.f32 %v868_v15, 0.0  ;;  %v1032_v15 = vsub.s32 3, %v3586_v1 }
 0x2a9   : > { %v887_v23 = vmax.f32 %v870_v19, 0.0  ;;  %v873_v24 = vpop.f32.mrb[4].mxu1 }
 0x2aa   : > { %v2713_v25 = vpack.c.bf16 %v886_v21, %v884_v20  ;;  %v875_v26 = vpop.f32.mrb[5].mxu1  ;;  %v874_v29 = vadd.f32 %v873_v24, %v775_v27 }
 0x2ab   : > { %v2711_v28 = vpack.c.bf16 %v887_v23, %v885_v22  ;;  %v876_v33 = vadd.f32 %v875_v26, %v775_v27  ;;  %v3868_v26 = vrot.slane %v3652_v17, %v1016_v13  ;;  %v3871_v27 = vrot.slane %v3657_v18, %v1016_v13 }
 0x2ac   : > { %v888_v38 = vmax.f32 %v874_v29, 0.0  ;;  %v3877_v29 = vrot.slane %v3657_v18, %v1032_v15 }
 0x2ad   : > { %v879_v34 = vpop.f32.mrb[6].mxu1  ;;  %2712 = vmatprep.subr.bf16.mxu0 %v2711_v28  ;;  %v889_v40 = vmax.f32 %v876_v33, 0.0  ;;  %v3874_v28 = vrot.slane %v3652_v17, %v1032_v15 }
 0x2ae   : > { %v880_v35 = vadd.f32 %v879_v34, %v780_v30  ;;  %v881_v36 = vpop.f32.mrb[7].mxu1  ;;  %2714 = vmatpush1.bf16.msra.mxu0 %v2713_v25  ;;  %v1048_v25 = vsub.s32 5, %v3586_v1 }
 0x2af   : > { %v882_v37 = vadd.f32 %v881_v36, %v780_v30 }
 0x2b0   : > { %v890_v39 = vmax.f32 %v880_v35, 0.0 }
 0x2b1   : > { %v891_v41 = vmax.f32 %v882_v37, 0.0 }
 0x2b2   : > { %v2717_v42 = vpack.c.bf16 %v890_v39, %v888_v38  ;;  %v3888_v38 = vrot.slane %v3652_v17, %v1048_v25  ;;  %v3891_v39 = vrot.slane %v3657_v18, %v1048_v25 }
 0x2b3   : > { %v2715_v43 = vpack.c.bf16 %v891_v41, %v889_v40 }
 0x2b5   : > { %2716 = vmatprep.subr.bf16.mxu0 %v2715_v43 }
 0x2b6   : > { %2718 = vmatpush1.bf16.msra.mxu0 %v2717_v42 }
 0x2b9   : > { %2678 = vmatmul.mubr.msk.f32.vlgmr.msra.gmra.mrb[2].mxu0 %vm899_vm10, %v892_v44 }
 0x2ba   : > { %1292 = vmatprep.mubr.f32.mxu0 %v3381_v7 }
 0x38c   : > { %v969_v46 = vpop.f32.mrb[2].mxu0 }
 0x38d   : > { %v3782_v47 = vadd.f32 %v969_v46, %v897_v45  ;;  %v971_v48 = vpop.f32.mrb[3].mxu0 }
 0x38e   : > { %v3784_v49 = vadd.f32 %v971_v48, %v897_v45 }
 0x38f   : > { %976 = vrot.lane.b32.xlu1 %v3782_v47, %s3377_s15 }
 0x390   : > { %978 = vrot.lane.b32.xlu0 %v3784_v49, %s3377_s15 }
 0x393   : > { %992 = vrot.lane.b32.xlu1 %v3782_v47, %s3376_s29 }
 0x394   : > { %994 = vrot.lane.b32.xlu0 %v3784_v49, %s3376_s29 }
 0x397   : > { %1008 = vrot.lane.b32.xlu1 %v3782_v47, %s3375_s22 }
 0x398   : > { %1010 = vrot.lane.b32.xlu0 %v3784_v49, %s3375_s22 }
 0x39b   : > { %1024 = vrot.lane.b32.xlu1 %v3782_v47, %s3378_s24 }
 0x39c   : > { %1026 = vrot.lane.b32.xlu0 %v3784_v49, %s3378_s24 }
 0x39f   : > { %1040 = vrot.lane.b32.xlu1 %v3782_v47, %s4256_s21 }
 0x3a0   : > { %1042 = vrot.lane.b32.xlu0 %v3784_v49, %s4256_s21  ;;  %s4279_s21 = sld [smem:[#allocation16_spill]] }
 0x3a3   : > { %1056 = vrot.lane.b32.xlu1 %v3782_v47, %s4254_s26 }
 0x3a4   : > { %1058 = vrot.lane.b32.xlu0 %v3784_v49, %s4254_s26  ;;  %s2704_s26 = sshll.u32 %s3484_s17, 6  ;;  %s3387_s17 = smov [#allocation7]  }
 0x3a5   : > { %s4181_s16 = scalar_lea.hbm %s4280_s14, %s2704_s26 }
 0x3a6   : > { %p4281_p1 = scmp.ne.s32.totalorder %s4279_s21, 0 }
 0x3a7   : > { %1072 = vrot.lane.b32.xlu1 %v3782_v47, %s4252_s18 }
 0x3a8   : > { %1074 = vrot.lane.b32.xlu0 %v3784_v49, %s4252_s18  ;;  %s4276_s18 = smov 127  }
 0x3ab   : > { %1088 = vrot.lane.b32.xlu1 %v3782_v47, %s4275_s27 }
 0x3ac   : > { %1090 = vrot.lane.b32.xlu0 %v3784_v49, %s4275_s27 }
 0x3af   : > { %1106 = vperm.xlu1 %3242, %v975_v50  }
 0x3b0   : > { %1198 = vperm.xlu0 %3241, %v2684_v51  }
 0x3b3   : > { %1203 = vperm.xlu1 %3242, %v2685_v52  }
 0x3b4   : > { %1208 = vperm.xlu0 %3241, %v2686_v53  }
 0x3b7   : > { %1213 = vperm.xlu1 %3242, %v2687_v54   ;;  %v1064_v54 = vsub.s32 6, %v3586_v1 }
 0x3b8   : > { %1331 = vperm.xlu0 %3241, %v2693_v55   ;;  %v1080_v55 = vsub.s32 7, %v3586_v1 }
 0x401   : > { %v977_v56 = vpop.permute.xlu1 %976 }
 0x402   : > { %v979_v57 = vpop.permute.xlu0 %978 }
 0x403   : > { %v980_v4 = vsel %vm517_vm2, %v977_v56, %v979_v57  ;;  %v981_v8 = vsel %vm517_vm2, %v979_v57, %v977_v56 }
 0x404   : > { %v990_v3 = vmul.f32 %v3838_v60, %v981_v8  ;;  %v991_v16 = vmul.f32 %v3842_v61, %v980_v4 }
 0x405   : > { %v993_v9 = vpop.permute.xlu1 %992 }
 0x406   : > { %v995_v10 = vpop.permute.xlu0 %994 }
 0x407   : > { %v996_v11 = vsel %vm526_vm0, %v993_v9, %v995_v10  ;;  %v997_v12 = vsel %vm526_vm0, %v995_v10, %v993_v9  ;;  %v3908_v9 = vrot.slane %v3652_v17, %v1064_v54  ;;  %v3911_v10 = vrot.slane %v3657_v18, %v1064_v54 }
 0x408   : > { %v1006_v19 = vmul.f32 %v3846_v62, %v997_v12  ;;  %v1007_v20 = vmul.f32 %v3850_v63, %v996_v11  ;;  %v3914_v11 = vrot.slane %v3652_v17, %v1080_v55  ;;  %v3917_v12 = vrot.slane %v3657_v18, %v1080_v55 }
 0x409   : > { %v1009_v21 = vpop.permute.xlu1 %1008 }
 0x40a   : > { %v2721_v22 = vpack.c.bf16 %v1006_v19, %v990_v3  ;;  %v1011_v23 = vpop.permute.xlu0 %1010  ;;  %v2719_v24 = vpack.c.bf16 %v1007_v20, %v991_v16  ;;  %v3925_v3 = vrot.slane %v3723_v32, %v3589_v2  ;;  %v3937_v32 = vrot.slane %v3718_v31, %v3589_v2 }
 0x40b   : > { %v1012_v30 = vsel %vm541_vm1, %v1009_v21, %v1011_v23  ;;  %v1013_v33 = vsel %vm541_vm1, %v1011_v23, %v1009_v21 }
 0x40c   : > { %2720 = vmatprep.subr.bf16.mxu1 %v2719_v24  ;;  %v1022_v40 = vmul.f32 %v3868_v26, %v1013_v33  ;;  %v1023_v41 = vmul.f32 %v3871_v27, %v1012_v30 }
 0x40d   : > { %2722 = vmatpush1.bf16.msra.mxu1 %v2721_v22  ;;  %v1025_v34 = vpop.permute.xlu1 %1024 }
 0x40e   : > { %v1027_v35 = vpop.permute.xlu0 %1026 }
 0x40f   : > { %v1028_v36 = vsel %vm554_vm3, %v1025_v34, %v1027_v35  ;;  %v1029_v37 = vsel %vm554_vm3, %v1027_v35, %v1025_v34 }
 0x410   : > { %v1038_v42 = vmul.f32 %v3874_v28, %v1029_v37  ;;  %v1039_v43 = vmul.f32 %v3877_v29, %v1028_v36  ;;  %v974_v36 = vld [vmem:[%s4231_s8] sm:$0xff] }
 0x411   : > { %v1041_v44 = vpop.permute.xlu1 %1040 }
 0x412   : > { %v2725_v45 = vpack.c.bf16 %v1038_v42, %v1022_v40  ;;  %v1043_v46 = vpop.permute.xlu0 %1042  ;;  %v2723_v48 = vpack.c.bf16 %v1039_v43, %v1023_v41 }
 0x413   : > { %v1044_v50 = vsel %vm567_vm4, %v1041_v44, %v1043_v46  ;;  %v1045_v51 = vsel %vm567_vm4, %v1043_v46, %v1041_v44  ;;  %v2680_v44 = vld [vmem:[%s4227_s4 + $0x20] sm:$0xff] }
 0x414   : > { %v1054_v52 = vmul.f32 %v3888_v38, %v1044_v50  ;;  %v1055_v53 = vmul.f32 %v3891_v39, %v1045_v51  ;;  %2724 = vmatprep.subr.bf16.mxu1 %v2723_v48 }
 0x415   : > { %2726 = vmatpush1.bf16.msra.mxu1 %v2725_v45  ;;  %v1057_v56 = vpop.permute.xlu1 %1056  ;;  %v2683_v45 = vld [vmem:[%s4227_s4 + $0x38] sm:$0xff] }
 0x416   : > { %v2729_v57 = vpack.c.bf16 %v1054_v52, %v3782_v47  ;;  %v1059_v4 = vpop.permute.xlu0 %1058  ;;  %v2727_v8 = vpack.c.bf16 %v1055_v53, %v3784_v49 }
 0x417   : > { %v1060_v13 = vsel %vm580_vm6, %v1057_v56, %v1059_v4  ;;  %v1061_v47 = vsel %vm580_vm6, %v1059_v4, %v1057_v56 }
 0x418   : > { %2728 = vmatprep.subr.bf16.mxu1 %v2727_v8  ;;  %v1070_v16 = vmul.f32 %v3908_v9, %v1060_v13  ;;  %v1071_v19 = vmul.f32 %v3911_v10, %v1061_v47 }
 0x419   : > { %2730 = vmatpush1.bf16.msra.mxu1 %v2729_v57  ;;  %v1073_v49 = vpop.permute.xlu1 %1072 }
 0x41a   : > { %v1075_v15 = vpop.permute.xlu0 %1074 }
 0x41b   : > { %v1076_v17 = vsel %vm593_vm8, %v1073_v49, %v1075_v15  ;;  %v1077_v18 = vsel %vm593_vm8, %v1075_v15, %v1073_v49 }
 0x41c   : > { %v1086_v20 = vmul.f32 %v3914_v11, %v1076_v17  ;;  %v1087_v21 = vmul.f32 %v3917_v12, %v1077_v18 }
 0x41d   : > { %v1089_v22 = vpop.permute.xlu1 %1088 }
 0x41e   : > { %v2733_v23 = vpack.c.bf16 %v1086_v20, %v1070_v16  ;;  %v1091_v24 = vpop.permute.xlu0 %1090  ;;  %v2731_v25 = vpack.c.bf16 %v1087_v21, %v1071_v19 }
 0x41f   : > { %v1093_v30 = vsel %vm606_vm12, %v1091_v24, %v1089_v22  ;;  %v1092_v33 = vsel %vm606_vm12, %v1089_v22, %v1091_v24 }
 0x420   : > { %v1103_v34 = vmul.f32 %v3925_v3, %v1093_v30  ;;  %2732 = vmatprep.subr.bf16.mxu1 %v2731_v25  ;;  %v1102_v35 = vmul.f32 %v3937_v32, %v1092_v33 }
 0x421   : > { %2734 = vmatpush1.bf16.msra.mxu1 %v2733_v23 }
 0x422   : > { %1129 = vmatprep.subr.mxu1 %v1103_v34 }
 0x425   : > { %1130 = vmatpush1.msra.mxu1 %v1102_v35 }
 0x426   : > { %2679 = vmatmul.mubr.msk.f32.vlgmr.msra.gmra.mrb[8].mxu1 %vm1109_vm11, %v974_v36 }
 0x427   : > { %1401 = vmatprep.mubr.f32.mxu1 %v3381_v7 }
 0x42e   : > { %v1107_v2 = vpop.permute.xlu1 %1106 }
 0x42f   : > { %v1199_v50 = vpop.permute.xlu0 %1198 }
 0x432   : > { %v1204_v52 = vpop.permute.xlu1 %1203 }
 0x433   : > { %v1209_v18 = vpop.permute.xlu0 %1208 }
 0x436   : > { %v1214_v20 = vpop.permute.xlu1 %1213 }
 0x4f9   : > { %v1179_v31 = vpop.f32.mrb[8].mxu1 }
 0x4fa   : > { %v1180_v37 = vadd.f32 %v1179_v31, %v1107_v2  ;;  %v1181_v40 = vpop.f32.mrb[9].mxu1  ;;  %v2692_v31 = vld [vmem:[%s4229_s6 + $0x8] sm:$0xff] }
 0x4fb   : > { %v1182_v41 = vadd.f32 %v1181_v40, %v1107_v2 }
 0x4fc   : > { %v3954_v43 = vadd.f32 %v1180_v37, %v3753_v59  ;;  %v2682_v59 = vld [vmem:[%s4227_s4 + $0x30] sm:$0xff]  ;;  %v1332_v37 = vpop.permute.xlu0 %1331 }
 0x4fd   : > { %v3951_v42 = vadd.f32 %v1182_v41, %v3751_v58  ;;  %v2681_v58 = vld [vmem:[%s4227_s4 + $0x28] sm:$0xff] }
 0x4ff   : > { %1228 = vmatprep.subr.mxu0 %v3951_v42 }
 0x500   : > { %1229 = vmatpush1.msra.mxu0 %v3954_v43 }
 0x501   : > { %2688 = vmatmul.mubr.msk.f32.vlgmr.msra.gmra.mrb[4].mxu0 %vm782_vm5, %v2680_v44 }
 0x502   : > { %1298 = vmatprep.mubr.f32.mxu0 %v3381_v7 }
 0x505   : > { %2689 = vmatmul.mubr.msk.f32.gmra.mrb[6].mxu0 %vm782_vm5, %v2681_v58 }
 0x506   : > { %1304 = vmatprep.mubr.f32.mxu0 %v3381_v7 }
 0x509   : > { %2690 = vmatmul.mubr.msk.f32.gmra.mrb[8].mxu0 %vm782_vm5, %v2682_v59 }
 0x50a   : > { %1310 = vmatprep.mubr.f32.mxu0 %v3381_v7 }
 0x50d   : > { %2691 = vmatmul.mubr.msk.f32.gmra.mrb[10].mxu0 %vm782_vm5, %v2683_v45 }
 0x50e   : > { %1548 = vmatprep.mubr.f32.mxu0 %v3381_v7 }
 0x5d4   : > { %v1294_v46 = vpop.f32.mrb[4].mxu0 }
 0x5d5   : > { %v1296_v48 = vpop.f32.mrb[5].mxu0  ;;  %v1295_v51 = vadd.f32 %v1294_v46, %v1199_v50 }
 0x5d6   : > { %v1297_v53 = vadd.f32 %v1296_v48, %v1199_v50 }
 0x5d7   : > { %v1317_v4 = vmax.f32 %v1295_v51, 0.0 }
 0x5d8   : > { %v1300_v54 = vpop.f32.mrb[6].mxu0  ;;  %v1318_v13 = vmax.f32 %v1297_v53, 0.0 }
 0x5d9   : > { %v1301_v55 = vadd.f32 %v1300_v54, %v1204_v52  ;;  %v1302_v56 = vpop.f32.mrb[7].mxu0 }
 0x5da   : > { %v1303_v57 = vadd.f32 %v1302_v56, %v1204_v52 }
 0x5db   : > { %v1319_v8 = vmax.f32 %v1301_v55, 0.0 }
 0x5dc   : > { %v1320_v47 = vmax.f32 %v1303_v57, 0.0  ;;  %v1306_v49 = vpop.f32.mrb[8].mxu0 }
 0x5dd   : > { %v2737_v15 = vpack.c.bf16 %v1319_v8, %v1317_v4  ;;  %v1308_v17 = vpop.f32.mrb[9].mxu0  ;;  %v1307_v19 = vadd.f32 %v1306_v49, %v1209_v18 }
 0x5de   : > { %v2735_v16 = vpack.c.bf16 %v1320_v47, %v1318_v13  ;;  %v1309_v21 = vadd.f32 %v1308_v17, %v1209_v18 }
 0x5df   : > { %v1321_v30 = vmax.f32 %v1307_v19, 0.0 }
 0x5e0   : > { %v1312_v22 = vpop.f32.mrb[10].mxu0  ;;  %2736 = vmatprep.subr.bf16.mxu1 %v2735_v16  ;;  %v1322_v34 = vmax.f32 %v1309_v21, 0.0 }
 0x5e1   : > { %v1313_v23 = vadd.f32 %v1312_v22, %v1214_v20  ;;  %v1314_v24 = vpop.f32.mrb[11].mxu0  ;;  %2738 = vmatpush1.bf16.msra.mxu1 %v2737_v15 }
 0x5e2   : > { %v1315_v25 = vadd.f32 %v1314_v24, %v1214_v20 }
 0x5e3   : > { %v1323_v33 = vmax.f32 %v1313_v23, 0.0 }
 0x5e4   : > { %v1324_v35 = vmax.f32 %v1315_v25, 0.0 }
 0x5e5   : > { %v2741_v36 = vpack.c.bf16 %v1323_v33, %v1321_v30 }
 0x5e6   : > { %v2739_v2 = vpack.c.bf16 %v1324_v35, %v1322_v34 }
 0x5e8   : > { %2740 = vmatprep.subr.bf16.mxu1 %v2739_v2 }
 0x5e9   : > { %2742 = vmatpush1.bf16.msra.mxu1 %v2741_v36 }
 0x5ec   : > { %2694 = vmatmul.mubr.msk.f32.vlgmr.msra.gmra.mrb[10].mxu1 %vm899_vm10, %v2692_v31 }
 0x5ed   : > { %1695 = vmatprep.mubr.f32.mxu1 %v3381_v7  ;;  %v2696_v7 = vld [vmem:[%s4232_s9 + $0x8] sm:$0xff] }
 0x6bf   : > { %v1403_v40 = vpop.f32.mrb[10].mxu1 }
 0x6c0   : > { %v3983_v41 = vadd.f32 %v1403_v40, %v1332_v37  ;;  %v1405_v44 = vpop.f32.mrb[11].mxu1 }
 0x6c1   : > { %v1406_v58 = vadd.f32 %v1405_v44, %v1332_v37 }
 0x6c2   : > { %1412 = vrot.lane.b32.xlu1 %v3983_v41, %s3377_s15 }
 0x6c3   : > { %1414 = vrot.lane.b32.xlu0 %v1406_v58, %s3377_s15 }
 0x6c6   : > { %1420 = vrot.lane.b32.xlu1 %v3983_v41, %s3376_s29 }
 0x6c7   : > { %1422 = vrot.lane.b32.xlu0 %v1406_v58, %s3376_s29 }
 0x6ca   : > { %1428 = vrot.lane.b32.xlu1 %v3983_v41, %s3375_s22 }
 0x6cb   : > { %1430 = vrot.lane.b32.xlu0 %v1406_v58, %s3375_s22 }
 0x6ce   : > { %1436 = vrot.lane.b32.xlu1 %v3983_v41, %s3378_s24 }
 0x6cf   : > { %1438 = vrot.lane.b32.xlu0 %v1406_v58, %s3378_s24 }
 0x6d2   : > { %1444 = vrot.lane.b32.xlu1 %v3983_v41, %s4276_s18 }
 0x6d3   : > { %1446 = vrot.lane.b32.xlu0 %v1406_v58, %s4276_s18 }
 0x6d6   : > { %1452 = vrot.lane.b32.xlu1 %v3983_v41, %s4277_s28 }
 0x6d7   : > { %1454 = vrot.lane.b32.xlu0 %v1406_v58, %s4277_s28 }
 0x6da   : > { %1460 = vrot.lane.b32.xlu1 %v3983_v41, %s4278_s20 }
 0x6db   : > { %1462 = vrot.lane.b32.xlu0 %v1406_v58, %s4278_s20 }
 0x6de   : > { %1468 = vrot.lane.b32.xlu1 %v3983_v41, %s4275_s27 }
 0x6df   : > { %1470 = vrot.lane.b32.xlu0 %v1406_v58, %s4275_s27 }
 0x6e2   : > { %1478 = vperm.xlu1 %3242, %v2696_v7  }
 0x734   : > { %v1413_v59 = vpop.permute.xlu1 %1412 }
 0x735   : > { %v1415_v45 = vpop.permute.xlu0 %1414 }
 0x736   : > { %v1416_v46 = vsel %vm517_vm2, %v1413_v59, %v1415_v45  ;;  %v1417_v48 = vsel %vm517_vm2, %v1415_v45, %v1413_v59 }
 0x737   : > { %v1418_v54 = vmul.f32 %v1417_v48, %v3838_v60  ;;  %v1419_v55 = vmul.f32 %v1416_v46, %v3842_v61 }
 0x738   : > { %v1421_v50 = vpop.permute.xlu1 %1420 }
 0x739   : > { %v1423_v51 = vpop.permute.xlu0 %1422 }
 0x73a   : > { %v1424_v52 = vsel %vm526_vm0, %v1421_v50, %v1423_v51  ;;  %v1425_v53 = vsel %vm526_vm0, %v1423_v51, %v1421_v50 }
 0x73b   : > { %v1426_v56 = vmul.f32 %v1425_v53, %v3846_v62  ;;  %v1427_v57 = vmul.f32 %v1424_v52, %v3850_v63 }
 0x73c   : > { %v1429_v4 = vpop.permute.xlu1 %1428 }
 0x73d   : > { %v2745_v8 = vpack.c.bf16 %v1426_v56, %v1418_v54  ;;  %v1431_v13 = vpop.permute.xlu0 %1430  ;;  %v2743_v47 = vpack.c.bf16 %v1427_v57, %v1419_v55 }
 0x73e   : > { %v1432_v49 = vsel %vm541_vm1, %v1429_v4, %v1431_v13  ;;  %v1433_v15 = vsel %vm541_vm1, %v1431_v13, %v1429_v4 }
 0x73f   : > { %2744 = vmatprep.subr.bf16.mxu0 %v2743_v47  ;;  %v1434_v20 = vmul.f32 %v1433_v15, %v3868_v26  ;;  %v1435_v21 = vmul.f32 %v1432_v49, %v3871_v27  ;;  %v2695_v47 = vld [vmem:[%s4231_s8 + $0x8] sm:$0xff] }
 0x740   : > { %2746 = vmatpush1.bf16.msra.mxu0 %v2745_v8  ;;  %v1437_v17 = vpop.permute.xlu1 %1436 }
 0x741   : > { %v1439_v18 = vpop.permute.xlu0 %1438 }
 0x742   : > { %v1440_v16 = vsel %vm554_vm3, %v1437_v17, %v1439_v18  ;;  %v1441_v19 = vsel %vm554_vm3, %v1439_v18, %v1437_v17 }
 0x743   : > { %v1442_v22 = vmul.f32 %v1441_v19, %v3874_v28  ;;  %v1443_v23 = vmul.f32 %v1440_v16, %v3877_v29 }
 0x744   : > { %v1445_v24 = vpop.permute.xlu1 %1444 }
 0x745   : > { %v2749_v25 = vpack.c.bf16 %v1442_v22, %v1434_v20  ;;  %v1447_v30 = vpop.permute.xlu0 %1446  ;;  %v2747_v33 = vpack.c.bf16 %v1443_v23, %v1435_v21  ;;  %v1835_v21 = vld [vmem:[#allocation5 + $0x28] sm:$0xff]  ;;  %v1830_v23 = vld [vmem:[#allocation5] sm:$0xff] }
 0x746   : > { %v1448_v34 = vsel %vm567_vm4, %v1445_v24, %v1447_v30  ;;  %v1449_v35 = vsel %vm567_vm4, %v1447_v30, %v1445_v24  ;;  %v1834_v24 = vld [vmem:[#allocation5 + $0x20] sm:$0xff]  ;;  %v1839_v30 = vld [vmem:[#allocation5 + $0x48] sm:$0xff] }
 0x747   : > { %v1450_v36 = vmul.f32 %v1448_v34, %v3888_v38  ;;  %v1451_v2 = vmul.f32 %v1449_v35, %v3891_v39  ;;  %2748 = vmatprep.subr.bf16.mxu0 %v2747_v33  ;;  %v1843_v33 = vld [vmem:[#allocation5 + $0x68] sm:$0xff]  ;;  %v1838_v35 = vld [vmem:[#allocation5 + $0x40] sm:$0xff] }
 0x748   : > { %2750 = vmatpush1.bf16.msra.mxu0 %v2749_v25  ;;  %v1453_v31 = vpop.permute.xlu1 %1452  ;;  %v2777_v25 = vpack.c.bf16 %v1834_v24, %v1830_v23  ;;  %v2779_v34 = vpack.c.bf16 %v1843_v33, %v1839_v30  ;;  %v1886_v24 = vld [vmem:[#allocation5 + $0x1c0] sm:$0xff]  ;;  %v1895_v30 = vld [vmem:[#allocation5 + $0x208] sm:$0xff] }
 0x749   : > { %v2753_v37 = vpack.c.bf16 %v1450_v36, %v3983_v41  ;;  %v1455_v40 = vpop.permute.xlu0 %1454  ;;  %v2751_v44 = vpack.c.bf16 %v1451_v2, %v1406_v58  ;;  %v1842_v36 = vld [vmem:[#allocation5 + $0x60] sm:$0xff]  ;;  %v1899_v33 = vld [vmem:[#allocation5 + $0x228] sm:$0xff] }
 0x74a   : > { %v1456_v7 = vsel %vm580_vm6, %v1453_v31, %v1455_v40  ;;  %v1457_v59 = vsel %vm580_vm6, %v1455_v40, %v1453_v31  ;;  %v2781_v2 = vpack.c.bf16 %v1842_v36, %v1838_v35  ;;  %v1847_v31 = vld [vmem:[#allocation5 + $0x88] sm:$0xff]  ;;  %v2807_v35 = vpack.c.bf16 %v1899_v33, %v1895_v30  ;;  %v1894_v36 = vld [vmem:[#allocation5 + $0x200] sm:$0xff] }
 0x74b   : > { %2752 = vmatprep.subr.bf16.mxu0 %v2751_v44  ;;  %v1458_v41 = vmul.f32 %v1456_v7, %v3908_v9  ;;  %v1459_v58 = vmul.f32 %v1457_v59, %v3911_v10  ;;  %v1846_v44 = vld [vmem:[#allocation5 + $0x80] sm:$0xff] }
 0x74c   : > { %2754 = vmatpush1.bf16.msra.mxu0 %v2753_v37  ;;  %v1461_v45 = vpop.permute.xlu1 %1460  ;;  %v1851_v37 = vld [vmem:[#allocation5 + $0xa8] sm:$0xff]  ;;  %v1850_v7 = vld [vmem:[#allocation5 + $0xa0] sm:$0xff] }
 0x74d   : > { %v1463_v46 = vpop.permute.xlu0 %1462  ;;  %v2783_v40 = vpack.c.bf16 %v1851_v37, %v1847_v31  ;;  %v2785_v59 = vpack.c.bf16 %v1850_v7, %v1846_v44  ;;  %v1903_v31 = vld [vmem:[#allocation5 + $0x248] sm:$0xff]  ;;  %v1902_v7 = vld [vmem:[#allocation5 + $0x240] sm:$0xff] }
 0x74e   : > { %v1464_v48 = vsel %vm593_vm8, %v1461_v45, %v1463_v46  ;;  %v1465_v50 = vsel %vm593_vm8, %v1463_v46, %v1461_v45  ;;  %v1855_v45 = vld [vmem:[#allocation5 + $0xc8] sm:$0xff]  ;;  %v1946_v30 = vld [vmem:[#allocation5 + $0x3a0] sm:$0xff] }
 0x74f   : > { %v1466_v51 = vmul.f32 %v1464_v48, %v3914_v11  ;;  %v1467_v52 = vmul.f32 %v1465_v50, %v3917_v12  ;;  %v1859_v46 = vld [vmem:[#allocation5 + $0xe8] sm:$0xff]  ;;  %v1854_v50 = vld [vmem:[#allocation5 + $0xc0] sm:$0xff] }
 0x750   : > { %v1469_v53 = vpop.permute.xlu1 %1468  ;;  %v2787_v48 = vpack.c.bf16 %v1859_v46, %v1855_v45  ;;  %v1907_v37 = vld [vmem:[#allocation5 + $0x268] sm:$0xff] }
 0x751   : > { %v2757_v54 = vpack.c.bf16 %v1466_v51, %v1458_v41  ;;  %v1471_v55 = vpop.permute.xlu0 %1470  ;;  %v2755_v56 = vpack.c.bf16 %v1467_v52, %v1459_v58  ;;  %v1858_v41 = vld [vmem:[#allocation5 + $0xe0] sm:$0xff]  ;;  %v1863_v58 = vld [vmem:[#allocation5 + $0x108] sm:$0xff]  ;;  %v2811_v44 = vpack.c.bf16 %v1907_v37, %v1903_v31 }
 0x752   : > { %v1473_v57 = vsel %vm606_vm12, %v1471_v55, %v1469_v53  ;;  %v1472_v4 = vsel %vm606_vm12, %v1469_v53, %v1471_v55  ;;  %v1867_v51 = vld [vmem:[#allocation5 + $0x128] sm:$0xff]  ;;  %v2789_v52 = vpack.c.bf16 %v1858_v41, %v1854_v50  ;;  %v1866_v55 = vld [vmem:[#allocation5 + $0x120] sm:$0xff] }
 0x753   : > { %v1475_v8 = vmul.f32 %v1473_v57, %v3925_v3  ;;  %2756 = vmatprep.subr.bf16.mxu0 %v2755_v56  ;;  %v1474_v13 = vmul.f32 %v1472_v4, %v3937_v32  ;;  %v2791_v53 = vpack.c.bf16 %v1867_v51, %v1863_v58  ;;  %v1871_v56 = vld [vmem:[#allocation5 + $0x148] sm:$0xff]  ;;  %v1910_v41 = vld [vmem:[#allocation5 + $0x280] sm:$0xff] }
 0x754   : > { %2758 = vmatpush1.bf16.msra.mxu0 %v2757_v54  ;;  %v1862_v54 = vld [vmem:[#allocation5 + $0x100] sm:$0xff]  ;;  %v1875_v57 = vld [vmem:[#allocation5 + $0x168] sm:$0xff] }
 0x755   : > { %1500 = vmatprep.subr.mxu0 %v1475_v8  ;;  %v2793_v4 = vpack.c.bf16 %v1866_v55, %v1862_v54  ;;  %v2795_v8 = vpack.c.bf16 %v1875_v57, %v1871_v56  ;;  %v1911_v45 = vld [vmem:[#allocation5 + $0x288] sm:$0xff]  ;;  %v1914_v58 = vld [vmem:[#allocation5 + $0x2a0] sm:$0xff] }
 0x756   : > { %v1915_v46 = vld [vmem:[#allocation5 + $0x2a8] sm:$0xff]  ;;  %v1918_v55 = vld [vmem:[#allocation5 + $0x2c0] sm:$0xff] }
 0x757   : > { %v2815_v50 = vpack.c.bf16 %v1915_v46, %v1911_v45  ;;  %v1919_v51 = vld [vmem:[#allocation5 + $0x2c8] sm:$0xff]  ;;  %v1922_v56 = vld [vmem:[#allocation5 + $0x2e0] sm:$0xff] }
 0x758   : > { %1501 = vmatpush1.msra.mxu0 %v1474_v13  ;;  %v1870_v13 = vld [vmem:[#allocation5 + $0x140] sm:$0xff]  ;;  %v1927_v57 = vld [vmem:[#allocation5 + $0x308] sm:$0xff] }
 0x759   : > { %2697 = vmatmul.mubr.msk.f32.vlgmr.msra.gmra.mrb[12].mxu0 %vm1109_vm11, %v2695_v47  ;;  %v1874_v47 = vld [vmem:[#allocation5 + $0x160] sm:$0xff] }
 0x761   : > { %v1479_v49 = vpop.permute.xlu1 %1478 }
 0x82c   : > { %v1550_v15 = vpop.f32.mrb[12].mxu0 }
 0x82d   : > { %v1551_v17 = vadd.f32 %v1550_v15, %v1479_v49  ;;  %v1552_v18 = vpop.f32.mrb[13].mxu0  ;;  %v1883_v15 = vld [vmem:[#allocation5 + $0x1a8] sm:$0xff] }
 0x82e   : > { %v1553_v16 = vadd.f32 %v1552_v18, %v1479_v49  ;;  %v1879_v49 = vld [vmem:[#allocation5 + $0x188] sm:$0xff] }
 0x82f   : > { %v4066_v19 = vadd.f32 %v1551_v17, %v3954_v43  ;;  %v1831_v43 = vld [vmem:[#allocation5 + $0x8] sm:$0xff]  ;;  %v2797_v17 = vpack.c.bf16 %v1874_v47, %v1870_v13  ;;  %v2799_v18 = vpack.c.bf16 %v1883_v15, %v1879_v49  ;;  %v1926_v47 = vld [vmem:[#allocation5 + $0x300] sm:$0xff] }
 0x830   : > { %v4069_v20 = vadd.f32 %v1553_v16, %v3951_v42  ;;  %v1558_v42 = vld [vmem:[%s4234_s11] sm:$0x3]  ;;  %v2775_v22 = vpack.c.bf16 %v1835_v21, %v1831_v43  ;;  %v1887_v43 = vld [vmem:[#allocation5 + $0x1c8] sm:$0xff] }
 0x831   : > { %1559 = vrot.lane.b32.xlu0 %v4066_v19, %s3377_s15  ;;  %v1878_v16 = vld [vmem:[#allocation5 + $0x180] sm:$0xff]  ;;  %v1891_v21 = vld [vmem:[#allocation5 + $0x1e8] sm:$0xff] }
 0x832   : > { %1561 = vrot.lane.b32.xlu1 %v4069_v20, %s3377_s15  ;;  %2776 = vmatprep.subr.bf16.mxu0 %v2775_v22  ;;  %v2803_v23 = vpack.c.bf16 %v1891_v21, %v1887_v43  ;;  %v1930_v49 = vld [vmem:[#allocation5 + $0x320] sm:$0xff]  ;;  %v1935_v15 = vld [vmem:[#allocation5 + $0x348] sm:$0xff] }
 0x833   : > { %2778 = vmatpush1.bf16.msra.mxu0 %v2777_v25  ;;  %v1890_v25 = vld [vmem:[#allocation5 + $0x1e0] sm:$0xff]  ;;  %v1943_v21 = vld [vmem:[#allocation5 + $0x388] sm:$0xff] }
 0x834   : > { %2780 = vmatprep.subr.bf16.mxu0 %v2779_v34  ;;  %v2805_v34 = vpack.c.bf16 %v1890_v25, %v1886_v24  ;;  %v1938_v43 = vld [vmem:[#allocation5 + $0x360] sm:$0xff] }
 0x835   : > { %1567 = vrot.lane.b32.xlu0 %v4066_v19, %s3376_s29  ;;  %v1942_v25 = vld [vmem:[#allocation5 + $0x380] sm:$0xff] }
 0x836   : > { %1569 = vrot.lane.b32.xlu1 %v4069_v20, %s3376_s29  ;;  %v2833_v33 = vpack.c.bf16 %v1946_v30, %v1942_v25  ;;  %s3303_s29 = sshll.u32 %s3387_s17, 4  ;;  %s3304_s29 = int_to_ptr.vmem [resolvable:$false] %s3303_s29 }
 0x837   : > { %2782 = vmatpush1.bf16.msra.mxu0 %v2781_v2  ;;  %v1898_v2 = vld [vmem:[#allocation5 + $0x220] sm:$0xff]  ;;  %s3305_s15 = scalar_lea.vmem %s3304_s29, 128 }
 0x838   : > { %2784 = vmatprep.subr.bf16.mxu0 %v2783_v40  ;;  %v2809_v40 = vpack.c.bf16 %v1898_v2, %v1894_v36 }
 0x839   : > { %1575 = vrot.lane.b32.xlu0 %v4066_v19, %s3375_s22 }
 0x83a   : > { %1577 = vrot.lane.b32.xlu1 %v4069_v20, %s3375_s22 }
 0x83b   : > { %2786 = vmatpush1.bf16.msra.mxu0 %v2785_v59  ;;  %v1906_v59 = vld [vmem:[#allocation5 + $0x260] sm:$0xff] }
 0x83c   : > { %2788 = vmatprep.subr.bf16.mxu0 %v2787_v48  ;;  %v2813_v48 = vpack.c.bf16 %v1906_v59, %v1902_v7 }
 0x83d   : > { %1583 = vrot.lane.b32.xlu0 %v4066_v19, %s3378_s24 }
 0x83e   : > { %1585 = vrot.lane.b32.xlu1 %v4069_v20, %s3378_s24 }
 0x83f   : > { %2790 = vmatpush1.bf16.msra.mxu0 %v2789_v52  ;;  %v1923_v52 = vld [vmem:[#allocation5 + $0x2e8] sm:$0xff] }
 0x840   : > { %2792 = vmatprep.subr.bf16.mxu0 %v2791_v53  ;;  %v2817_v53 = vpack.c.bf16 %v1914_v58, %v1910_v41  ;;  %v2819_v54 = vpack.c.bf16 %v1923_v52, %v1919_v51 }
 0x841   : > { %1591 = vrot.lane.b32.xlu0 %v4066_v19, %s4276_s18 }
 0x842   : > { %1593 = vrot.lane.b32.xlu1 %v4069_v20, %s4276_s18 }
 0x843   : > { %2794 = vmatpush1.bf16.msra.mxu0 %v2793_v4  ;;  %v1931_v4 = vld [vmem:[#allocation5 + $0x328] sm:$0xff] }
 0x844   : > { %2796 = vmatprep.subr.bf16.mxu0 %v2795_v8  ;;  %v2821_v8 = vpack.c.bf16 %v1922_v56, %v1918_v55  ;;  %v2823_v13 = vpack.c.bf16 %v1931_v4, %v1927_v57 }
 0x845   : > { %1599 = vrot.lane.b32.xlu0 %v4066_v19, %s4277_s28 }
 0x846   : > { %1601 = vrot.lane.b32.xlu1 %v4069_v20, %s4277_s28 }
 0x847   : > { %2798 = vmatpush1.bf16.msra.mxu0 %v2797_v17  ;;  %v1939_v17 = vld [vmem:[#allocation5 + $0x368] sm:$0xff] }
 0x848   : > { %2800 = vmatprep.subr.bf16.mxu0 %v2799_v18  ;;  %v2825_v18 = vpack.c.bf16 %v1930_v49, %v1926_v47 }
 0x849   : > { %1607 = vrot.lane.b32.xlu0 %v4066_v19, %s4278_s20 }
 0x84a   : > { %1609 = vrot.lane.b32.xlu1 %v4069_v20, %s4278_s20 }
 0x84d   : > { %1615 = vrot.lane.b32.xlu0 %v4066_v19, %s4275_s27 }
 0x84e   : > { %1617 = vrot.lane.b32.xlu1 %v4069_v20, %s4275_s27  ;;  %s486_s27 = sand.u32 1, %s3361_s30  }
 0x84f   : > { %s2669_s25 = sshll.u32 %s486_s27, 2  ;;  %s2566_s23 = scalar_lea.sflag [#allocation4], %s486_s27 }
 0x850   : > { %s488_s18 = scalar_lea.vmem [#allocation7], %s2669_s25 }
 0x851   : > { %1625 = vperm.xlu0 %3241, %v1558_v42   ;;  %v1882_v42 = vld [vmem:[#allocation5 + $0x1a0] sm:$0xff]  ;;  %s2580_s28 = sshll.u32 %s488_s18, 4  ;;  %s4183_s28 = int_to_ptr.vmem [resolvable:$true] %s2580_s28 }
 0x852   : > { %v2801_v22 = vpack.c.bf16 %v1882_v42, %v1878_v16  ;;  %v2827_v16 = vpack.c.bf16 %v1939_v17, %v1935_v15  ;;  %v1934_v42 = vld [vmem:[#allocation5 + $0x340] sm:$0xff]  ;;  %s3299_s22 = scalar_lea.vmem %s4183_s28, 64  ;;  %p3306_p4 = scmp.lt.s32.totalorder %s4183_s28, %s3304_s29 }
 0x853   : > { %p3300_p12 = scmp.ne.s32.totalorder %s4183_s28, %s3299_s22  ;;  %p3307_p7 = scmp.lt.s32.totalorder %s3305_s15, %s3299_s22 }
 0x854   : > { %2802 = vmatpush1.bf16.msra.mxu0 %v2801_v22  ;;  %v1947_v22 = vld [vmem:[#allocation5 + $0x3a8] sm:$0xff] }
 0x855   : > { %2804 = vmatprep.subr.bf16.mxu0 %v2803_v23  ;;  %v2829_v23 = vpack.c.bf16 %v1938_v43, %v1934_v42  ;;  %v2831_v24 = vpack.c.bf16 %v1947_v22, %v1943_v21  ;;  %p3301_p2 = pnand %p3300_p12, %p4281_p1  ;;  %p3308_p8 = por %p3307_p7, %p3306_p4 }
 0x857   : > { %p3302_p3 = pneg %p3301_p2 }
 0x858   : > { %2806 = vmatpush1.bf16.msra.mxu0 %v2805_v34 }
 0x859   : > { %2808 = vmatprep.subr.bf16.mxu0 %v2807_v35  ;;  %p3309_p11 = pnand %p3308_p8, %p3302_p3 }
 0x85c   : > { %2810 = vmatpush1.bf16.msra.mxu0 %v2809_v40 }
 0x85d   : > { %2812 = vmatprep.subr.bf16.mxu0 %v2811_v44 }
 0x860   : > { %2814 = vmatpush1.bf16.msra.mxu0 %v2813_v48 }
 0x861   : > { %2816 = vmatprep.subr.bf16.mxu0 %v2815_v50 }
 0x864   : > { %2818 = vmatpush1.bf16.msra.mxu0 %v2817_v53 }
 0x865   : > { %2820 = vmatprep.subr.bf16.mxu0 %v2819_v54 }
 0x868   : > { %2822 = vmatpush1.bf16.msra.mxu0 %v2821_v8 }
 0x869   : > { %2824 = vmatprep.subr.bf16.mxu0 %v2823_v13 }
 0x86c   : > { %2826 = vmatpush1.bf16.msra.mxu0 %v2825_v18 }
 0x86d   : > { %2828 = vmatprep.subr.bf16.mxu0 %v2827_v16 }
 0x870   : > { %2830 = vmatpush1.bf16.msra.mxu0 %v2829_v23 }
 0x871   : > { %2832 = vmatprep.subr.bf16.mxu0 %v2831_v24 }
 0x874   : > { %2834 = vmatpush1.bf16.msra.mxu0 %v2833_v33 }
 0x8a3   : > { %v1560_v34 = vpop.permute.xlu0 %1559 }
 0x8a4   : > { %v1562_v35 = vpop.permute.xlu1 %1561 }
 0x8a5   : > { %v1563_v36 = vsel %vm517_vm2, %v1560_v34, %v1562_v35  ;;  %v1564_v2 = vsel %vm517_vm2, %v1562_v35, %v1560_v34  ;;  %v1833_v34 = vld [vmem:[#allocation5 + $0x18] sm:$0xff] }
 0x8a6   : > { %v1565_v7 = vmul.f32 %v1564_v2, %v3838_v60  ;;  %v1566_v59 = vmul.f32 %v1563_v36, %v3842_v61  ;;  %v1837_v35 = vld [vmem:[#allocation5 + $0x38] sm:$0xff]  ;;  %v1836_v2 = vld [vmem:[#allocation5 + $0x30] sm:$0xff] }
 0x8a7   : > { %v1568_v31 = vpop.permute.xlu0 %1567 }
 0x8a8   : > { %v1570_v37 = vpop.permute.xlu1 %1569 }
 0x8a9   : > { %v1571_v40 = vsel %vm526_vm0, %v1568_v31, %v1570_v37  ;;  %v1572_v44 = vsel %vm526_vm0, %v1570_v37, %v1568_v31  ;;  %v2839_v31 = vpack.c.bf16 %v1837_v35, %v1833_v34  ;;  %v1904_v35 = vld [vmem:[#allocation5 + $0x250] sm:$0xff]  ;;  %vm2562_vm0 = vcmp.lt.s32.totalorder %v501_v0, 512 }
 0x8aa   : > { %v1573_v45 = vmul.f32 %v1572_v44, %v3846_v62  ;;  %v1574_v46 = vmul.f32 %v1571_v40, %v3850_v63  ;;  %v1557_v40 = vld [vmem:[%s4233_s10] sm:$0x3] }
 0x8ab   : > { %v1576_v48 = vpop.permute.xlu0 %1575 }
 0x8ac   : > { %v2761_v50 = vpack.c.bf16 %v1573_v45, %v1565_v7  ;;  %v1578_v41 = vpop.permute.xlu1 %1577  ;;  %v2759_v58 = vpack.c.bf16 %v1574_v46, %v1566_v59  ;;  %v1844_v59 = vld [vmem:[#allocation5 + $0x70] sm:$0xff]  ;;  %v1853_v45 = vld [vmem:[#allocation5 + $0xb8] sm:$0xff] }
 0x8ad   : > { %v1579_v51 = vsel %vm541_vm1, %v1576_v48, %v1578_v41  ;;  %v1580_v52 = vsel %vm541_vm1, %v1578_v41, %v1576_v48  ;;  %v2845_v46 = vpack.c.bf16 %v1844_v59, %v1840_v14  ;;  %v1857_v41 = vld [vmem:[#allocation5 + $0xd8] sm:$0xff]  ;;  %v1920_v14 = vld [vmem:[#allocation5 + $0x2d0] sm:$0xff] }
 0x8ae   : > { %2760 = vmatprep.subr.bf16.mxu1 %v2759_v58  ;;  %v1581_v63 = vmul.f32 %v1580_v52, %v3868_v26  ;;  %v1582_v54 = vmul.f32 %v1579_v51, %v3871_v27  ;;  %v1861_v58 = vld [vmem:[#allocation5 + $0xf8] sm:$0xff]  ;;  %v1924_v59 = vld [vmem:[#allocation5 + $0x2f0] sm:$0xff] }
 0x8af   : > { %2762 = vmatpush1.bf16.msra.mxu1 %v2761_v50  ;;  %v1584_v53 = vpop.permute.xlu0 %1583  ;;  %v1848_v50 = vld [vmem:[#allocation5 + $0x90] sm:$0xff]  ;;  %v2851_v52 = vpack.c.bf16 %v1861_v58, %v1857_v41  ;;  %v1937_v41 = vld [vmem:[#allocation5 + $0x358] sm:$0xff] }
 0x8b0   : > { %v1586_v60 = vpop.permute.xlu1 %1585  ;;  %v1941_v58 = vld [vmem:[#allocation5 + $0x378] sm:$0xff] }
 0x8b1   : > { %v1587_v61 = vsel %vm554_vm3, %v1584_v53, %v1586_v60  ;;  %v1588_v62 = vsel %vm554_vm3, %v1586_v60, %v1584_v53  ;;  %v1856_v53 = vld [vmem:[#allocation5 + $0xd0] sm:$0xff] }
 0x8b2   : > { %v1589_v55 = vmul.f32 %v1588_v62, %v3874_v28  ;;  %v1590_v56 = vmul.f32 %v1587_v61, %v3877_v29  ;;  %v1860_v60 = vld [vmem:[#allocation5 + $0xf0] sm:$0xff]  ;;  %v1865_v61 = vld [vmem:[#allocation5 + $0x118] sm:$0xff] }
 0x8b3   : > { %v1592_v57 = vpop.permute.xlu0 %1591  ;;  %v1869_v62 = vld [vmem:[#allocation5 + $0x138] sm:$0xff] }
 0x8b4   : > { %v2765_v4 = vpack.c.bf16 %v1589_v55, %v1581_v63  ;;  %v1594_v8 = vpop.permute.xlu1 %1593  ;;  %v2763_v13 = vpack.c.bf16 %v1590_v56, %v1582_v54  ;;  %v2853_v63 = vpack.c.bf16 %v1860_v60, %v1856_v53  ;;  %v2855_v54 = vpack.c.bf16 %v1869_v62, %v1865_v61  ;;  %v1864_v55 = vld [vmem:[#allocation5 + $0x110] sm:$0xff]  ;;  %v1945_v61 = vld [vmem:[#allocation5 + $0x398] sm:$0xff] }
 0x8b5   : > { %v1595_v47 = vsel %vm567_vm4, %v1592_v57, %v1594_v8  ;;  %v1596_v49 = vsel %vm567_vm4, %v1594_v8, %v1592_v57  ;;  %v1868_v56 = vld [vmem:[#allocation5 + $0x130] sm:$0xff]  ;;  %v1873_v57 = vld [vmem:[#allocation5 + $0x158] sm:$0xff] }
 0x8b6   : > { %v1597_v15 = vmul.f32 %v1595_v47, %v3888_v38  ;;  %v1598_v26 = vmul.f32 %v1596_v49, %v3891_v39  ;;  %2764 = vmatprep.subr.bf16.mxu1 %v2763_v13  ;;  %v2857_v8 = vpack.c.bf16 %v1868_v56, %v1864_v55  ;;  %v1872_v47 = vld [vmem:[#allocation5 + $0x150] sm:$0xff]  ;;  %v1949_v62 = vld [vmem:[#allocation5 + $0x3b8] sm:$0xff] }
 0x8b7   : > { %2766 = vmatpush1.bf16.msra.mxu1 %v2765_v4  ;;  %v1600_v27 = vpop.permute.xlu0 %1599  ;;  %v1877_v4 = vld [vmem:[#allocation5 + $0x178] sm:$0xff]  ;;  %v1876_v49 = vld [vmem:[#allocation5 + $0x170] sm:$0xff] }
 0x8b8   : > { %v2769_v28 = vpack.c.bf16 %v1597_v15, %v4066_v19  ;;  %v1602_v29 = vpop.permute.xlu1 %1601  ;;  %v2767_v17 = vpack.c.bf16 %v1598_v26, %v4069_v20  ;;  %v2859_v13 = vpack.c.bf16 %v1877_v4, %v1873_v57  ;;  %v1881_v15 = vld [vmem:[#allocation5 + $0x198] sm:$0xff]  ;;  %v1936_v53 = vld [vmem:[#allocation5 + $0x350] sm:$0xff]  ;;  %v1951_v4 = vld [vmem:[#allocation5 + $0x3c8] sm:$0xff] }
 0x8b9   : > { %v1603_v18 = vsel %vm580_vm6, %v1600_v27, %v1602_v29  ;;  %v1604_v16 = vsel %vm580_vm6, %v1602_v29, %v1600_v27  ;;  %v1885_v26 = vld [vmem:[#allocation5 + $0x1b8] sm:$0xff]  ;;  %v2861_v27 = vpack.c.bf16 %v1876_v49, %v1872_v47  ;;  %v1880_v29 = vld [vmem:[#allocation5 + $0x190] sm:$0xff] }
 0x8ba   : > { %2768 = vmatprep.subr.bf16.mxu1 %v2767_v17  ;;  %v1605_v19 = vmul.f32 %v1603_v18, %v3908_v9  ;;  %v1606_v20 = vmul.f32 %v1604_v16, %v3911_v10  ;;  %v1832_v10 = vld [vmem:[#allocation5 + $0x10] sm:$0xff]  ;;  %v1889_v18 = vld [vmem:[#allocation5 + $0x1d8] sm:$0xff] }
 0x8bb   : > { %2770 = vmatpush1.bf16.msra.mxu1 %v2769_v28  ;;  %v1608_v42 = vpop.permute.xlu0 %1607  ;;  %v2841_v44 = vpack.c.bf16 %v1836_v2, %v1832_v10  ;;  %v2863_v28 = vpack.c.bf16 %v1885_v26, %v1881_v15  ;;  %v1884_v17 = vld [vmem:[#allocation5 + $0x1b0] sm:$0xff]  ;;  %v1893_v16 = vld [vmem:[#allocation5 + $0x1f8] sm:$0xff]  ;;  %v1950_v15 = vld [vmem:[#allocation5 + $0x3c0] sm:$0xff] }
 0x8bc   : > { %v1610_v38 = vpop.permute.xlu1 %1609  ;;  %v1917_v10 = vld [vmem:[#allocation5 + $0x2b8] sm:$0xff]  ;;  %v1940_v60 = vld [vmem:[#allocation5 + $0x370] sm:$0xff]  ;;  %v1954_v26 = vld [vmem:[#allocation5 + $0x3e0] sm:$0xff] }
 0x8bd   : > { %v1611_v39 = vsel %vm593_vm8, %v1608_v42, %v1610_v38  ;;  %v1612_v43 = vsel %vm593_vm8, %v1610_v38, %v1608_v42  ;;  %v2865_v42 = vpack.c.bf16 %v1884_v17, %v1880_v29  ;;  %v2867_v38 = vpack.c.bf16 %v1893_v16, %v1889_v18  ;;  %v1944_v55 = vld [vmem:[#allocation5 + $0x390] sm:$0xff]  ;;  %v1957_v49 = vld [vmem:[#allocation5 + $0x3f8] sm:$0xff]  ;;  %v1703_v16 = vld [vmem:[#allocation2 + $0x8] sm:$0xff] }
 0x8be   : > { %v1613_v21 = vmul.f32 %v1611_v39, %v3914_v11  ;;  %v1614_v22 = vmul.f32 %v1612_v43, %v3917_v12  ;;  %v1841_v11 = vld [vmem:[#allocation5 + $0x58] sm:$0xff]  ;;  %v1888_v39 = vld [vmem:[#allocation5 + $0x1d0] sm:$0xff] }
 0x8bf   : > { %v1616_v23 = vpop.permute.xlu0 %1615  ;;  %v1845_v12 = vld [vmem:[#allocation5 + $0x78] sm:$0xff]  ;;  %v1892_v43 = vld [vmem:[#allocation5 + $0x1f0] sm:$0xff] }
 0x8c0   : > { %v2773_v24 = vpack.c.bf16 %v1613_v21, %v1605_v19  ;;  %v1618_v25 = vpop.permute.xlu1 %1617  ;;  %v2771_v30 = vpack.c.bf16 %v1614_v22, %v1606_v20  ;;  %v2843_v7 = vpack.c.bf16 %v1845_v12, %v1841_v11  ;;  %v1897_v19 = vld [vmem:[#allocation5 + $0x218] sm:$0xff]  ;;  %v2869_v21 = vpack.c.bf16 %v1892_v43, %v1888_v39  ;;  %v1912_v12 = vld [vmem:[#allocation5 + $0x290] sm:$0xff] }
 0x8c1   : > { %v1620_v33 = vsel %vm606_vm12, %v1618_v25, %v1616_v23  ;;  %v1619_v36 = vsel %vm606_vm12, %v1616_v23, %v1618_v25  ;;  %v1901_v20 = vld [vmem:[#allocation5 + $0x238] sm:$0xff]  ;;  %v1896_v23 = vld [vmem:[#allocation5 + $0x210] sm:$0xff] }
 0x8c2   : > { %v1622_v9 = vmul.f32 %v1620_v33, %v3925_v3  ;;  %2772 = vmatprep.subr.bf16.mxu1 %v2771_v30  ;;  %v1621_v37 = vmul.f32 %v1619_v36, %v3937_v32  ;;  %v1849_v3 = vld [vmem:[#allocation5 + $0x98] sm:$0xff]  ;;  %v1852_v32 = vld [vmem:[#allocation5 + $0xb0] sm:$0xff]  ;;  %v2871_v22 = vpack.c.bf16 %v1901_v20, %v1897_v19  ;;  %v1702_v20 = vld [vmem:[#allocation2] sm:$0xff] }
 0x8c3   : > { %2774 = vmatpush1.bf16.msra.mxu1 %v2773_v24  ;;  %v2847_v48 = vpack.c.bf16 %v1853_v45, %v1849_v3  ;;  %v2849_v51 = vpack.c.bf16 %v1852_v32, %v1848_v50  ;;  %v1900_v24 = vld [vmem:[#allocation5 + $0x230] sm:$0xff]  ;;  %v1905_v25 = vld [vmem:[#allocation5 + $0x258] sm:$0xff] }
 0x8c4   : > { %1647 = vmatprep.subr.mxu1 %v1622_v9  ;;  %v1909_v30 = vld [vmem:[#allocation5 + $0x278] sm:$0xff]  ;;  %v2873_v33 = vpack.c.bf16 %v1900_v24, %v1896_v23  ;;  %v1908_v36 = vld [vmem:[#allocation5 + $0x270] sm:$0xff]  ;;  %v1711_v24 = vld [vmem:[#allocation2 + $0x48] sm:$0xff] }
 0x8c5   : > { %v2875_v34 = vpack.c.bf16 %v1909_v30, %v1905_v25  ;;  %v1913_v9 = vld [vmem:[#allocation5 + $0x298] sm:$0xff]  ;;  %v2877_v2 = vpack.c.bf16 %v1908_v36, %v1904_v35  ;;  %v1928_v50 = vld [vmem:[#allocation5 + $0x310] sm:$0xff]  ;;  %v1715_v30 = vld [vmem:[#allocation2 + $0x68] sm:$0xff] }
 0x8c6   : > { %v2879_v11 = vpack.c.bf16 %v1917_v10, %v1913_v9  ;;  %v1929_v3 = vld [vmem:[#allocation5 + $0x318] sm:$0xff]  ;;  %v1932_v32 = vld [vmem:[#allocation5 + $0x330] sm:$0xff] }
 0x8c7   : > { %1648 = vmatpush1.msra.mxu1 %v1621_v37  ;;  %v1921_v37 = vld [vmem:[#allocation5 + $0x2d8] sm:$0xff]  ;;  %v1948_v56 = vld [vmem:[#allocation5 + $0x3b0] sm:$0xff] }
 0x8c8   : > { %2698 = vmatmul.mubr.msk.f32.vlgmr.msra.gmra.mrb[12].mxu1 %vm1109_vm11, %v1557_v40  ;;  %2840 = vmatprep.subr.bf16.mxu1 %v2839_v31  ;;  %v1916_v31 = vld [vmem:[#allocation5 + $0x2b0] sm:$0xff]  ;;  %v1925_v40 = vld [vmem:[#allocation5 + $0x2f8] sm:$0xff]  ;;  %v2897_v57 = vpack.c.bf16 %v1948_v56, %v1944_v55  ;;  %v1726_v55 = vld [vmem:[#allocation2 + $0xc0] sm:$0xff] }
 0x8c9   : > { %2842 = vmatpush1.bf16.msra.mxu1 %v2841_v44  ;;  %v2881_v44 = vpack.c.bf16 %v1916_v31, %v1912_v12  ;;  %v1933_v45 = vld [vmem:[#allocation5 + $0x338] sm:$0xff]  ;;  %v1952_v29 = vld [vmem:[#allocation5 + $0x3d0] sm:$0xff]  ;;  %v1714_v12 = vld [vmem:[#allocation2 + $0x60] sm:$0xff] }
 0x8ca   : > { %2844 = vmatprep.subr.bf16.mxu1 %v2843_v7  ;;  %v2883_v7 = vpack.c.bf16 %v1925_v40, %v1921_v37  ;;  %v1956_v17 = vld [vmem:[#allocation5 + $0x3f0] sm:$0xff]  ;;  %v1709_v43 = vld [vmem:[#allocation2 + $0x38] sm:$0xff]  ;;  %v2907_v37 = vpack.c.bf16 %v1715_v30, %v1711_v24  ;;  %v1730_v56 = vld [vmem:[#allocation2 + $0xe0] sm:$0xff] }
 0x8cb   : > { %v2901_v18 = vpack.c.bf16 %v1956_v17, %v1952_v29  ;;  %v1708_v23 = vld [vmem:[#allocation2 + $0x30] sm:$0xff]  ;;  %v1738_v29 = vld [vmem:[#allocation2 + $0x120] sm:$0xff] }
 0x8cc   : > { %v1744_v30 = vld [vmem:[#allocation2 + $0x150] sm:$0xff] }
 0x8cd   : > { %2846 = vmatpush1.bf16.msra.mxu1 %v2845_v46  ;;  %v2885_v46 = vpack.c.bf16 %v1924_v59, %v1920_v14  ;;  %v1719_v14 = vld [vmem:[#allocation2 + $0x88] sm:$0xff] }
 0x8ce   : > { %2848 = vmatprep.subr.bf16.mxu1 %v2847_v48  ;;  %v2887_v48 = vpack.c.bf16 %v1933_v45, %v1929_v3  ;;  %v1723_v59 = vld [vmem:[#allocation2 + $0xa8] sm:$0xff]  ;;  %v1721_v3 = vld [vmem:[#allocation2 + $0x98] sm:$0xff] }
 0x8cf   : > { %v1725_v45 = vld [vmem:[#allocation2 + $0xb8] sm:$0xff] }
 0x8d0   : > { %v1626_v35 = vpop.permute.xlu0 %1625 }
 0x8d1   : > { %2850 = vmatpush1.bf16.msra.mxu1 %v2849_v51  ;;  %v2889_v51 = vpack.c.bf16 %v1932_v32, %v1928_v50  ;;  %v1718_v50 = vld [vmem:[#allocation2 + $0x80] sm:$0xff] }
 0x8d2   : > { %2852 = vmatprep.subr.bf16.mxu1 %v2851_v52  ;;  %v2891_v52 = vpack.c.bf16 %v1941_v58, %v1937_v41  ;;  %v1722_v32 = vld [vmem:[#allocation2 + $0xa0] sm:$0xff]  ;;  %v2911_v41 = vpack.c.bf16 %v1723_v59, %v1719_v14  ;;  %v2975_v58 = vpack.c.bf16 %v1725_v45, %v1721_v3  ;;  %v1756_v14 = vld [vmem:[#allocation2 + $0x1b0] sm:$0xff]  ;;  %v1759_v59 = vld [vmem:[#allocation2 + $0x1c8] sm:$0xff] }
 0x8d3   : > { %v1763_v3 = vld [vmem:[#allocation2 + $0x1e8] sm:$0xff]  ;;  %v1761_v45 = vld [vmem:[#allocation2 + $0x1d8] sm:$0xff] }
 0x8d5   : > { %2854 = vmatpush1.bf16.msra.mxu1 %v2853_v63  ;;  %v2893_v63 = vpack.c.bf16 %v1940_v60, %v1936_v53  ;;  %v1727_v53 = vld [vmem:[#allocation2 + $0xc8] sm:$0xff] }
 0x8d6   : > { %2856 = vmatprep.subr.bf16.mxu1 %v2855_v54  ;;  %v2895_v54 = vpack.c.bf16 %v1949_v62, %v1945_v61  ;;  %v1731_v60 = vld [vmem:[#allocation2 + $0xe8] sm:$0xff]  ;;  %v1729_v61 = vld [vmem:[#allocation2 + $0xd8] sm:$0xff] }
 0x8d7   : > { %v1733_v62 = vld [vmem:[#allocation2 + $0xf8] sm:$0xff] }
 0x8d9   : > { %2858 = vmatpush1.bf16.msra.mxu1 %v2857_v8  ;;  %v1955_v8 = vld [vmem:[#allocation5 + $0x3e8] sm:$0xff] }
 0x8da   : > { %2860 = vmatprep.subr.bf16.mxu1 %v2859_v13  ;;  %v1953_v13 = vld [vmem:[#allocation5 + $0x3d8] sm:$0xff]  ;;  %v2835_v47 = vpack.c.bf16 %v1955_v8, %v1951_v4  ;;  %v2979_v4 = vpack.c.bf16 %v1733_v62, %v1729_v61  ;;  %v1728_v8 = vld [vmem:[#allocation2 + $0xd0] sm:$0xff]  ;;  %v1771_v61 = vld [vmem:[#allocation2 + $0x228] sm:$0xff] }
 0x8db   : > { %v1769_v62 = vld [vmem:[#allocation2 + $0x218] sm:$0xff] }
 0x8dc   : > { %2836 = vmatprep.subr.bf16.mxu0 %v2835_v47  ;;  %v1735_v47 = vld [vmem:[#allocation2 + $0x108] sm:$0xff] }
 0x8dd   : > { %2862 = vmatpush1.bf16.msra.mxu1 %v2861_v27  ;;  %v2899_v27 = vpack.c.bf16 %v1957_v49, %v1953_v13  ;;  %v1732_v13 = vld [vmem:[#allocation2 + $0xf0] sm:$0xff]  ;;  %v1739_v49 = vld [vmem:[#allocation2 + $0x128] sm:$0xff] }
 0x8de   : > { %2864 = vmatprep.subr.bf16.mxu1 %v2863_v28  ;;  %v2837_v28 = vpack.c.bf16 %v1954_v26, %v1950_v15  ;;  %v1737_v15 = vld [vmem:[#allocation2 + $0x118] sm:$0xff]  ;;  %v2919_v17 = vpack.c.bf16 %v1739_v49, %v1735_v47  ;;  %v1772_v47 = vld [vmem:[#allocation2 + $0x230] sm:$0xff]  ;;  %v1775_v49 = vld [vmem:[#allocation2 + $0x248] sm:$0xff] }
 0x8df   : > { %v1741_v26 = vld [vmem:[#allocation2 + $0x138] sm:$0xff] }
 0x8e0   : > { %2838 = vmatpush1.bf16.msra.mxu0 %v2837_v28  ;;  %v1734_v28 = vld [vmem:[#allocation2 + $0x100] sm:$0xff] }
 0x8e1   : > { %2866 = vmatpush1.bf16.msra.mxu1 %v2865_v42  ;;  %v1707_v42 = vld [vmem:[#allocation2 + $0x28] sm:$0xff] }
 0x8e2   : > { %2868 = vmatprep.subr.bf16.mxu1 %v2867_v38  ;;  %v1705_v38 = vld [vmem:[#allocation2 + $0x18] sm:$0xff]  ;;  %v2903_v39 = vpack.c.bf16 %v1707_v42, %v1703_v16  ;;  %v1736_v16 = vld [vmem:[#allocation2 + $0x110] sm:$0xff] }
 0x8e3   : > { %v2967_v19 = vpack.c.bf16 %v1709_v43, %v1705_v38  ;;  %v1740_v42 = vld [vmem:[#allocation2 + $0x130] sm:$0xff]  ;;  %v1743_v38 = vld [vmem:[#allocation2 + $0x148] sm:$0xff]  ;;  %v1745_v43 = vld [vmem:[#allocation2 + $0x158] sm:$0xff] }
 0x8e4   : > { %2904 = vmatprep.subr.bf16.mxu0 %v2903_v39  ;;  %v1747_v39 = vld [vmem:[#allocation2 + $0x168] sm:$0xff] }
 0x8e5   : > { %2870 = vmatpush1.bf16.msra.mxu1 %v2869_v21  ;;  %v1706_v21 = vld [vmem:[#allocation2 + $0x20] sm:$0xff]  ;;  %v2923_v24 = vpack.c.bf16 %v1747_v39, %v1743_v38  ;;  %v1780_v38 = vld [vmem:[#allocation2 + $0x270] sm:$0xff]  ;;  %v1783_v39 = vld [vmem:[#allocation2 + $0x288] sm:$0xff] }
 0x8e6   : > { %2872 = vmatprep.subr.bf16.mxu1 %v2871_v22  ;;  %v1704_v22 = vld [vmem:[#allocation2 + $0x10] sm:$0xff]  ;;  %v2905_v10 = vpack.c.bf16 %v1706_v21, %v1702_v20  ;;  %v2921_v20 = vpack.c.bf16 %v1738_v29, %v1734_v28  ;;  %v2985_v21 = vpack.c.bf16 %v1740_v42, %v1736_v16  ;;  %v1774_v29 = vld [vmem:[#allocation2 + $0x240] sm:$0xff] }
 0x8e7   : > { %v1776_v42 = vld [vmem:[#allocation2 + $0x250] sm:$0xff] }
 0x8e9   : > { %2874 = vmatpush1.bf16.msra.mxu1 %v2873_v33  ;;  %v1713_v33 = vld [vmem:[#allocation2 + $0x58] sm:$0xff] }
 0x8ea   : > { %2876 = vmatprep.subr.bf16.mxu1 %v2875_v34  ;;  %v1717_v34 = vld [vmem:[#allocation2 + $0x78] sm:$0xff] }
 0x8eb   : > { %v2971_v40 = vpack.c.bf16 %v1717_v34, %v1713_v33  ;;  %v1748_v33 = vld [vmem:[#allocation2 + $0x170] sm:$0xff]  ;;  %v1751_v34 = vld [vmem:[#allocation2 + $0x188] sm:$0xff] }
 0x8ed   : > { %2878 = vmatpush1.bf16.msra.mxu1 %v2877_v2  ;;  %v2969_v2 = vpack.c.bf16 %v1708_v23, %v1704_v22  ;;  %v1742_v22 = vld [vmem:[#allocation2 + $0x140] sm:$0xff] }
 0x8ee   : > { %2880 = vmatprep.subr.bf16.mxu1 %v2879_v11  ;;  %v1710_v11 = vld [vmem:[#allocation2 + $0x40] sm:$0xff] }
 0x8ef   : > { %v1746_v23 = vld [vmem:[#allocation2 + $0x160] sm:$0xff] }
 0x8f1   : > { %2882 = vmatpush1.bf16.msra.mxu1 %v2881_v44  ;;  %v1712_v44 = vld [vmem:[#allocation2 + $0x50] sm:$0xff] }
 0x8f2   : > { %2884 = vmatprep.subr.bf16.mxu1 %v2883_v7  ;;  %v1716_v7 = vld [vmem:[#allocation2 + $0x70] sm:$0xff] }
 0x8f5   : > { %2886 = vmatpush1.bf16.msra.mxu1 %v2885_v46  ;;  %v2909_v46 = vpack.c.bf16 %v1714_v12, %v1710_v11  ;;  %v2989_v11 = vpack.c.bf16 %v1748_v33, %v1744_v30  ;;  %v1750_v12 = vld [vmem:[#allocation2 + $0x180] sm:$0xff]  ;;  %v1784_v33 = vld [vmem:[#allocation2 + $0x290] sm:$0xff] }
 0x8f6   : > { %2888 = vmatprep.subr.bf16.mxu1 %v2887_v48  ;;  %v2973_v48 = vpack.c.bf16 %v1716_v7, %v1712_v44  ;;  %v1752_v7 = vld [vmem:[#allocation2 + $0x190] sm:$0xff] }
 0x8f9   : > { %2890 = vmatpush1.bf16.msra.mxu1 %v2889_v51  ;;  %v1720_v51 = vld [vmem:[#allocation2 + $0x90] sm:$0xff] }
 0x8fa   : > { %2892 = vmatprep.subr.bf16.mxu1 %v2891_v52  ;;  %v1724_v52 = vld [vmem:[#allocation2 + $0xb0] sm:$0xff] }
 0x8fd   : > { %2894 = vmatpush1.bf16.msra.mxu1 %v2893_v63  ;;  %v2913_v63 = vpack.c.bf16 %v1722_v32, %v1718_v50  ;;  %v2993_v50 = vpack.c.bf16 %v1756_v14, %v1752_v7  ;;  %v1758_v32 = vld [vmem:[#allocation2 + $0x1c0] sm:$0xff]  ;;  %v1792_v14 = vld [vmem:[#allocation2 + $0x2d0] sm:$0xff] }
 0x8fe   : > { %2896 = vmatprep.subr.bf16.mxu1 %v2895_v54  ;;  %v2977_v54 = vpack.c.bf16 %v1724_v52, %v1720_v51  ;;  %v1760_v52 = vld [vmem:[#allocation2 + $0x1d0] sm:$0xff] }
 0x901   : > { %2898 = vmatpush1.bf16.msra.mxu1 %v2897_v57  ;;  %v2915_v57 = vpack.c.bf16 %v1731_v60, %v1727_v53  ;;  %v1764_v53 = vld [vmem:[#allocation2 + $0x1f0] sm:$0xff]  ;;  %v1767_v60 = vld [vmem:[#allocation2 + $0x208] sm:$0xff] }
 0x902   : > { %2900 = vmatprep.subr.bf16.mxu1 %v2899_v27  ;;  %v2917_v27 = vpack.c.bf16 %v1730_v56, %v1726_v55  ;;  %v2997_v55 = vpack.c.bf16 %v1764_v53, %v1760_v52  ;;  %v1766_v56 = vld [vmem:[#allocation2 + $0x200] sm:$0xff]  ;;  %v1800_v53 = vld [vmem:[#allocation2 + $0x310] sm:$0xff] }
 0x905   : > { %2902 = vmatpush1.bf16.msra.mxu1 %v2901_v18  ;;  %v2983_v18 = vpack.c.bf16 %v1741_v26, %v1737_v15  ;;  %v1779_v15 = vld [vmem:[#allocation2 + $0x268] sm:$0xff]  ;;  %v1777_v26 = vld [vmem:[#allocation2 + $0x258] sm:$0xff] }
 0x906   : > { %2968 = vmatprep.subr.bf16.mxu1 %v2967_v19  ;;  %v1749_v19 = vld [vmem:[#allocation2 + $0x178] sm:$0xff] }
 0x99b   : > { %v1697_v25 = vpop.f32.mrb[12].mxu1 }
 0x99c   : > { %v1699_v36 = vpop.f32.mrb[13].mxu1  ;;  %v4162_v31 = vadd.f32 %v1697_v25, %v1626_v35  ;;  %v2987_v25 = vpack.c.bf16 %v1749_v19, %v1745_v43  ;;  %v1787_v43 = vld [vmem:[#allocation2 + $0x2a8] sm:$0xff]  ;;  %v1785_v19 = vld [vmem:[#allocation2 + $0x298] sm:$0xff] }
 0x99d   : > { %v4160_v9 = vadd.f32 %v1699_v36, %v1626_v35  ;;  %v1755_v35 = vld [vmem:[#allocation2 + $0x1a8] sm:$0xff]  ;;  %v1753_v36 = vld [vmem:[#allocation2 + $0x198] sm:$0xff] }
 0x99f   : > { %2022 = vmatprep.mubr.f32.mxu0 %v4160_v9  ;;  %2093 = vmatprep.mubr.f32.mxu1 %v4160_v9 }
 0x9a0   : > { %2023 = vmatmul.mubr.f32.vlgmr.msra.gmra.mrb[14].mxu0 %v4162_v31  ;;  %2094 = vmatmul.mubr.f32.vlgmr.msra.gmra.mrb[14].mxu1 %v4162_v31 }
 0x9a1   : > { %2906 = vmatpush1.bf16.msra.mxu0 %v2905_v10  ;;  %2970 = vmatpush1.bf16.msra.mxu1 %v2969_v2  ;;  %v1757_v10 = vld [vmem:[#allocation2 + $0x1b8] sm:$0xff]  ;;  %v2925_v2 = vpack.c.bf16 %v1746_v23, %v1742_v22  ;;  %v3005_v22 = vpack.c.bf16 %v1780_v38, %v1776_v42  ;;  %v1782_v23 = vld [vmem:[#allocation2 + $0x280] sm:$0xff]  ;;  %v1816_v38 = vld [vmem:[#allocation2 + $0x390] sm:$0xff] }
 0x9a2   : > { %2908 = vmatprep.subr.bf16.mxu0 %v2907_v37  ;;  %2972 = vmatprep.subr.bf16.mxu1 %v2971_v40  ;;  %v1754_v37 = vld [vmem:[#allocation2 + $0x1a0] sm:$0xff]  ;;  %v2927_v40 = vpack.c.bf16 %v1755_v35, %v1751_v34  ;;  %v2991_v44 = vpack.c.bf16 %v1757_v10, %v1753_v36  ;;  %v1788_v34 = vld [vmem:[#allocation2 + $0x2b0] sm:$0xff]  ;;  %v1791_v35 = vld [vmem:[#allocation2 + $0x2c8] sm:$0xff] }
 0x9a3   : > { %2164 = vmatprep.mubr.f32.mxu0 %v3605_v6  ;;  %2235 = vmatprep.mubr.f32.mxu1 %v3605_v6  ;;  %v2981_v6 = vpack.c.bf16 %v1732_v13, %v1728_v8  ;;  %v1768_v13 = vld [vmem:[#allocation2 + $0x210] sm:$0xff]  ;;  %v1795_v36 = vld [vmem:[#allocation2 + $0x2e8] sm:$0xff]  ;;  %v1793_v10 = vld [vmem:[#allocation2 + $0x2d8] sm:$0xff] }
 0x9a4   : > { %v3001_v28 = vpack.c.bf16 %v1772_v47, %v1768_v13  ;;  %v1808_v47 = vld [vmem:[#allocation2 + $0x350] sm:$0xff] }
 0x9a5   : > { %2910 = vmatpush1.bf16.msra.mxu0 %v2909_v46  ;;  %2974 = vmatpush1.bf16.msra.mxu1 %v2973_v48  ;;  %v1765_v46 = vld [vmem:[#allocation2 + $0x1f8] sm:$0xff]  ;;  %v2929_v48 = vpack.c.bf16 %v1754_v37, %v1750_v12  ;;  %v3009_v12 = vpack.c.bf16 %v1788_v34, %v1784_v33  ;;  %v1790_v37 = vld [vmem:[#allocation2 + $0x2c0] sm:$0xff]  ;;  %v1824_v34 = vld [vmem:[#allocation2 + $0x3d0] sm:$0xff] }
 0x9a6   : > { %2912 = vmatprep.subr.bf16.mxu0 %v2911_v41  ;;  %2976 = vmatprep.subr.bf16.mxu1 %v2975_v58  ;;  %v1762_v41 = vld [vmem:[#allocation2 + $0x1e0] sm:$0xff]  ;;  %v2931_v58 = vpack.c.bf16 %v1763_v3, %v1759_v59  ;;  %v2995_v51 = vpack.c.bf16 %v1765_v46, %v1761_v45  ;;  %v1796_v59 = vld [vmem:[#allocation2 + $0x2f0] sm:$0xff]  ;;  %v1799_v3 = vld [vmem:[#allocation2 + $0x308] sm:$0xff] }
 0x9a7   : > { %v1803_v45 = vld [vmem:[#allocation2 + $0x328] sm:$0xff]  ;;  %v1801_v46 = vld [vmem:[#allocation2 + $0x318] sm:$0xff] }
 0x9a9   : > { %2914 = vmatpush1.bf16.msra.mxu0 %v2913_v63  ;;  %2978 = vmatpush1.bf16.msra.mxu1 %v2977_v54  ;;  %v1773_v63 = vld [vmem:[#allocation2 + $0x238] sm:$0xff]  ;;  %v2933_v54 = vpack.c.bf16 %v1762_v41, %v1758_v32  ;;  %v3013_v32 = vpack.c.bf16 %v1796_v59, %v1792_v14  ;;  %v1798_v41 = vld [vmem:[#allocation2 + $0x300] sm:$0xff]  ;;  %v2245_v59 = vld [vmem:[#allocation5 + $0x410] sm:$0xff] }
 0x9aa   : > { %2916 = vmatprep.subr.bf16.mxu0 %v2915_v57  ;;  %2980 = vmatprep.subr.bf16.mxu1 %v2979_v4  ;;  %v1770_v57 = vld [vmem:[#allocation2 + $0x220] sm:$0xff]  ;;  %v2935_v4 = vpack.c.bf16 %v1771_v61, %v1767_v60  ;;  %v2999_v8 = vpack.c.bf16 %v1773_v63, %v1769_v62  ;;  %v1804_v60 = vld [vmem:[#allocation2 + $0x330] sm:$0xff]  ;;  %v1807_v61 = vld [vmem:[#allocation2 + $0x348] sm:$0xff] }
 0x9ab   : > { %v1811_v62 = vld [vmem:[#allocation2 + $0x368] sm:$0xff]  ;;  %v1809_v63 = vld [vmem:[#allocation2 + $0x358] sm:$0xff]  ;;  %v2247_v14 = vld [vmem:[#allocation5 + $0x420] sm:$0xff] }
 0x9ad   : > { %2918 = vmatpush1.bf16.msra.mxu0 %v2917_v27  ;;  %2982 = vmatpush1.bf16.msra.mxu1 %v2981_v6  ;;  %v1781_v27 = vld [vmem:[#allocation2 + $0x278] sm:$0xff]  ;;  %v2937_v6 = vpack.c.bf16 %v1770_v57, %v1766_v56  ;;  %v3017_v56 = vpack.c.bf16 %v1804_v60, %v1800_v53  ;;  %v1806_v57 = vld [vmem:[#allocation2 + $0x340] sm:$0xff]  ;;  %v2374_v53 = vrot.slane %v4160_v9, 1 }
 0x9ae   : > { %2920 = vmatprep.subr.bf16.mxu0 %v2919_v17  ;;  %2984 = vmatprep.subr.bf16.mxu1 %v2983_v18  ;;  %v1778_v17 = vld [vmem:[#allocation2 + $0x260] sm:$0xff]  ;;  %v2939_v18 = vpack.c.bf16 %v1779_v15, %v1775_v49  ;;  %v3003_v16 = vpack.c.bf16 %v1781_v27, %v1777_v26  ;;  %v1812_v49 = vld [vmem:[#allocation2 + $0x370] sm:$0xff]  ;;  %v1815_v15 = vld [vmem:[#allocation2 + $0x388] sm:$0xff] }
 0x9af   : > { %v1819_v26 = vld [vmem:[#allocation2 + $0x3a8] sm:$0xff]  ;;  %v1817_v27 = vld [vmem:[#allocation2 + $0x398] sm:$0xff]  ;;  %v2263_v9 = vld [vmem:[#allocation5 + $0x4a0] sm:$0xff] }
 0x9b1   : > { %2922 = vmatpush1.bf16.msra.mxu0 %v2921_v20  ;;  %2986 = vmatpush1.bf16.msra.mxu1 %v2985_v21  ;;  %v1789_v20 = vld [vmem:[#allocation2 + $0x2b8] sm:$0xff]  ;;  %v2941_v21 = vpack.c.bf16 %v1778_v17, %v1774_v29  ;;  %v3021_v29 = vpack.c.bf16 %v1812_v49, %v1808_v47  ;;  %v1814_v17 = vld [vmem:[#allocation2 + $0x380] sm:$0xff]  ;;  %v2261_v47 = vld [vmem:[#allocation5 + $0x490] sm:$0xff] }
 0x9b2   : > { %2924 = vmatprep.subr.bf16.mxu0 %v2923_v24  ;;  %2988 = vmatprep.subr.bf16.mxu1 %v2987_v25  ;;  %v1786_v24 = vld [vmem:[#allocation2 + $0x2a0] sm:$0xff]  ;;  %v2943_v25 = vpack.c.bf16 %v1787_v43, %v1783_v39  ;;  %v3007_v30 = vpack.c.bf16 %v1789_v20, %v1785_v19  ;;  %v1820_v39 = vld [vmem:[#allocation2 + $0x3b0] sm:$0xff]  ;;  %v1823_v43 = vld [vmem:[#allocation2 + $0x3c8] sm:$0xff] }
 0x9b3   : > { %v1827_v19 = vld [vmem:[#allocation2 + $0x3e8] sm:$0xff]  ;;  %v1825_v20 = vld [vmem:[#allocation2 + $0x3d8] sm:$0xff] }
 0x9b5   : > { %2926 = vmatpush1.bf16.msra.mxu0 %v2925_v2  ;;  %2990 = vmatpush1.bf16.msra.mxu1 %v2989_v11  ;;  %v1797_v2 = vld [vmem:[#allocation2 + $0x2f8] sm:$0xff]  ;;  %v2945_v11 = vpack.c.bf16 %v1786_v24, %v1782_v23  ;;  %v3025_v23 = vpack.c.bf16 %v1820_v39, %v1816_v38  ;;  %v1822_v24 = vld [vmem:[#allocation2 + $0x3c0] sm:$0xff]  ;;  %v2273_v39 = vld [vmem:[#allocation5 + $0x4f0] sm:$0xff] }
 0x9b6   : > { %2928 = vmatprep.subr.bf16.mxu0 %v2927_v40  ;;  %2992 = vmatprep.subr.bf16.mxu1 %v2991_v44  ;;  %v1794_v40 = vld [vmem:[#allocation2 + $0x2e0] sm:$0xff]  ;;  %v2947_v44 = vpack.c.bf16 %v1795_v36, %v1791_v35  ;;  %v3011_v7 = vpack.c.bf16 %v1797_v2, %v1793_v10  ;;  %v1828_v35 = vld [vmem:[#allocation2 + $0x3f0] sm:$0xff]  ;;  %v2244_v36 = vld [vmem:[#allocation5 + $0x408] sm:$0xff] }
 0x9b7   : > { %v2248_v10 = vld [vmem:[#allocation5 + $0x428] sm:$0xff]  ;;  %v2246_v2 = vld [vmem:[#allocation5 + $0x418] sm:$0xff] }
 0x9b9   : > { %2930 = vmatpush1.bf16.msra.mxu0 %v2929_v48  ;;  %2994 = vmatpush1.bf16.msra.mxu1 %v2993_v50  ;;  %v1805_v48 = vld [vmem:[#allocation2 + $0x338] sm:$0xff]  ;;  %v2949_v50 = vpack.c.bf16 %v1794_v40, %v1790_v37  ;;  %v3029_v37 = vpack.c.bf16 %v1828_v35, %v1824_v34  ;;  %v3031_v40 = vpack.c.bf16 %v2248_v10, %v2244_v36  ;;  %v2281_v35 = vld [vmem:[#allocation5 + $0x530] sm:$0xff]  ;;  %v2284_v36 = vld [vmem:[#allocation5 + $0x548] sm:$0xff] }
 0x9ba   : > { %2932 = vmatprep.subr.bf16.mxu0 %v2931_v58  ;;  %2996 = vmatprep.subr.bf16.mxu1 %v2995_v51  ;;  %v1802_v58 = vld [vmem:[#allocation2 + $0x320] sm:$0xff]  ;;  %v2951_v51 = vpack.c.bf16 %v1803_v45, %v1799_v3  ;;  %v3015_v52 = vpack.c.bf16 %v1805_v48, %v1801_v46  ;;  %v2249_v3 = vld [vmem:[#allocation5 + $0x430] sm:$0xff]  ;;  %v2252_v45 = vld [vmem:[#allocation5 + $0x448] sm:$0xff] }
 0x9bb   : > { %v2256_v46 = vld [vmem:[#allocation5 + $0x468] sm:$0xff]  ;;  %v2254_v48 = vld [vmem:[#allocation5 + $0x458] sm:$0xff] }
 0x9bc   : > { %v3035_v60 = vpack.c.bf16 %v2256_v46, %v2252_v45  ;;  %v2288_v10 = vld [vmem:[#allocation5 + $0x568] sm:$0xff] }
 0x9bd   : > { %2934 = vmatpush1.bf16.msra.mxu0 %v2933_v54  ;;  %2998 = vmatpush1.bf16.msra.mxu1 %v2997_v55  ;;  %v1813_v54 = vld [vmem:[#allocation2 + $0x378] sm:$0xff]  ;;  %v2953_v55 = vpack.c.bf16 %v1802_v58, %v1798_v41  ;;  %v3097_v41 = vpack.c.bf16 %v2249_v3, %v2245_v59  ;;  %v2251_v58 = vld [vmem:[#allocation5 + $0x440] sm:$0xff]  ;;  %v2289_v3 = vld [vmem:[#allocation5 + $0x570] sm:$0xff] }
 0x9be   : > { %2936 = vmatprep.subr.bf16.mxu0 %v2935_v4  ;;  %3000 = vmatprep.subr.bf16.mxu1 %v2999_v8  ;;  %v1810_v4 = vld [vmem:[#allocation2 + $0x360] sm:$0xff]  ;;  %v2955_v8 = vpack.c.bf16 %v1811_v62, %v1807_v61  ;;  %v3019_v13 = vpack.c.bf16 %v1813_v54, %v1809_v63  ;;  %v2257_v62 = vld [vmem:[#allocation5 + $0x470] sm:$0xff]  ;;  %v2260_v63 = vld [vmem:[#allocation5 + $0x488] sm:$0xff] }
 0x9bf   : > { %v2264_v54 = vld [vmem:[#allocation5 + $0x4a8] sm:$0xff] }
 0x9c0   : > { %v2292_v45 = vld [vmem:[#allocation5 + $0x588] sm:$0xff] }
 0x9c1   : > { %2938 = vmatpush1.bf16.msra.mxu0 %v2937_v6  ;;  %3002 = vmatpush1.bf16.msra.mxu1 %v3001_v28  ;;  %v1821_v6 = vld [vmem:[#allocation2 + $0x3b8] sm:$0xff]  ;;  %v2957_v28 = vpack.c.bf16 %v1810_v4, %v1806_v57  ;;  %v2296_v46 = vld [vmem:[#allocation5 + $0x5a8] sm:$0xff] }
 0x9c2   : > { %2940 = vmatprep.subr.bf16.mxu0 %v2939_v18  ;;  %3004 = vmatprep.subr.bf16.mxu1 %v3003_v16  ;;  %v1818_v18 = vld [vmem:[#allocation2 + $0x3a0] sm:$0xff]  ;;  %v2959_v16 = vpack.c.bf16 %v1819_v26, %v1815_v15  ;;  %v3023_v42 = vpack.c.bf16 %v1821_v6, %v1817_v27  ;;  %v2265_v15 = vld [vmem:[#allocation5 + $0x4b0] sm:$0xff]  ;;  %v2268_v26 = vld [vmem:[#allocation5 + $0x4c8] sm:$0xff] }
 0x9c3   : > { %v2272_v27 = vld [vmem:[#allocation5 + $0x4e8] sm:$0xff]  ;;  %v2270_v6 = vld [vmem:[#allocation5 + $0x4d8] sm:$0xff] }
 0x9c5   : > { %2942 = vmatpush1.bf16.msra.mxu0 %v2941_v21  ;;  %3006 = vmatpush1.bf16.msra.mxu1 %v3005_v22  ;;  %v1829_v21 = vld [vmem:[#allocation2 + $0x3f8] sm:$0xff]  ;;  %v2961_v22 = vpack.c.bf16 %v1818_v18, %v1814_v17  ;;  %v3043_v17 = vpack.c.bf16 %v2272_v27, %v2268_v26  ;;  %v2267_v18 = vld [vmem:[#allocation5 + $0x4c0] sm:$0xff]  ;;  %v2312_v26 = vld [vmem:[#allocation5 + $0x628] sm:$0xff] }
 0x9c6   : > { %2944 = vmatprep.subr.bf16.mxu0 %v2943_v25  ;;  %3008 = vmatprep.subr.bf16.mxu1 %v3007_v30  ;;  %v1826_v25 = vld [vmem:[#allocation2 + $0x3e0] sm:$0xff]  ;;  %v2963_v30 = vpack.c.bf16 %v1827_v19, %v1823_v43  ;;  %v3027_v33 = vpack.c.bf16 %v1829_v21, %v1825_v20  ;;  %v2276_v43 = vld [vmem:[#allocation5 + $0x508] sm:$0xff]  ;;  %v2278_v20 = vld [vmem:[#allocation5 + $0x518] sm:$0xff] }
 0x9c7   : > { %v2280_v19 = vld [vmem:[#allocation5 + $0x528] sm:$0xff]  ;;  %v2282_v21 = vld [vmem:[#allocation5 + $0x538] sm:$0xff] }
 0x9c8   : > { %v3111_v34 = vpack.c.bf16 %v2282_v21, %v2278_v20  ;;  %v2310_v27 = vld [vmem:[#allocation5 + $0x618] sm:$0xff] }
 0x9c9   : > { %2946 = vmatpush1.bf16.msra.mxu0 %v2945_v11  ;;  %3010 = vmatpush1.bf16.msra.mxu1 %v3009_v12  ;;  %v2250_v11 = vld [vmem:[#allocation5 + $0x438] sm:$0xff]  ;;  %v2965_v12 = vpack.c.bf16 %v1826_v25, %v1822_v24  ;;  %v3047_v24 = vpack.c.bf16 %v2280_v19, %v2276_v43  ;;  %v2275_v25 = vld [vmem:[#allocation5 + $0x500] sm:$0xff]  ;;  %v2320_v43 = vld [vmem:[#allocation5 + $0x668] sm:$0xff] }
 0x9ca   : > { %2948 = vmatprep.subr.bf16.mxu0 %v2947_v44  ;;  %3012 = vmatprep.subr.bf16.mxu1 %v3011_v7  ;;  %v3095_v44 = vpack.c.bf16 %v2250_v11, %v2246_v2  ;;  %v2243_v7 = vld [vmem:[#allocation5 + $0x400] sm:$0xff]  ;;  %v2286_v2 = vld [vmem:[#allocation5 + $0x558] sm:$0xff] }
 0x9cb   : > { %v2290_v11 = vld [vmem:[#allocation5 + $0x578] sm:$0xff] }
 0x9cc   : > { %v3115_v59 = vpack.c.bf16 %v2290_v11, %v2286_v2  ;;  %v2318_v19 = vld [vmem:[#allocation5 + $0x658] sm:$0xff] }
 0x9cd   : > { %2950 = vmatpush1.bf16.msra.mxu0 %v2949_v50  ;;  %3014 = vmatpush1.bf16.msra.mxu1 %v3013_v32  ;;  %v2258_v50 = vld [vmem:[#allocation5 + $0x478] sm:$0xff]  ;;  %v3033_v32 = vpack.c.bf16 %v2247_v14, %v2243_v7  ;;  %v2287_v7 = vld [vmem:[#allocation5 + $0x560] sm:$0xff]  ;;  %v2285_v14 = vld [vmem:[#allocation5 + $0x550] sm:$0xff] }
 0x9ce   : > { %2952 = vmatprep.subr.bf16.mxu0 %v2951_v51  ;;  %3016 = vmatprep.subr.bf16.mxu1 %v3015_v52  ;;  %v2255_v51 = vld [vmem:[#allocation5 + $0x460] sm:$0xff]  ;;  %v2253_v52 = vld [vmem:[#allocation5 + $0x450] sm:$0xff]  ;;  %v3099_v61 = vpack.c.bf16 %v2258_v50, %v2254_v48  ;;  %v2294_v48 = vld [vmem:[#allocation5 + $0x598] sm:$0xff] }
 0x9cf   : > { %v3037_v57 = vpack.c.bf16 %v2255_v51, %v2251_v58  ;;  %v3101_v4 = vpack.c.bf16 %v2257_v62, %v2253_v52  ;;  %v2298_v50 = vld [vmem:[#allocation5 + $0x5b8] sm:$0xff]  ;;  %v3055_v58 = vpack.c.bf16 %v2296_v46, %v2292_v45  ;;  %v2291_v51 = vld [vmem:[#allocation5 + $0x580] sm:$0xff]  ;;  %v2300_v62 = vld [vmem:[#allocation5 + $0x5c8] sm:$0xff] }
 0x9d0   : > { %v2295_v52 = vld [vmem:[#allocation5 + $0x5a0] sm:$0xff]  ;;  %v2322_v20 = vld [vmem:[#allocation5 + $0x678] sm:$0xff]  ;;  %v2336_v45 = vld [vmem:[#allocation5 + $0x6e8] sm:$0xff] }
 0x9d1   : > { %2954 = vmatpush1.bf16.msra.mxu0 %v2953_v55  ;;  %3018 = vmatpush1.bf16.msra.mxu1 %v3017_v56  ;;  %v2262_v55 = vld [vmem:[#allocation5 + $0x498] sm:$0xff] }
 0x9d2   : > { %2956 = vmatprep.subr.bf16.mxu0 %v2955_v8  ;;  %3020 = vmatprep.subr.bf16.mxu1 %v3019_v13  ;;  %v2266_v56 = vld [vmem:[#allocation5 + $0x4b8] sm:$0xff]  ;;  %v3039_v8 = vpack.c.bf16 %v2264_v54, %v2260_v63  ;;  %v2259_v13 = vld [vmem:[#allocation5 + $0x480] sm:$0xff]  ;;  %v2304_v63 = vld [vmem:[#allocation5 + $0x5e8] sm:$0xff] }
 0x9d3   : > { %v3103_v49 = vpack.c.bf16 %v2266_v56, %v2262_v55  ;;  %v2302_v54 = vld [vmem:[#allocation5 + $0x5d8] sm:$0xff]  ;;  %v3057_v56 = vpack.c.bf16 %v2295_v52, %v2291_v51  ;;  %v2335_v51 = vld [vmem:[#allocation5 + $0x6e0] sm:$0xff]  ;;  %v2333_v52 = vld [vmem:[#allocation5 + $0x6d0] sm:$0xff] }
 0x9d4   : > { %v2306_v55 = vld [vmem:[#allocation5 + $0x5f8] sm:$0xff] }
 0x9d5   : > { %2958 = vmatpush1.bf16.msra.mxu0 %v2957_v28  ;;  %3022 = vmatpush1.bf16.msra.mxu1 %v3021_v29  ;;  %v3041_v28 = vpack.c.bf16 %v2263_v9, %v2259_v13  ;;  %v3105_v29 = vpack.c.bf16 %v2265_v15, %v2261_v47  ;;  %v2303_v13 = vld [vmem:[#allocation5 + $0x5e0] sm:$0xff]  ;;  %v2301_v9 = vld [vmem:[#allocation5 + $0x5d0] sm:$0xff]  ;;  %v3123_v47 = vpack.c.bf16 %v2306_v55, %v2302_v54  ;;  %v2308_v15 = vld [vmem:[#allocation5 + $0x608] sm:$0xff] }
 0x9d6   : > { %2960 = vmatprep.subr.bf16.mxu0 %v2959_v16  ;;  %3024 = vmatprep.subr.bf16.mxu1 %v3023_v42  ;;  %v2271_v16 = vld [vmem:[#allocation5 + $0x4e0] sm:$0xff]  ;;  %v2269_v42 = vld [vmem:[#allocation5 + $0x4d0] sm:$0xff]  ;;  %v2330_v2 = vld [vmem:[#allocation5 + $0x6b8] sm:$0xff] }
 0x9d7   : > { %v2334_v46 = vld [vmem:[#allocation5 + $0x6d8] sm:$0xff] }
 0x9d8   : > { %v2346_v54 = vld [vmem:[#allocation5 + $0x738] sm:$0xff] }
 0x9d9   : > { %2962 = vmatpush1.bf16.msra.mxu0 %v2961_v22  ;;  %3026 = vmatpush1.bf16.msra.mxu1 %v3025_v23  ;;  %v3045_v22 = vpack.c.bf16 %v2271_v16, %v2267_v18  ;;  %v3109_v23 = vpack.c.bf16 %v2273_v39, %v2269_v42  ;;  %v2311_v18 = vld [vmem:[#allocation5 + $0x620] sm:$0xff]  ;;  %v2309_v16 = vld [vmem:[#allocation5 + $0x610] sm:$0xff]  ;;  %v2316_v39 = vld [vmem:[#allocation5 + $0x648] sm:$0xff] }
 0x9da   : > { %2964 = vmatprep.subr.bf16.mxu0 %v2963_v30  ;;  %3028 = vmatprep.subr.bf16.mxu1 %v3027_v33  ;;  %v2279_v30 = vld [vmem:[#allocation5 + $0x520] sm:$0xff]  ;;  %v2277_v33 = vld [vmem:[#allocation5 + $0x510] sm:$0xff] }
 0x9dd   : > { %2966 = vmatpush1.bf16.msra.mxu0 %v2965_v12  ;;  %3030 = vmatpush1.bf16.msra.mxu1 %v3029_v37  ;;  %v3049_v12 = vpack.c.bf16 %v2279_v30, %v2275_v25  ;;  %v3113_v37 = vpack.c.bf16 %v2281_v35, %v2277_v33  ;;  %v2319_v25 = vld [vmem:[#allocation5 + $0x660] sm:$0xff]  ;;  %v2317_v30 = vld [vmem:[#allocation5 + $0x650] sm:$0xff]  ;;  %v3131_v33 = vpack.c.bf16 %v2322_v20, %v2318_v19  ;;  %v2324_v35 = vld [vmem:[#allocation5 + $0x688] sm:$0xff] }
 0x9de   : > { %3032 = vmatprep.subr.bf16.mxu0 %v3031_v40  ;;  %3096 = vmatprep.subr.bf16.mxu1 %v3095_v44  ;;  %v3051_v40 = vpack.c.bf16 %v2288_v10, %v2284_v36  ;;  %v2283_v44 = vld [vmem:[#allocation5 + $0x540] sm:$0xff]  ;;  %v2328_v36 = vld [vmem:[#allocation5 + $0x6a8] sm:$0xff]  ;;  %v2326_v10 = vld [vmem:[#allocation5 + $0x698] sm:$0xff] }
 0x9df   : > { %v2362_v19 = vld [vmem:[#allocation5 + $0x7b8] sm:$0xff] }
 0x9e0   : > { %2165 = vmatmul.mubr.f32.vlgmr.msra.gmra.mrb[14].mxu0 %v3598_v5  ;;  %2236 = vmatmul.mubr.f32.vlgmr.msra.gmra.mrb[14].mxu1 %v3598_v5  ;;  %v2274_v5 = vld [vmem:[#allocation5 + $0x4f8] sm:$0xff] }
 0x9e1   : > { %3034 = vmatpush1.bf16.msra.mxu0 %v3033_v32  ;;  %2441 = vmatprep.mubr.f32.mxu0 %v2374_v53  ;;  %v3107_v38 = vpack.c.bf16 %v2274_v5, %v2270_v6  ;;  %v3053_v32 = vpack.c.bf16 %v2287_v7, %v2283_v44  ;;  %v2314_v6 = vld [vmem:[#allocation5 + $0x638] sm:$0xff]  ;;  %v2327_v44 = vld [vmem:[#allocation5 + $0x6a0] sm:$0xff]  ;;  %v2325_v7 = vld [vmem:[#allocation5 + $0x690] sm:$0xff] }
 0x9e2   : > { %3098 = vmatpush1.bf16.msra.mxu1 %v3097_v41  ;;  %2512 = vmatprep.mubr.f32.mxu1 %v2374_v53  ;;  %v3117_v41 = vpack.c.bf16 %v2289_v3, %v2285_v14  ;;  %v2293_v53 = vld [vmem:[#allocation5 + $0x590] sm:$0xff]  ;;  %v3127_v42 = vpack.c.bf16 %v2314_v6, %v2310_v27  ;;  %v3135_v14 = vpack.c.bf16 %v2330_v2, %v2326_v10  ;;  %v2332_v3 = vld [vmem:[#allocation5 + $0x6c8] sm:$0xff]  ;;  %v2354_v27 = vld [vmem:[#allocation5 + $0x778] sm:$0xff] }
 0x9e3   : > { %3036 = vmatprep.subr.bf16.mxu0 %v3035_v60  ;;  %3100 = vmatprep.subr.bf16.mxu1 %v3099_v61  ;;  %v3119_v60 = vpack.c.bf16 %v2298_v50, %v2294_v48  ;;  %v2297_v61 = vld [vmem:[#allocation5 + $0x5b0] sm:$0xff]  ;;  %v2338_v48 = vld [vmem:[#allocation5 + $0x6f8] sm:$0xff] }
 0x9e4   : > { %v2370_v10 = vld [vmem:[#allocation5 + $0x7f8] sm:$0xff] }
 0x9e5   : > { %3038 = vmatpush1.bf16.msra.mxu0 %v3037_v57  ;;  %v3121_v57 = vpack.c.bf16 %v2297_v61, %v2293_v53  ;;  %v3139_v53 = vpack.c.bf16 %v2338_v48, %v2334_v46  ;;  %v2340_v61 = vld [vmem:[#allocation5 + $0x708] sm:$0xff]  ;;  %v3386_v46 = vmov 1966171168  }
 0x9e6   : > { %3102 = vmatpush1.bf16.msra.mxu1 %v3101_v4  ;;  %3040 = vmatprep.subr.bf16.mxu0 %v3039_v8  ;;  %v3059_v4 = vpack.c.bf16 %v2304_v63, %v2300_v62  ;;  %v2299_v8 = vld [vmem:[#allocation5 + $0x5c0] sm:$0xff]  ;;  %v2344_v62 = vld [vmem:[#allocation5 + $0x728] sm:$0xff]  ;;  %v2342_v63 = vld [vmem:[#allocation5 + $0x718] sm:$0xff]  ;;  %v2538_v48 = vunpack.c.l.s4 %v3386_v46 }
 0x9e7   : > { %3104 = vmatprep.subr.bf16.mxu1 %v3103_v49  ;;  %v2305_v49 = vld [vmem:[#allocation5 + $0x5f0] sm:$0xff]  ;;  %v3061_v5 = vpack.c.bf16 %v2303_v13, %v2299_v8  ;;  %v2343_v8 = vld [vmem:[#allocation5 + $0x720] sm:$0xff] }
 0x9e8   : > { %v2341_v13 = vld [vmem:[#allocation5 + $0x710] sm:$0xff] }
 0x9e9   : > { %3042 = vmatpush1.bf16.msra.mxu0 %v3041_v28  ;;  %v3125_v28 = vpack.c.bf16 %v2305_v49, %v2301_v9  ;;  %v3143_v9 = vpack.c.bf16 %v2346_v54, %v2342_v63  ;;  %v2348_v49 = vld [vmem:[#allocation5 + $0x748] sm:$0xff] }
 0x9ea   : > { %3106 = vmatpush1.bf16.msra.mxu1 %v3105_v29  ;;  %3044 = vmatprep.subr.bf16.mxu0 %v3043_v17  ;;  %v3063_v29 = vpack.c.bf16 %v2312_v26, %v2308_v15  ;;  %v2307_v17 = vld [vmem:[#allocation5 + $0x600] sm:$0xff]  ;;  %v2352_v15 = vld [vmem:[#allocation5 + $0x768] sm:$0xff]  ;;  %v2350_v26 = vld [vmem:[#allocation5 + $0x758] sm:$0xff] }
 0x9eb   : > { %3108 = vmatprep.subr.bf16.mxu1 %v3107_v38  ;;  %v2313_v38 = vld [vmem:[#allocation5 + $0x630] sm:$0xff]  ;;  %v3065_v21 = vpack.c.bf16 %v2311_v18, %v2307_v17  ;;  %v2351_v17 = vld [vmem:[#allocation5 + $0x760] sm:$0xff] }
 0x9ec   : > { %v2349_v18 = vld [vmem:[#allocation5 + $0x750] sm:$0xff] }
 0x9ed   : > { %3046 = vmatpush1.bf16.msra.mxu0 %v3045_v22  ;;  %v3129_v22 = vpack.c.bf16 %v2313_v38, %v2309_v16  ;;  %v3147_v16 = vpack.c.bf16 %v2354_v27, %v2350_v26  ;;  %v2356_v38 = vld [vmem:[#allocation5 + $0x788] sm:$0xff] }
 0x9ee   : > { %3110 = vmatpush1.bf16.msra.mxu1 %v3109_v23  ;;  %3048 = vmatprep.subr.bf16.mxu0 %v3047_v24  ;;  %v3067_v23 = vpack.c.bf16 %v2320_v43, %v2316_v39  ;;  %v2315_v24 = vld [vmem:[#allocation5 + $0x640] sm:$0xff]  ;;  %v2360_v39 = vld [vmem:[#allocation5 + $0x7a8] sm:$0xff]  ;;  %v2358_v43 = vld [vmem:[#allocation5 + $0x798] sm:$0xff] }
 0x9ef   : > { %3112 = vmatprep.subr.bf16.mxu1 %v3111_v34  ;;  %v2321_v34 = vld [vmem:[#allocation5 + $0x670] sm:$0xff]  ;;  %v3069_v11 = vpack.c.bf16 %v2319_v25, %v2315_v24  ;;  %v2359_v24 = vld [vmem:[#allocation5 + $0x7a0] sm:$0xff] }
 0x9f0   : > { %v2357_v25 = vld [vmem:[#allocation5 + $0x790] sm:$0xff] }
 0x9f1   : > { %3050 = vmatpush1.bf16.msra.mxu0 %v3049_v12  ;;  %v3133_v12 = vpack.c.bf16 %v2321_v34, %v2317_v30  ;;  %v3151_v30 = vpack.c.bf16 %v2362_v19, %v2358_v43  ;;  %v2364_v34 = vld [vmem:[#allocation5 + $0x7c8] sm:$0xff] }
 0x9f2   : > { %3114 = vmatpush1.bf16.msra.mxu1 %v3113_v37  ;;  %3052 = vmatprep.subr.bf16.mxu0 %v3051_v40  ;;  %v3071_v37 = vpack.c.bf16 %v2328_v36, %v2324_v35  ;;  %v2323_v40 = vld [vmem:[#allocation5 + $0x680] sm:$0xff]  ;;  %v2368_v35 = vld [vmem:[#allocation5 + $0x7e8] sm:$0xff]  ;;  %v2366_v36 = vld [vmem:[#allocation5 + $0x7d8] sm:$0xff] }
 0x9f3   : > { %3116 = vmatprep.subr.bf16.mxu1 %v3115_v59  ;;  %v2329_v59 = vld [vmem:[#allocation5 + $0x6b0] sm:$0xff]  ;;  %v3073_v50 = vpack.c.bf16 %v2327_v44, %v2323_v40  ;;  %v2367_v40 = vld [vmem:[#allocation5 + $0x7e0] sm:$0xff]  ;;  %v3155_v44 = vpack.c.bf16 %v2370_v10, %v2366_v36 }
 0x9f5   : > { %3054 = vmatpush1.bf16.msra.mxu0 %v3053_v32  ;;  %v3137_v32 = vpack.c.bf16 %v2329_v59, %v2325_v7  ;;  %v2365_v7 = vld [vmem:[#allocation5 + $0x7d0] sm:$0xff] }
 0x9f6   : > { %3118 = vmatpush1.bf16.msra.mxu1 %v3117_v41  ;;  %3056 = vmatprep.subr.bf16.mxu0 %v3055_v58  ;;  %v3075_v41 = vpack.c.bf16 %v2336_v45, %v2332_v3  ;;  %v2331_v58 = vld [vmem:[#allocation5 + $0x6c0] sm:$0xff]  ;;  %v2373_v45 = vrot.slane %v4162_v31, 1 }
 0x9f7   : > { %3120 = vmatprep.subr.bf16.mxu1 %v3119_v60  ;;  %v2337_v60 = vld [vmem:[#allocation5 + $0x6f0] sm:$0xff]  ;;  %v3077_v55 = vpack.c.bf16 %v2335_v51, %v2331_v58 }
 0x9f9   : > { %3058 = vmatpush1.bf16.msra.mxu0 %v3057_v56  ;;  %v3141_v56 = vpack.c.bf16 %v2337_v60, %v2333_v52 }
 0x9fa   : > { %3122 = vmatpush1.bf16.msra.mxu1 %v3121_v57  ;;  %3060 = vmatprep.subr.bf16.mxu0 %v3059_v4  ;;  %v3079_v57 = vpack.c.bf16 %v2344_v62, %v2340_v61  ;;  %v2339_v4 = vld [vmem:[#allocation5 + $0x700] sm:$0xff] }
 0x9fb   : > { %3124 = vmatprep.subr.bf16.mxu1 %v3123_v47  ;;  %v2345_v47 = vld [vmem:[#allocation5 + $0x730] sm:$0xff]  ;;  %v3081_v6 = vpack.c.bf16 %v2343_v8, %v2339_v4 }
 0x9fd   : > { %3062 = vmatpush1.bf16.msra.mxu0 %v3061_v5  ;;  %v3145_v5 = vpack.c.bf16 %v2345_v47, %v2341_v13 }
 0x9fe   : > { %3126 = vmatpush1.bf16.msra.mxu1 %v3125_v28  ;;  %3064 = vmatprep.subr.bf16.mxu0 %v3063_v29  ;;  %v3083_v28 = vpack.c.bf16 %v2352_v15, %v2348_v49  ;;  %v2347_v29 = vld [vmem:[#allocation5 + $0x740] sm:$0xff] }
 0x9ff   : > { %3128 = vmatprep.subr.bf16.mxu1 %v3127_v42  ;;  %v2353_v42 = vld [vmem:[#allocation5 + $0x770] sm:$0xff]  ;;  %v3085_v20 = vpack.c.bf16 %v2351_v17, %v2347_v29 }
 0xa01   : > { %3066 = vmatpush1.bf16.msra.mxu0 %v3065_v21  ;;  %v3149_v21 = vpack.c.bf16 %v2353_v42, %v2349_v18 }
 0xa02   : > { %3130 = vmatpush1.bf16.msra.mxu1 %v3129_v22  ;;  %3068 = vmatprep.subr.bf16.mxu0 %v3067_v23  ;;  %v3087_v22 = vpack.c.bf16 %v2360_v39, %v2356_v38  ;;  %v2355_v23 = vld [vmem:[#allocation5 + $0x780] sm:$0xff] }
 0xa03   : > { %3132 = vmatprep.subr.bf16.mxu1 %v3131_v33  ;;  %v2361_v33 = vld [vmem:[#allocation5 + $0x7b0] sm:$0xff]  ;;  %v3089_v2 = vpack.c.bf16 %v2359_v24, %v2355_v23 }
 0xa05   : > { %3070 = vmatpush1.bf16.msra.mxu0 %v3069_v11  ;;  %v3153_v11 = vpack.c.bf16 %v2361_v33, %v2357_v25 }
 0xa06   : > { %3134 = vmatpush1.bf16.msra.mxu1 %v3133_v12  ;;  %3072 = vmatprep.subr.bf16.mxu0 %v3071_v37  ;;  %v3091_v12 = vpack.c.bf16 %v2368_v35, %v2364_v34  ;;  %v2363_v37 = vld [vmem:[#allocation5 + $0x7c0] sm:$0xff] }
 0xa07   : > { %3136 = vmatprep.subr.bf16.mxu1 %v3135_v14  ;;  %v2369_v14 = vld [vmem:[#allocation5 + $0x7f0] sm:$0xff]  ;;  %v3093_v59 = vpack.c.bf16 %v2367_v40, %v2363_v37 }
 0xa08   : > { %v3157_v3 = vpack.c.bf16 %v2369_v14, %v2365_v7 }
 0xa09   : > { %3074 = vmatpush1.bf16.msra.mxu0 %v3073_v50 }
 0xa0a   : > { %3138 = vmatpush1.bf16.msra.mxu1 %v3137_v32  ;;  %3076 = vmatprep.subr.bf16.mxu0 %v3075_v41  ;;  %v2539_v32 = vunpack.c.0.s8 %v2538_v48 }
 0xa0b   : > { %3140 = vmatprep.subr.bf16.mxu1 %v3139_v53 }
 0xa0c   : > { %v2542_v31 = vsub.s32 %v2539_v32, %v3586_v1 }
 0xa0d   : > { %3078 = vmatpush1.bf16.msra.mxu0 %v3077_v55 }
 0xa0e   : > { %3142 = vmatpush1.bf16.msra.mxu1 %v3141_v56  ;;  %3080 = vmatprep.subr.bf16.mxu0 %v3079_v57 }
 0xa0f   : > { %3144 = vmatprep.subr.bf16.mxu1 %v3143_v9 }
 0xa11   : > { %3082 = vmatpush1.bf16.msra.mxu0 %v3081_v6 }
 0xa12   : > { %3146 = vmatpush1.bf16.msra.mxu1 %v3145_v5  ;;  %3084 = vmatprep.subr.bf16.mxu0 %v3083_v28 }
 0xa13   : > { %3148 = vmatprep.subr.bf16.mxu1 %v3147_v16 }
 0xa15   : > { %3086 = vmatpush1.bf16.msra.mxu0 %v3085_v20 }
 0xa16   : > { %3150 = vmatpush1.bf16.msra.mxu1 %v3149_v21  ;;  %3088 = vmatprep.subr.bf16.mxu0 %v3087_v22 }
 0xa17   : > { %3152 = vmatprep.subr.bf16.mxu1 %v3151_v30 }
 0xa19   : > { %3090 = vmatpush1.bf16.msra.mxu0 %v3089_v2 }
 0xa1a   : > { %3154 = vmatpush1.bf16.msra.mxu1 %v3153_v11  ;;  %3092 = vmatprep.subr.bf16.mxu0 %v3091_v12 }
 0xa1b   : > { %3156 = vmatprep.subr.bf16.mxu1 %v3155_v44 }
 0xa1d   : > { %3094 = vmatpush1.bf16.msra.mxu0 %v3093_v59 }
 0xa1e   : > { %3158 = vmatpush1.bf16.msra.mxu1 %v3157_v3 }
 0xa20   : > { %2442 = vmatmul.mubr.f32.vlgmr.msra.gmra.mrb[14].mxu0 %v2373_v45 }
 0xa21   : > { %2513 = vmatmul.mubr.f32.vlgmr.msra.gmra.mrb[14].mxu1 %v2373_v45 }
 0xaf3   : > { %v2443_v50 = vpop.f32.mrb[14].mxu0 }
 0xaf4   : > { %v2523_v41 = vmax.f32 %v2443_v50, 0.0  ;;  %v2514_v58 = vpop.f32.mrb[14].mxu1  ;;  %v2445_v51 = vpop.f32.mrb[15].mxu0 }
 0xaf5   : > { %v2525_v52 = vmax.f32 %v2514_v58, 0.0  ;;  %v2524_v53 = vmax.f32 %v2445_v51, 0.0  ;;  %v2516_v60 = vpop.f32.mrb[15].mxu1 }
 0xaf6   : > { %v2527_v61 = vmin.f32 %v2523_v41, 1.0  ;;  %v2526_v62 = vmax.f32 %v2516_v60, 0.0 }
 0xaf7   : > { %v2529_v63 = vmin.f32 %v2525_v52, 1.0  ;;  %v2528_v54 = vmin.f32 %v2524_v53, 1.0 }
 0xaf8   : > { %v2530_v55 = vmin.f32 %v2526_v62, 1.0 }
 0xaf9   : > { %v2535_v56 = vcombine.low %v2527_v61, %v2528_v54 }
 0xafa   : > { %v2536_v57 = vcombine.low %v2529_v63, %v2530_v55 }
 0xafb   : > { %v2543_v4 = vrot.slane %v2535_v56, %v2542_v31 }
 0xafc   : > { %v2550_v8 = vrot.slane %v2536_v57, %v2542_v31 }
 0xafe   : > { %v2551_v13 = vcombine.low %v2543_v4, %v2550_v8 }
 0xb00   : > { %v2558_v9 = vrot.slane %v2551_v13, %v2542_v31 }
 0xb02   : > { %2564 = vst.msk [vmem:[%s488_s18] sm:$0xf] %vm2562_vm0, %v2558_v9 }
 0xb03   : > { %3312 = shalt.err (!%p3309_p11)
}
 0xb04   : > { %s3313_s24 = scalar_lea.hbm %s4181_s16, 64  ;;  %s3317_s26 = scalar_lea.hbm %s4280_s14, 128 }
 0xb05   : > { %p3314_p13 = scmp.ne.s32.totalorder %s4181_s16, %s3313_s24  ;;  %p3318_p6 = scmp.lt.u32.totalorder %s4181_s16, %s4280_s14 }
 0xb06   : > { %p3319_p9 = scmp.lt.u32.totalorder %s3317_s26, %s3313_s24  ;;  %p3321_p12 = scmp.lt.u32.totalorder %s3313_s24, %s4181_s16 }
 0xb07   : > { %p3315_p5 = pnand %p3314_p13, %p4281_p1 }
 0xb08   : > { %p3320_p10 = por %p3319_p9, %p3318_p6 }
 0xb09   : > { %p3316_p0 = pneg %p3315_p5 }
 0xb0a   : > { %p3322_p2 = por %p3321_p12, %p3320_p10 }
 0xb0c   : > { %p3323_p3 = pnand %p3322_p2, %p3316_p0 }
 0xb0e   : > { %3326 = shalt.err (!%p3323_p3)
}
 0xb0f   : > { %3175 = dma.vmem_to_hbm [thread:$0]  (%p4281_p1), %s4183_s28, 64, %s4181_s16, %s2566_s23  }
 0xb10 PF: > { %s4282_s19 = sld [smem:[#allocation13_spill]]  ;;  %s4283_s22 = sld [smem:[#allocation11_spill]] }
 0xb11   : > { %s4284_s17 = sld [smem:[#allocation17_spill]] }
 0xb16   : > { %p3192_p4 = scmp.ge.s32.totalorder %s4282_s19, 2  ;;  %s2592_s29 = sand.u32 1, %s4283_s22  }
 0xb17   : > { %p4285_p7 = scmp.ne.s32.totalorder %s4284_s17, 0  ;;  %s2593_s15 = scalar_lea.sflag [#allocation4], %s2592_s29 }
 0xb19   : > { %p3185_p8 = pnand %p3192_p4, %p4285_p7 }
 0xb1b   : > { %3352 = dma.done.wait (!%p3185_p8), %s2593_s15, 64  }
 0xb1c   : > { %3354 = vsyncadd (!%p3185_p8), %s2593_s15, 4294967232  ;;  %s4286_s16 = sld [smem:[#allocation14_spill]]  ;;  %s4287_s24 = sld [smem:[#allocation12_spill]] }
 0xb1d   : > { %s4288_s15 = sld [smem:[#allocation15_spill]]  ;;  %s4289_s29 = smov %s3361_s30 }
 0xb22   : > { %p26_p11 = scmp.ge.s32.totalorder %s4286_s16, 4   ;;  %s4290_s30 = smov %s4287_s24 }
 0xb24   :  { %28 = sbr.rel (!%p26_p11) target bundleno = 7 (0x7), region = 127 }
 0xb2b   :  { %2598 = vsyncpa [#allocation3], 1 }
 0xb2c   :  { %2600 = vsyncpa [#allocation3 + $0x1], 1 }
 0xb2d   :  { %2601 = vsyncpa [#allocation6], 1 }
 0xb2e   :  { %2602 = vsyncpa [#allocation4], 1 }
 0xb2f   :  { %2604 = vsyncpa [#allocation4 + $0x1], 1 }

</bundles_post_ra>
